<compile_context>
chip_gen: v7x
topology: tpu7x:2x2x1
jax: 0.10.0
libtpu: 0.0.40
codegen_flags: <defaults>
</compile_context>

<pallas_src>
import functools

import jax
import jax.numpy as jnp
from jax import lax
from jax.experimental import pallas as pl
from jax.experimental.pallas import tpu as pltpu

NEG_SLOPE = 0.2      # nn.LeakyReLU(0.2)
BN_EPS = 1e-5        # nn.BatchNorm2d default eps
KSIZE = 4

_LAYERS = (
    dict(cin=3,    cout=128,  stride=2, pad=1, bn=False, act=True),
    dict(cin=128,  cout=256,  stride=2, pad=1, bn=True,  act=True),
    dict(cin=256,  cout=512,  stride=2, pad=1, bn=True,  act=True),
    dict(cin=512,  cout=1024, stride=2, pad=1, bn=True,  act=True),
    dict(cin=1024, cout=1,    stride=1, pad=0, bn=False, act=False),
)


def _round_up(x, m):
    return (x + m - 1) // m * m


def _leaky_relu(x, slope):
    return jnp.where(x >= 0, x, slope * x)


# ---------------------------------------------------------------------------
# Fused Pallas kernel:  act((patches @ W) * scale + bias)
# ---------------------------------------------------------------------------
def _fused_matmul_kernel(x_ref, w_ref, scale_ref, bias_ref, o_ref, acc_ref, *,
                         apply_act, neg_slope):
    @pl.when(pl.program_id(2) == 0)
    def _():
        acc_ref[...] = jnp.zeros_like(acc_ref)

    acc_ref[...] += jnp.dot(x_ref[...], w_ref[...],
                            preferred_element_type=jnp.float32)

    @pl.when(pl.program_id(2) == pl.num_programs(2) - 1)
    def _():
        y = acc_ref[...] * scale_ref[...] + bias_ref[...]
        if apply_act:
            y = jnp.where(y >= 0, y, neg_slope * y)
        o_ref[...] = y.astype(o_ref.dtype)


def _fused_matmul(patches, w, scale, bias, *, apply_act, neg_slope=NEG_SLOPE):
    """patches: (M, K) f32; w: (K, Cout) f32; scale/bias: (Cout,) f32.
    Returns (M, Cout) f32 of act((patches @ w) * scale + bias)."""
    M, K = patches.shape
    Cout = w.shape[1]

    # Lane-dense / MXU-friendly padding.
    Kp = _round_up(K, 128)
    Cp = _round_up(Cout, 128)
    tm = 256 if M >= 256 else _round_up(M, 8)
    Mp = _round_up(M, tm)
    tn = min(Cp, 256)
    tk = min(Kp, 512)

    x_p = jnp.pad(patches, ((0, Mp - M), (0, Kp - K))).astype(jnp.bfloat16)
    w_p = jnp.pad(w, ((0, Kp - K), (0, Cp - Cout))).astype(jnp.bfloat16)
    s_p = jnp.pad(scale, (0, Cp - Cout)).reshape(1, Cp).astype(jnp.float32)
    b_p = jnp.pad(bias, (0, Cp - Cout)).reshape(1, Cp).astype(jnp.float32)

    grid = (Mp // tm, Cp // tn, Kp // tk)
    kernel = functools.partial(_fused_matmul_kernel,
                               apply_act=apply_act, neg_slope=neg_slope)

    out = pl.pallas_call(
        kernel,
        out_shape=jax.ShapeDtypeStruct((Mp, Cp), jnp.float32),
        grid_spec=pltpu.PrefetchScalarGridSpec(
            num_scalar_prefetch=0,
            grid=grid,
            in_specs=[
                pl.BlockSpec((tm, tk), lambda i, j, k: (i, k)),   # patches tile
                pl.BlockSpec((tk, tn), lambda i, j, k: (k, j)),   # weight tile
                pl.BlockSpec((1, tn), lambda i, j, k: (0, j)),    # fused BN scale
                pl.BlockSpec((1, tn), lambda i, j, k: (0, j)),    # fused BN bias
            ],
            out_specs=pl.BlockSpec((tm, tn), lambda i, j, k: (i, j)),
            scratch_shapes=[pltpu.VMEM((tm, tn), jnp.float32)],
        ),
        compiler_params=pltpu.CompilerParams(
            dimension_semantics=("parallel", "parallel", "arbitrary")),
    )(x_p, w_p, s_p, b_p)
    return out[:M, :Cout]


# ---------------------------------------------------------------------------
# Layout glue (wrapper side): im2col, BN folding, NCHW<->NHWC
# ---------------------------------------------------------------------------
def _extract_patches(x_nhwc, ksize, stride, pad):
    """im2col via pure pad/slice/concat.  Column order is (dh, dw, ci) with ci
    fastest, matching HWIO weights reshaped to (k*k*Cin, Cout)."""
    if pad:
        x_nhwc = jnp.pad(x_nhwc, ((0, 0), (pad, pad), (pad, pad), (0, 0)))
    N, Hp, Wp, C = x_nhwc.shape
    OH = (Hp - ksize) // stride + 1
    OW = (Wp - ksize) // stride + 1
    taps = []
    for dh in range(ksize):
        for dw in range(ksize):
            xs = lax.slice(
                x_nhwc,
                (0, dh, dw, 0),
                (N, dh + stride * (OH - 1) + 1, dw + stride * (OW - 1) + 1, C),
                (1, stride, stride, 1))
            taps.append(xs)                           # (N, OH, OW, C)
    patches = jnp.concatenate(taps, axis=-1)          # (N, OH, OW, k*k*C)
    return patches.reshape(N * OH * OW, ksize * ksize * C), (N, OH, OW)


def _fold_bn(conv_b, bn):
    """Eval-mode BatchNorm folded into per-channel (scale, bias).
    # TODO(synk): training-mode BatchNorm (batch statistics) would need an extra
    # cross-tile reduction pass; eval-mode running stats are folded here."""
    if bn is None:
        return jnp.ones_like(conv_b), conv_b
    gamma, beta, mean, var = bn
    s = gamma / jnp.sqrt(var + BN_EPS)
    return s, beta + (conv_b - mean) * s


@jax.jit
def cnn_discriminator_forward(x_nchw, params):
    """x_nchw: (N, 3, 64, 64) float32 -> (N, 1, 1, 1), like the PyTorch module."""
    x = jnp.transpose(x_nchw, (0, 2, 3, 1)).astype(jnp.float32)     # NHWC
    for cfg, (w_hwio, conv_b, bn) in zip(_LAYERS, params):
        patches, (n, oh, ow) = _extract_patches(x, KSIZE, cfg["stride"], cfg["pad"])
        wmat = w_hwio.reshape(KSIZE * KSIZE * cfg["cin"], cfg["cout"])
        scale, bias = _fold_bn(conv_b, bn)
        y = _fused_matmul(patches, wmat, scale, bias, apply_act=cfg["act"])
        x = y.reshape(n, oh, ow, cfg["cout"])
    return jnp.transpose(x, (0, 3, 1, 2))                            # NCHW


# ---------------------------------------------------------------------------
# Init & reference
# ---------------------------------------------------------------------------
def init_params(key):
    """Conv weights stored HWIO (k, k, Cin, Cout); PyTorch-like uniform init."""
    params = []
    for cfg in _LAYERS:
        fan_in = cfg["cin"] * KSIZE * KSIZE
        bound = 1.0 / jnp.sqrt(fan_in)
        key, kw, kb, k1, k2, k3, k4 = jax.random.split(key, 7)
        w = jax.random.uniform(kw, (KSIZE, KSIZE, cfg["cin"], cfg["cout"]),
                               jnp.float32, -bound, bound)
        b = jax.random.uniform(kb, (cfg["cout"],), jnp.float32, -bound, bound)
        if cfg["bn"]:
            bn = (jax.random.uniform(k1, (cfg["cout"],), jnp.float32, 0.5, 1.5),  # gamma
                  0.1 * jax.random.normal(k2, (cfg["cout"],), jnp.float32),       # beta
                  0.1 * jax.random.normal(k3, (cfg["cout"],), jnp.float32),       # running_mean
                  jax.random.uniform(k4, (cfg["cout"],), jnp.float32, 0.5, 1.5))  # running_var
        else:
            bn = None
        params.append((w, b, bn))
    return tuple(params)


def reference_forward(x_nchw, params):
    """Pure-JAX (f32, XLA conv) reference for correctness checking."""
    x = jnp.transpose(x_nchw, (0, 2, 3, 1)).astype(jnp.float32)
    for cfg, (w_hwio, conv_b, bn) in zip(_LAYERS, params):
        p = cfg["pad"]
        y = lax.conv_general_dilated(
            x, w_hwio, window_strides=(cfg["stride"], cfg["stride"]),
            padding=((p, p), (p, p)),
            dimension_numbers=("NHWC", "HWIO", "NHWC"))
        scale, bias = _fold_bn(conv_b, bn)
        y = y * scale.reshape(1, 1, 1, -1) + bias.reshape(1, 1, 1, -1)
        if cfg["act"]:
            y = _leaky_relu(y, NEG_SLOPE)
        x = y
    return jnp.transpose(x, (0, 3, 1, 2))


if __name__ == "__main__":
    key = jax.random.PRNGKey(0)
    key_x, key_p = jax.random.split(key)

    # smallest valid input: four stride-2 convs then a k=4 valid conv needs 64x64
    batch, channels, hw = 2, 3, 64
    x = jax.random.normal(key_x, (batch, channels, hw, hw), dtype=jnp.float32)
    params = init_params(key_p)

    out = cnn_discriminator_forward(x, params)
    out = jax.block_until_ready(out)

    ref = reference_forward(x, params)
    assert out.shape == (batch, 1, 1, 1), out.shape
    max_err = float(jnp.max(jnp.abs(out - ref)))
    assert jnp.allclose(out, ref, atol=1e-2, rtol=5e-2), max_err  # bf16 matmul inputs

    print("KERNEL_OK")
</pallas_src>

<mosaic_0001>
module attributes {stable_mosaic.version = 11 : i64} {
  func.func @_fused_matmul_kernel(%arg0: i32, %arg1: i32, %arg2: i32, %arg3: memref<256x128xbf16, #tpu.memory_space<vmem>>, %arg4: memref<128x128xbf16, #tpu.memory_space<vmem>>, %arg5: memref<1x128xf32, #tpu.memory_space<vmem>>, %arg6: memref<1x128xf32, #tpu.memory_space<vmem>>, %arg7: memref<256x128xf32, #tpu.memory_space<vmem>>, %arg8: memref<256x128xf32, #tpu.memory_space<vmem>>) attributes {dimension_semantics = [#tpu.dimension_semantics<parallel>, #tpu.dimension_semantics<parallel>, #tpu.dimension_semantics<arbitrary>], iteration_bounds = array<i64: 8, 1, 1>, scalar_prefetch = 0 : i64, scratch_operands = 1 : i64, tpu.core_type = #tpu.core_type<tc>, window_params = [{transform_indices = @transform_0, window_bounds = array<i64: 256, 128>}, {transform_indices = @transform_1, window_bounds = array<i64: 128, 128>}, {transform_indices = @transform_2, window_bounds = array<i64: 1, 128>}, {transform_indices = @transform_3, window_bounds = array<i64: 1, 128>}, {transform_indices = @transform_4, window_bounds = array<i64: 256, 128>}]} {
    %c0_i32 = arith.constant 0 : i32
    %0 = arith.cmpi eq, %arg2, %c0_i32 : i32
    %1 = arith.extui %0 : i1 to i32
    %c0_i32_0 = arith.constant 0 : i32
    %2 = arith.cmpi ne, %1, %c0_i32_0 : i32
    scf.if %2 {
      %cst_10 = arith.constant 0.000000e+00 : f32
      %12 = vector.broadcast %cst_10 : f32 to vector<256x128xf32>
      %c0_11 = arith.constant 0 : index
      %c0_12 = arith.constant 0 : index
      %13 = vector.load %arg8[%c0_11, %c0_12] : memref<256x128xf32, #tpu.memory_space<vmem>>, vector<256x128xf32>
      tpu.vector_store %arg8[%c0_11, %c0_12], %12 {strides = array<i32>} : memref<256x128xf32, #tpu.memory_space<vmem>>, vector<256x128xf32>,
    } else {
    }
    %c0 = arith.constant 0 : index
    %c0_1 = arith.constant 0 : index
    %3 = vector.load %arg8[%c0, %c0_1] : memref<256x128xf32, #tpu.memory_space<vmem>>, vector<256x128xf32>
    %c0_2 = arith.constant 0 : index
    %c0_3 = arith.constant 0 : index
    %4 = vector.load %arg3[%c0_2, %c0_3] : memref<256x128xbf16, #tpu.memory_space<vmem>>, vector<256x128xbf16>
    %c0_4 = arith.constant 0 : index
    %c0_5 = arith.constant 0 : index
    %5 = vector.load %arg4[%c0_4, %c0_5] : memref<128x128xbf16, #tpu.memory_space<vmem>>, vector<128x128xbf16>
    %cst = arith.constant dense<0.000000e+00> : vector<256x128xf32>
    %6 = tpu.matmul %4, %5, %cst {dimension_numbers = #tpu.dot_dimension_numbers<[1], [0], [0], [1], [0, 0, 1, 1], [], []>} : vector<256x128xbf16>, vector<128x128xbf16>, vector<256x128xf32> -> vector<256x128xf32>
    %7 = arith.addf %3, %6 : vector<256x128xf32>
    %c0_6 = arith.constant 0 : index
    %c0_7 = arith.constant 0 : index
    %8 = vector.load %arg8[%c0_6, %c0_7] : memref<256x128xf32, #tpu.memory_space<vmem>>, vector<256x128xf32>
    tpu.vector_store %arg8[%c0_6, %c0_7], %7 {strides = array<i32>} : memref<256x128xf32, #tpu.memory_space<vmem>>, vector<256x128xf32>,
    %c0_i32_8 = arith.constant 0 : i32
    %9 = arith.cmpi eq, %arg2, %c0_i32_8 : i32
    %10 = arith.extui %9 : i1 to i32
    %c0_i32_9 = arith.constant 0 : i32
    %11 = arith.cmpi ne, %10, %c0_i32_9 : i32
    scf.if %11 {
      %c0_10 = arith.constant 0 : index
      %c0_11 = arith.constant 0 : index
      %12 = vector.load %arg8[%c0_10, %c0_11] : memref<256x128xf32, #tpu.memory_space<vmem>>, vector<256x128xf32>
      %c0_12 = arith.constant 0 : index
      %c0_13 = arith.constant 0 : index
      %13 = vector.load %arg5[%c0_12, %c0_13] : memref<1x128xf32, #tpu.memory_space<vmem>>, vector<1x128xf32>
      %14 = vector.broadcast %13 : vector<1x128xf32> to vector<256x128xf32>
      %15 = arith.mulf %12, %14 : vector<256x128xf32>
      %c0_14 = arith.constant 0 : index
      %c0_15 = arith.constant 0 : index
      %16 = vector.load %arg6[%c0_14, %c0_15] : memref<1x128xf32, #tpu.memory_space<vmem>>, vector<1x128xf32>
      %17 = vector.broadcast %16 : vector<1x128xf32> to vector<256x128xf32>
      %18 = arith.addf %15, %17 : vector<256x128xf32>
      %cst_16 = arith.constant 0.000000e+00 : f32
      %19 = vector.broadcast %cst_16 : f32 to vector<256x128xf32>
      %20 = arith.cmpf oge, %18, %19 : vector<256x128xf32>
      %cst_17 = arith.constant 2.000000e-01 : f32
      %21 = vector.broadcast %cst_17 : f32 to vector<256x128xf32>
      %22 = arith.mulf %21, %18 : vector<256x128xf32>
      %23 = arith.select %20, %18, %22 : vector<256x128xi1>, vector<256x128xf32>
      %c0_18 = arith.constant 0 : index
      %c0_19 = arith.constant 0 : index
      %24 = vector.load %arg7[%c0_18, %c0_19] : memref<256x128xf32, #tpu.memory_space<vmem>>, vector<256x128xf32>
      tpu.vector_store %arg7[%c0_18, %c0_19], %23 {strides = array<i32>} : memref<256x128xf32, #tpu.memory_space<vmem>>, vector<256x128xf32>,
    } else {
    }
    return
  }
  func.func @transform_0(%arg0: i32, %arg1: i32, %arg2: i32) -> (i32, i32) {
    %c0_i32 = arith.constant 0 : i32
    return %arg0, %arg2 : i32, i32
  }
  func.func @transform_1(%arg0: i32, %arg1: i32, %arg2: i32) -> (i32, i32) {
    %c0_i32 = arith.constant 0 : i32
    return %arg2, %arg1 : i32, i32
  }
  func.func @transform_2(%arg0: i32, %arg1: i32, %arg2: i32) -> (i32, i32) {
    %c0_i32 = arith.constant 0 : i32
    %c0_i32_0 = arith.constant 0 : i32
    return %c0_i32, %arg1 : i32, i32
  }
  func.func @transform_3(%arg0: i32, %arg1: i32, %arg2: i32) -> (i32, i32) {
    %c0_i32 = arith.constant 0 : i32
    %c0_i32_0 = arith.constant 0 : i32
    return %c0_i32, %arg1 : i32, i32
  }
  func.func @transform_4(%arg0: i32, %arg1: i32, %arg2: i32) -> (i32, i32) {
    %c0_i32 = arith.constant 0 : i32
    return %arg0, %arg1 : i32, i32
  }
}

module attributes {stable_mosaic.version = 11 : i64} {
  func.func @_fused_matmul_kernel(%arg0: i32, %arg1: i32, %arg2: i32, %arg3: memref<256x512xbf16, #tpu.memory_space<vmem>>, %arg4: memref<512x256xbf16, #tpu.memory_space<vmem>>, %arg5: memref<1x256xf32, #tpu.memory_space<vmem>>, %arg6: memref<1x256xf32, #tpu.memory_space<vmem>>, %arg7: memref<256x256xf32, #tpu.memory_space<vmem>>, %arg8: memref<256x256xf32, #tpu.memory_space<vmem>>) attributes {dimension_semantics = [#tpu.dimension_semantics<parallel>, #tpu.dimension_semantics<parallel>, #tpu.dimension_semantics<arbitrary>], iteration_bounds = array<i64: 2, 1, 4>, scalar_prefetch = 0 : i64, scratch_operands = 1 : i64, tpu.core_type = #tpu.core_type<tc>, window_params = [{transform_indices = @transform_0, window_bounds = array<i64: 256, 512>}, {transform_indices = @transform_1, window_bounds = array<i64: 512, 256>}, {transform_indices = @transform_2, window_bounds = array<i64: 1, 256>}, {transform_indices = @transform_3, window_bounds = array<i64: 1, 256>}, {transform_indices = @transform_4, window_bounds = array<i64: 256, 256>}]} {
    %c0_i32 = arith.constant 0 : i32
    %0 = arith.cmpi eq, %arg2, %c0_i32 : i32
    %1 = arith.extui %0 : i1 to i32
    %c0_i32_0 = arith.constant 0 : i32
    %2 = arith.cmpi ne, %1, %c0_i32_0 : i32
    scf.if %2 {
      %cst_9 = arith.constant 0.000000e+00 : f32
      %12 = vector.broadcast %cst_9 : f32 to vector<256x256xf32>
      %c0_10 = arith.constant 0 : index
      %c0_11 = arith.constant 0 : index
      %13 = vector.load %arg8[%c0_10, %c0_11] : memref<256x256xf32, #tpu.memory_space<vmem>>, vector<256x256xf32>
      tpu.vector_store %arg8[%c0_10, %c0_11], %12 {strides = array<i32>} : memref<256x256xf32, #tpu.memory_space<vmem>>, vector<256x256xf32>,
    } else {
    }
    %c0 = arith.constant 0 : index
    %c0_1 = arith.constant 0 : index
    %3 = vector.load %arg8[%c0, %c0_1] : memref<256x256xf32, #tpu.memory_space<vmem>>, vector<256x256xf32>
    %c0_2 = arith.constant 0 : index
    %c0_3 = arith.constant 0 : index
    %4 = vector.load %arg3[%c0_2, %c0_3] : memref<256x512xbf16, #tpu.memory_space<vmem>>, vector<256x512xbf16>
    %c0_4 = arith.constant 0 : index
    %c0_5 = arith.constant 0 : index
    %5 = vector.load %arg4[%c0_4, %c0_5] : memref<512x256xbf16, #tpu.memory_space<vmem>>, vector<512x256xbf16>
    %cst = arith.constant dense<0.000000e+00> : vector<256x256xf32>
    %6 = tpu.matmul %4, %5, %cst {dimension_numbers = #tpu.dot_dimension_numbers<[1], [0], [0], [1], [0, 0, 1, 1], [], []>} : vector<256x512xbf16>, vector<512x256xbf16>, vector<256x256xf32> -> vector<256x256xf32>
    %7 = arith.addf %3, %6 : vector<256x256xf32>
    %c0_6 = arith.constant 0 : index
    %c0_7 = arith.constant 0 : index
    %8 = vector.load %arg8[%c0_6, %c0_7] : memref<256x256xf32, #tpu.memory_space<vmem>>, vector<256x256xf32>
    tpu.vector_store %arg8[%c0_6, %c0_7], %7 {strides = array<i32>} : memref<256x256xf32, #tpu.memory_space<vmem>>, vector<256x256xf32>,
    %c3_i32 = arith.constant 3 : i32
    %9 = arith.cmpi eq, %arg2, %c3_i32 : i32
    %10 = arith.extui %9 : i1 to i32
    %c0_i32_8 = arith.constant 0 : i32
    %11 = arith.cmpi ne, %10, %c0_i32_8 : i32
    scf.if %11 {
      %c0_9 = arith.constant 0 : index
      %c0_10 = arith.constant 0 : index
      %12 = vector.load %arg8[%c0_9, %c0_10] : memref<256x256xf32, #tpu.memory_space<vmem>>, vector<256x256xf32>
      %c0_11 = arith.constant 0 : index
      %c0_12 = arith.constant 0 : index
      %13 = vector.load %arg5[%c0_11, %c0_12] : memref<1x256xf32, #tpu.memory_space<vmem>>, vector<1x256xf32>
      %14 = vector.broadcast %13 : vector<1x256xf32> to vector<256x256xf32>
      %15 = arith.mulf %12, %14 : vector<256x256xf32>
      %c0_13 = arith.constant 0 : index
      %c0_14 = arith.constant 0 : index
      %16 = vector.load %arg6[%c0_13, %c0_14] : memref<1x256xf32, #tpu.memory_space<vmem>>, vector<1x256xf32>
      %17 = vector.broadcast %16 : vector<1x256xf32> to vector<256x256xf32>
      %18 = arith.addf %15, %17 : vector<256x256xf32>
      %cst_15 = arith.constant 0.000000e+00 : f32
      %19 = vector.broadcast %cst_15 : f32 to vector<256x256xf32>
      %20 = arith.cmpf oge, %18, %19 : vector<256x256xf32>
      %cst_16 = arith.constant 2.000000e-01 : f32
      %21 = vector.broadcast %cst_16 : f32 to vector<256x256xf32>
      %22 = arith.mulf %21, %18 : vector<256x256xf32>
      %23 = arith.select %20, %18, %22 : vector<256x256xi1>, vector<256x256xf32>
      %c0_17 = arith.constant 0 : index
      %c0_18 = arith.constant 0 : index
      %24 = vector.load %arg7[%c0_17, %c0_18] : memref<256x256xf32, #tpu.memory_space<vmem>>, vector<256x256xf32>
      tpu.vector_store %arg7[%c0_17, %c0_18], %23 {strides = array<i32>} : memref<256x256xf32, #tpu.memory_space<vmem>>, vector<256x256xf32>,
    } else {
    }
    return
  }
  func.func @transform_0(%arg0: i32, %arg1: i32, %arg2: i32) -> (i32, i32) {
    %c0_i32 = arith.constant 0 : i32
    return %arg0, %arg2 : i32, i32
  }
  func.func @transform_1(%arg0: i32, %arg1: i32, %arg2: i32) -> (i32, i32) {
    %c0_i32 = arith.constant 0 : i32
    return %arg2, %arg1 : i32, i32
  }
  func.func @transform_2(%arg0: i32, %arg1: i32, %arg2: i32) -> (i32, i32) {
    %c0_i32 = arith.constant 0 : i32
    %c0_i32_0 = arith.constant 0 : i32
    return %c0_i32, %arg1 : i32, i32
  }
  func.func @transform_3(%arg0: i32, %arg1: i32, %arg2: i32) -> (i32, i32) {
    %c0_i32 = arith.constant 0 : i32
    %c0_i32_0 = arith.constant 0 : i32
    return %c0_i32, %arg1 : i32, i32
  }
  func.func @transform_4(%arg0: i32, %arg1: i32, %arg2: i32) -> (i32, i32) {
    %c0_i32 = arith.constant 0 : i32
    return %arg0, %arg1 : i32, i32
  }
}

module attributes {stable_mosaic.version = 11 : i64} {
  func.func @_fused_matmul_kernel(%arg0: i32, %arg1: i32, %arg2: i32, %arg3: memref<128x512xbf16, #tpu.memory_space<vmem>>, %arg4: memref<512x256xbf16, #tpu.memory_space<vmem>>, %arg5: memref<1x256xf32, #tpu.memory_space<vmem>>, %arg6: memref<1x256xf32, #tpu.memory_space<vmem>>, %arg7: memref<128x256xf32, #tpu.memory_space<vmem>>, %arg8: memref<128x256xf32, #tpu.memory_space<vmem>>) attributes {dimension_semantics = [#tpu.dimension_semantics<parallel>, #tpu.dimension_semantics<parallel>, #tpu.dimension_semantics<arbitrary>], iteration_bounds = array<i64: 1, 2, 8>, scalar_prefetch = 0 : i64, scratch_operands = 1 : i64, tpu.core_type = #tpu.core_type<tc>, window_params = [{transform_indices = @transform_0, window_bounds = array<i64: 128, 512>}, {transform_indices = @transform_1, window_bounds = array<i64: 512, 256>}, {transform_indices = @transform_2, window_bounds = array<i64: 1, 256>}, {transform_indices = @transform_3, window_bounds = array<i64: 1, 256>}, {transform_indices = @transform_4, window_bounds = array<i64: 128, 256>}]} {
    %c0_i32 = arith.constant 0 : i32
    %0 = arith.cmpi eq, %arg2, %c0_i32 : i32
    %1 = arith.extui %0 : i1 to i32
    %c0_i32_0 = arith.constant 0 : i32
    %2 = arith.cmpi ne, %1, %c0_i32_0 : i32
    scf.if %2 {
      %cst_9 = arith.constant 0.000000e+00 : f32
      %12 = vector.broadcast %cst_9 : f32 to vector<128x256xf32>
      %c0_10 = arith.constant 0 : index
      %c0_11 = arith.constant 0 : index
      %13 = vector.load %arg8[%c0_10, %c0_11] : memref<128x256xf32, #tpu.memory_space<vmem>>, vector<128x256xf32>
      tpu.vector_store %arg8[%c0_10, %c0_11], %12 {strides = array<i32>} : memref<128x256xf32, #tpu.memory_space<vmem>>, vector<128x256xf32>,
    } else {
    }
    %c0 = arith.constant 0 : index
    %c0_1 = arith.constant 0 : index
    %3 = vector.load %arg8[%c0, %c0_1] : memref<128x256xf32, #tpu.memory_space<vmem>>, vector<128x256xf32>
    %c0_2 = arith.constant 0 : index
    %c0_3 = arith.constant 0 : index
    %4 = vector.load %arg3[%c0_2, %c0_3] : memref<128x512xbf16, #tpu.memory_space<vmem>>, vector<128x512xbf16>
    %c0_4 = arith.constant 0 : index
    %c0_5 = arith.constant 0 : index
    %5 = vector.load %arg4[%c0_4, %c0_5] : memref<512x256xbf16, #tpu.memory_space<vmem>>, vector<512x256xbf16>
    %cst = arith.constant dense<0.000000e+00> : vector<128x256xf32>
    %6 = tpu.matmul %4, %5, %cst {dimension_numbers = #tpu.dot_dimension_numbers<[1], [0], [0], [1], [0, 0, 1, 1], [], []>} : vector<128x512xbf16>, vector<512x256xbf16>, vector<128x256xf32> -> vector<128x256xf32>
    %7 = arith.addf %3, %6 : vector<128x256xf32>
    %c0_6 = arith.constant 0 : index
    %c0_7 = arith.constant 0 : index
    %8 = vector.load %arg8[%c0_6, %c0_7] : memref<128x256xf32, #tpu.memory_space<vmem>>, vector<128x256xf32>
    tpu.vector_store %arg8[%c0_6, %c0_7], %7 {strides = array<i32>} : memref<128x256xf32, #tpu.memory_space<vmem>>, vector<128x256xf32>,
    %c7_i32 = arith.constant 7 : i32
    %9 = arith.cmpi eq, %arg2, %c7_i32 : i32
    %10 = arith.extui %9 : i1 to i32
    %c0_i32_8 = arith.constant 0 : i32
    %11 = arith.cmpi ne, %10, %c0_i32_8 : i32
    scf.if %11 {
      %c0_9 = arith.constant 0 : index
      %c0_10 = arith.constant 0 : index
      %12 = vector.load %arg8[%c0_9, %c0_10] : memref<128x256xf32, #tpu.memory_space<vmem>>, vector<128x256xf32>
      %c0_11 = arith.constant 0 : index
      %c0_12 = arith.constant 0 : index
      %13 = vector.load %arg5[%c0_11, %c0_12] : memref<1x256xf32, #tpu.memory_space<vmem>>, vector<1x256xf32>
      %14 = vector.broadcast %13 : vector<1x256xf32> to vector<128x256xf32>
      %15 = arith.mulf %12, %14 : vector<128x256xf32>
      %c0_13 = arith.constant 0 : index
      %c0_14 = arith.constant 0 : index
      %16 = vector.load %arg6[%c0_13, %c0_14] : memref<1x256xf32, #tpu.memory_space<vmem>>, vector<1x256xf32>
      %17 = vector.broadcast %16 : vector<1x256xf32> to vector<128x256xf32>
      %18 = arith.addf %15, %17 : vector<128x256xf32>
      %cst_15 = arith.constant 0.000000e+00 : f32
      %19 = vector.broadcast %cst_15 : f32 to vector<128x256xf32>
      %20 = arith.cmpf oge, %18, %19 : vector<128x256xf32>
      %cst_16 = arith.constant 2.000000e-01 : f32
      %21 = vector.broadcast %cst_16 : f32 to vector<128x256xf32>
      %22 = arith.mulf %21, %18 : vector<128x256xf32>
      %23 = arith.select %20, %18, %22 : vector<128x256xi1>, vector<128x256xf32>
      %c0_17 = arith.constant 0 : index
      %c0_18 = arith.constant 0 : index
      %24 = vector.load %arg7[%c0_17, %c0_18] : memref<128x256xf32, #tpu.memory_space<vmem>>, vector<128x256xf32>
      tpu.vector_store %arg7[%c0_17, %c0_18], %23 {strides = array<i32>} : memref<128x256xf32, #tpu.memory_space<vmem>>, vector<128x256xf32>,
    } else {
    }
    return
  }
  func.func @transform_0(%arg0: i32, %arg1: i32, %arg2: i32) -> (i32, i32) {
    %c0_i32 = arith.constant 0 : i32
    return %arg0, %arg2 : i32, i32
  }
  func.func @transform_1(%arg0: i32, %arg1: i32, %arg2: i32) -> (i32, i32) {
    %c0_i32 = arith.constant 0 : i32
    return %arg2, %arg1 : i32, i32
  }
  func.func @transform_2(%arg0: i32, %arg1: i32, %arg2: i32) -> (i32, i32) {
    %c0_i32 = arith.constant 0 : i32
    %c0_i32_0 = arith.constant 0 : i32
    return %c0_i32, %arg1 : i32, i32
  }
  func.func @transform_3(%arg0: i32, %arg1: i32, %arg2: i32) -> (i32, i32) {
    %c0_i32 = arith.constant 0 : i32
    %c0_i32_0 = arith.constant 0 : i32
    return %c0_i32, %arg1 : i32, i32
  }
  func.func @transform_4(%arg0: i32, %arg1: i32, %arg2: i32) -> (i32, i32) {
    %c0_i32 = arith.constant 0 : i32
    return %arg0, %arg1 : i32, i32
  }
}

module attributes {stable_mosaic.version = 11 : i64} {
  func.func @_fused_matmul_kernel(%arg0: i32, %arg1: i32, %arg2: i32, %arg3: memref<32x512xbf16, #tpu.memory_space<vmem>>, %arg4: memref<512x256xbf16, #tpu.memory_space<vmem>>, %arg5: memref<1x256xf32, #tpu.memory_space<vmem>>, %arg6: memref<1x256xf32, #tpu.memory_space<vmem>>, %arg7: memref<32x256xf32, #tpu.memory_space<vmem>>, %arg8: memref<32x256xf32, #tpu.memory_space<vmem>>) attributes {dimension_semantics = [#tpu.dimension_semantics<parallel>, #tpu.dimension_semantics<parallel>, #tpu.dimension_semantics<arbitrary>], iteration_bounds = array<i64: 1, 4, 16>, scalar_prefetch = 0 : i64, scratch_operands = 1 : i64, tpu.core_type = #tpu.core_type<tc>, window_params = [{transform_indices = @transform_0, window_bounds = array<i64: 32, 512>}, {transform_indices = @transform_1, window_bounds = array<i64: 512, 256>}, {transform_indices = @transform_2, window_bounds = array<i64: 1, 256>}, {transform_indices = @transform_3, window_bounds = array<i64: 1, 256>}, {transform_indices = @transform_4, window_bounds = array<i64: 32, 256>}]} {
    %c0_i32 = arith.constant 0 : i32
    %0 = arith.cmpi eq, %arg2, %c0_i32 : i32
    %1 = arith.extui %0 : i1 to i32
    %c0_i32_0 = arith.constant 0 : i32
    %2 = arith.cmpi ne, %1, %c0_i32_0 : i32
    scf.if %2 {
      %cst_9 = arith.constant 0.000000e+00 : f32
      %12 = vector.broadcast %cst_9 : f32 to vector<32x256xf32>
      %c0_10 = arith.constant 0 : index
      %c0_11 = arith.constant 0 : index
      %13 = vector.load %arg8[%c0_10, %c0_11] : memref<32x256xf32, #tpu.memory_space<vmem>>, vector<32x256xf32>
      tpu.vector_store %arg8[%c0_10, %c0_11], %12 {strides = array<i32>} : memref<32x256xf32, #tpu.memory_space<vmem>>, vector<32x256xf32>,
    } else {
    }
    %c0 = arith.constant 0 : index
    %c0_1 = arith.constant 0 : index
    %3 = vector.load %arg8[%c0, %c0_1] : memref<32x256xf32, #tpu.memory_space<vmem>>, vector<32x256xf32>
    %c0_2 = arith.constant 0 : index
    %c0_3 = arith.constant 0 : index
    %4 = vector.load %arg3[%c0_2, %c0_3] : memref<32x512xbf16, #tpu.memory_space<vmem>>, vector<32x512xbf16>
    %c0_4 = arith.constant 0 : index
    %c0_5 = arith.constant 0 : index
    %5 = vector.load %arg4[%c0_4, %c0_5] : memref<512x256xbf16, #tpu.memory_space<vmem>>, vector<512x256xbf16>
    %cst = arith.constant dense<0.000000e+00> : vector<32x256xf32>
    %6 = tpu.matmul %4, %5, %cst {dimension_numbers = #tpu.dot_dimension_numbers<[1], [0], [0], [1], [0, 0, 1, 1], [], []>} : vector<32x512xbf16>, vector<512x256xbf16>, vector<32x256xf32> -> vector<32x256xf32>
    %7 = arith.addf %3, %6 : vector<32x256xf32>
    %c0_6 = arith.constant 0 : index
    %c0_7 = arith.constant 0 : index
    %8 = vector.load %arg8[%c0_6, %c0_7] : memref<32x256xf32, #tpu.memory_space<vmem>>, vector<32x256xf32>
    tpu.vector_store %arg8[%c0_6, %c0_7], %7 {strides = array<i32>} : memref<32x256xf32, #tpu.memory_space<vmem>>, vector<32x256xf32>,
    %c15_i32 = arith.constant 15 : i32
    %9 = arith.cmpi eq, %arg2, %c15_i32 : i32
    %10 = arith.extui %9 : i1 to i32
    %c0_i32_8 = arith.constant 0 : i32
    %11 = arith.cmpi ne, %10, %c0_i32_8 : i32
    scf.if %11 {
      %c0_9 = arith.constant 0 : index
      %c0_10 = arith.constant 0 : index
      %12 = vector.load %arg8[%c0_9, %c0_10] : memref<32x256xf32, #tpu.memory_space<vmem>>, vector<32x256xf32>
      %c0_11 = arith.constant 0 : index
      %c0_12 = arith.constant 0 : index
      %13 = vector.load %arg5[%c0_11, %c0_12] : memref<1x256xf32, #tpu.memory_space<vmem>>, vector<1x256xf32>
      %14 = vector.broadcast %13 : vector<1x256xf32> to vector<32x256xf32>
      %15 = arith.mulf %12, %14 : vector<32x256xf32>
      %c0_13 = arith.constant 0 : index
      %c0_14 = arith.constant 0 : index
      %16 = vector.load %arg6[%c0_13, %c0_14] : memref<1x256xf32, #tpu.memory_space<vmem>>, vector<1x256xf32>
      %17 = vector.broadcast %16 : vector<1x256xf32> to vector<32x256xf32>
      %18 = arith.addf %15, %17 : vector<32x256xf32>
      %cst_15 = arith.constant 0.000000e+00 : f32
      %19 = vector.broadcast %cst_15 : f32 to vector<32x256xf32>
      %20 = arith.cmpf oge, %18, %19 : vector<32x256xf32>
      %cst_16 = arith.constant 2.000000e-01 : f32
      %21 = vector.broadcast %cst_16 : f32 to vector<32x256xf32>
      %22 = arith.mulf %21, %18 : vector<32x256xf32>
      %23 = arith.select %20, %18, %22 : vector<32x256xi1>, vector<32x256xf32>
      %c0_17 = arith.constant 0 : index
      %c0_18 = arith.constant 0 : index
      %24 = vector.load %arg7[%c0_17, %c0_18] : memref<32x256xf32, #tpu.memory_space<vmem>>, vector<32x256xf32>
      tpu.vector_store %arg7[%c0_17, %c0_18], %23 {strides = array<i32>} : memref<32x256xf32, #tpu.memory_space<vmem>>, vector<32x256xf32>,
    } else {
    }
    return
  }
  func.func @transform_0(%arg0: i32, %arg1: i32, %arg2: i32) -> (i32, i32) {
    %c0_i32 = arith.constant 0 : i32
    return %arg0, %arg2 : i32, i32
  }
  func.func @transform_1(%arg0: i32, %arg1: i32, %arg2: i32) -> (i32, i32) {
    %c0_i32 = arith.constant 0 : i32
    return %arg2, %arg1 : i32, i32
  }
  func.func @transform_2(%arg0: i32, %arg1: i32, %arg2: i32) -> (i32, i32) {
    %c0_i32 = arith.constant 0 : i32
    %c0_i32_0 = arith.constant 0 : i32
    return %c0_i32, %arg1 : i32, i32
  }
  func.func @transform_3(%arg0: i32, %arg1: i32, %arg2: i32) -> (i32, i32) {
    %c0_i32 = arith.constant 0 : i32
    %c0_i32_0 = arith.constant 0 : i32
    return %c0_i32, %arg1 : i32, i32
  }
  func.func @transform_4(%arg0: i32, %arg1: i32, %arg2: i32) -> (i32, i32) {
    %c0_i32 = arith.constant 0 : i32
    return %arg0, %arg1 : i32, i32
  }
}

module attributes {stable_mosaic.version = 11 : i64} {
  func.func @_fused_matmul_kernel(%arg0: i32, %arg1: i32, %arg2: i32, %arg3: memref<8x512xbf16, #tpu.memory_space<vmem>>, %arg4: memref<512x128xbf16, #tpu.memory_space<vmem>>, %arg5: memref<1x128xf32, #tpu.memory_space<vmem>>, %arg6: memref<1x128xf32, #tpu.memory_space<vmem>>, %arg7: memref<8x128xf32, #tpu.memory_space<vmem>>, %arg8: memref<8x128xf32, #tpu.memory_space<vmem>>) attributes {dimension_semantics = [#tpu.dimension_semantics<parallel>, #tpu.dimension_semantics<parallel>, #tpu.dimension_semantics<arbitrary>], iteration_bounds = array<i64: 1, 1, 32>, scalar_prefetch = 0 : i64, scratch_operands = 1 : i64, tpu.core_type = #tpu.core_type<tc>, window_params = [{transform_indices = @transform_0, window_bounds = array<i64: 8, 512>}, {transform_indices = @transform_1, window_bounds = array<i64: 512, 128>}, {transform_indices = @transform_2, window_bounds = array<i64: 1, 128>}, {transform_indices = @transform_3, window_bounds = array<i64: 1, 128>}, {transform_indices = @transform_4, window_bounds = array<i64: 8, 128>}]} {
    %c0_i32 = arith.constant 0 : i32
    %0 = arith.cmpi eq, %arg2, %c0_i32 : i32
    %1 = arith.extui %0 : i1 to i32
    %c0_i32_0 = arith.constant 0 : i32
    %2 = arith.cmpi ne, %1, %c0_i32_0 : i32
    scf.if %2 {
      %cst_9 = arith.constant 0.000000e+00 : f32
      %12 = vector.broadcast %cst_9 : f32 to vector<8x128xf32>
      %c0_10 = arith.constant 0 : index
      %c0_11 = arith.constant 0 : index
      %13 = vector.load %arg8[%c0_10, %c0_11] : memref<8x128xf32, #tpu.memory_space<vmem>>, vector<8x128xf32>
      tpu.vector_store %arg8[%c0_10, %c0_11], %12 {strides = array<i32>} : memref<8x128xf32, #tpu.memory_space<vmem>>, vector<8x128xf32>,
    } else {
    }
    %c0 = arith.constant 0 : index
    %c0_1 = arith.constant 0 : index
    %3 = vector.load %arg8[%c0, %c0_1] : memref<8x128xf32, #tpu.memory_space<vmem>>, vector<8x128xf32>
    %c0_2 = arith.constant 0 : index
    %c0_3 = arith.constant 0 : index
    %4 = vector.load %arg3[%c0_2, %c0_3] : memref<8x512xbf16, #tpu.memory_space<vmem>>, vector<8x512xbf16>
    %c0_4 = arith.constant 0 : index
    %c0_5 = arith.constant 0 : index
    %5 = vector.load %arg4[%c0_4, %c0_5] : memref<512x128xbf16, #tpu.memory_space<vmem>>, vector<512x128xbf16>
    %cst = arith.constant dense<0.000000e+00> : vector<8x128xf32>
    %6 = tpu.matmul %4, %5, %cst {dimension_numbers = #tpu.dot_dimension_numbers<[1], [0], [0], [1], [0, 0, 1, 1], [], []>} : vector<8x512xbf16>, vector<512x128xbf16>, vector<8x128xf32> -> vector<8x128xf32>
    %7 = arith.addf %3, %6 : vector<8x128xf32>
    %c0_6 = arith.constant 0 : index
    %c0_7 = arith.constant 0 : index
    %8 = vector.load %arg8[%c0_6, %c0_7] : memref<8x128xf32, #tpu.memory_space<vmem>>, vector<8x128xf32>
    tpu.vector_store %arg8[%c0_6, %c0_7], %7 {strides = array<i32>} : memref<8x128xf32, #tpu.memory_space<vmem>>, vector<8x128xf32>,
    %c31_i32 = arith.constant 31 : i32
    %9 = arith.cmpi eq, %arg2, %c31_i32 : i32
    %10 = arith.extui %9 : i1 to i32
    %c0_i32_8 = arith.constant 0 : i32
    %11 = arith.cmpi ne, %10, %c0_i32_8 : i32
    scf.if %11 {
      %c0_9 = arith.constant 0 : index
      %c0_10 = arith.constant 0 : index
      %12 = vector.load %arg8[%c0_9, %c0_10] : memref<8x128xf32, #tpu.memory_space<vmem>>, vector<8x128xf32>
      %c0_11 = arith.constant 0 : index
      %c0_12 = arith.constant 0 : index
      %13 = vector.load %arg5[%c0_11, %c0_12] : memref<1x128xf32, #tpu.memory_space<vmem>>, vector<1x128xf32>
      %14 = vector.broadcast %13 : vector<1x128xf32> to vector<8x128xf32>
      %15 = arith.mulf %12, %14 : vector<8x128xf32>
      %c0_13 = arith.constant 0 : index
      %c0_14 = arith.constant 0 : index
      %16 = vector.load %arg6[%c0_13, %c0_14] : memref<1x128xf32, #tpu.memory_space<vmem>>, vector<1x128xf32>
      %17 = vector.broadcast %16 : vector<1x128xf32> to vector<8x128xf32>
      %18 = arith.addf %15, %17 : vector<8x128xf32>
      %c0_15 = arith.constant 0 : index
      %c0_16 = arith.constant 0 : index
      %19 = vector.load %arg7[%c0_15, %c0_16] : memref<8x128xf32, #tpu.memory_space<vmem>>, vector<8x128xf32>
      tpu.vector_store %arg7[%c0_15, %c0_16], %18 {strides = array<i32>} : memref<8x128xf32, #tpu.memory_space<vmem>>, vector<8x128xf32>,
    } else {
    }
    return
  }
  func.func @transform_0(%arg0: i32, %arg1: i32, %arg2: i32) -> (i32, i32) {
    %c0_i32 = arith.constant 0 : i32
    return %arg0, %arg2 : i32, i32
  }
  func.func @transform_1(%arg0: i32, %arg1: i32, %arg2: i32) -> (i32, i32) {
    %c0_i32 = arith.constant 0 : i32
    return %arg2, %arg1 : i32, i32
  }
  func.func @transform_2(%arg0: i32, %arg1: i32, %arg2: i32) -> (i32, i32) {
    %c0_i32 = arith.constant 0 : i32
    %c0_i32_0 = arith.constant 0 : i32
    return %c0_i32, %arg1 : i32, i32
  }
  func.func @transform_3(%arg0: i32, %arg1: i32, %arg2: i32) -> (i32, i32) {
    %c0_i32 = arith.constant 0 : i32
    %c0_i32_0 = arith.constant 0 : i32
    return %c0_i32, %arg1 : i32, i32
  }
  func.func @transform_4(%arg0: i32, %arg1: i32, %arg2: i32) -> (i32, i32) {
    %c0_i32 = arith.constant 0 : i32
    return %arg0, %arg1 : i32, i32
  }
}

</mosaic_0001>

<bundles_post_ra>
// kernel: cnn_discriminator_forward.5
= control target key start
LH: loop header
LB: loop body
LE: loop exit
PB: predicated region body
PF: predicated region fallthrough
CT: control target
= control target key end

     0   :  { %s1375_s15 = smov 0   ;;  %s1377_s16 = smov 0   ;;  %s1562_s0 = inlined_call_operand.vmem [shape: bf16[2048,128], index: 0, kind: input, shape index: {}]   ;;  %s1563_s1 = inlined_call_operand.vmem [shape: bf16[128,128], index: 1, kind: input, shape index: {}]   ;;  %s1564_s2 = inlined_call_operand.vmem [shape: f32[1,128], index: 2, kind: input, shape index: {}]   ;;  %s1565_s3 = inlined_call_operand.vmem [shape: f32[1,128], index: 3, kind: input, shape index: {}]   ;;  %s1566_s4 = inlined_call_operand.vmem [shape: f32[2048,128], index: 4, kind: output, shape index: {}]  }
   0x1   :  { %s1379_s17 = smov 0  }
   0x2 LB: > { %s33_s18 = sadd.s32 1, %s1344_s16  ;;  %p1157_p0 = scmp.ge.s32.totalorder %s1348_s17, 1  ;;  %s1348_s17 = sphi %s1379_s17, %s14_s17   ;;  %s1344_s16 = sphi %s1377_s16, %s1568_s16   ;;  %s1340_s15 = sphi %s1375_s15, %s1567_s15  }
   0x3   : > { %p35_p1 = scmp.ge.s32.totalorder %s33_s18, 8  ;;  %p221_p2 = scmp.lt.s32.totalorder %s1348_s17, 9 }
   0x5   : > { %s1570_s18 = smov (%p35_p1, %s33_s18), 0  ;;  %p222_p3 = pnand %p1157_p0, %p221_p2 }
   0x6   : > { %v1302_v0 = vld [vmem:[%s1563_s1] sm:$0xff] (!%p222_p3)   ;;  %s1158_s21 = sshll.u32 (!%p222_p3), %s1340_s15, 5  ;;  %v1303_v1 = vld [vmem:[%s1563_s1 + $0x8] sm:$0xff] (!%p222_p3)   ;;  %v1304_v2 = vld [vmem:[%s1563_s1 + $0x10] sm:$0xff] (!%p222_p3)  }
   0x7   : > { %225 = sbr.rel (%p222_p3) target bundleno = 296 (0x128), region = 36  ;;  %p268_p4 = scmp.lt.s32.totalorder (!%p222_p3), %s1158_s21, 255  ;;  %1214 = vmatprep.subr.bf16.mxu0 (!%p222_p3), %v1302_v0  ;;  %1262 = vmatprep.subr.bf16.mxu1 (!%p222_p3), %v1302_v0  ;;  %v1305_v3 = vld [vmem:[%s1563_s1 + $0x18] sm:$0xff] (!%p222_p3)   ;;  %v1306_v6 = vld [vmem:[%s1563_s1 + $0x20] sm:$0xff] (!%p222_p3)   ;;  %v1307_v7 = vld [vmem:[%s1563_s1 + $0x28] sm:$0xff] (!%p222_p3)  }
   0x8   : > { %1215 = vmatpush3.bf16.msra.mxu0 (!%p222_p3), %v1302_v0  ;;  %1270 = vmatpush3.bf16.msra.mxu1 (!%p222_p3), %v1302_v0  ;;  %v1308_v8 = vld [vmem:[%s1563_s1 + $0x30] sm:$0xff] (!%p222_p3)   ;;  %v1309_v9 = vld [vmem:[%s1563_s1 + $0x38] sm:$0xff] (!%p222_p3)   ;;  %v1444_v24 = vld [vmem:[%s1564_s2] ss:$0 sm:$0xff] (!%p222_p3) }
   0x9   : > { %1216 = vmatprep.subr.bf16.mxu0 (!%p222_p3), %v1303_v1  ;;  %1263 = vmatprep.subr.bf16.mxu1 (!%p222_p3), %v1303_v1  ;;  %v1449_v26 = vld [vmem:[%s1565_s3] ss:$0 sm:$0xff] (!%p222_p3) }
   0xc   : > { %1217 = vmatpush3.bf16.msra.mxu0 (!%p222_p3), %v1303_v1  ;;  %1271 = vmatpush3.bf16.msra.mxu1 (!%p222_p3), %v1303_v1 }
   0xd   : > { %1218 = vmatprep.subr.bf16.mxu0 (!%p222_p3), %v1304_v2  ;;  %1264 = vmatprep.subr.bf16.mxu1 (!%p222_p3), %v1304_v2 }
   0xe   : > { %s1572_s21 = smov (!%p268_p4, %s1158_s21), 255 }
   0xf   : > { %s1159_s26 = sshll.u32 %s1572_s21, 2  ;;  %s1161_s22 = sshll.u32 %s1572_s21, 3 }
  0x10   : > { %s1408_s29 = scalar_lea.vmem %s1562_s0, %s1159_s26  ;;  %1219 = vmatpush3.bf16.msra.mxu0 %v1304_v2  ;;  %1272 = vmatpush3.bf16.msra.mxu1 %v1304_v2  ;;  %s1467_s24 = scalar_lea.vmem %s1566_s4, %s1161_s22 }
  0x11   : > { %v1310_v4 = vld [vmem:[%s1408_s29] sm:$0xff]   ;;  %1220 = vmatprep.subr.bf16.mxu0 %v1305_v3  ;;  %1265 = vmatprep.subr.bf16.mxu1 %v1305_v3  ;;  %v1312_v10 = vld [vmem:[%s1408_s29 + $0x8] sm:$0xff]   ;;  %v1314_v12 = vld [vmem:[%s1408_s29 + $0x10] sm:$0xff]  }
  0x12   : > { %v1311_v5 = vld [vmem:[%s1408_s29 + $0x40] sm:$0xff]   ;;  %1230 = vmatprep.mubr.bf16.mxu0 %v1310_v4  ;;  %v1313_v11 = vld [vmem:[%s1408_s29 + $0x48] sm:$0xff]   ;;  %v1315_v13 = vld [vmem:[%s1408_s29 + $0x50] sm:$0xff]  }
  0x13   : > { %1246 = vmatprep.mubr.bf16.mxu1 %v1311_v5  ;;  %v1316_v14 = vld [vmem:[%s1408_s29 + $0x18] sm:$0xff]   ;;  %v1318_v16 = vld [vmem:[%s1408_s29 + $0x20] sm:$0xff]   ;;  %v1320_v18 = vld [vmem:[%s1408_s29 + $0x28] sm:$0xff]  }
  0x14   : > { %1221 = vmatpush3.bf16.msra.mxu0 %v1305_v3  ;;  %1273 = vmatpush3.bf16.msra.mxu1 %v1305_v3  ;;  %v1317_v15 = vld [vmem:[%s1408_s29 + $0x58] sm:$0xff]   ;;  %v1319_v17 = vld [vmem:[%s1408_s29 + $0x60] sm:$0xff]   ;;  %v1321_v19 = vld [vmem:[%s1408_s29 + $0x68] sm:$0xff]  }
  0x15   : > { %1222 = vmatprep.subr.bf16.mxu0 %v1306_v6  ;;  %1266 = vmatprep.subr.bf16.mxu1 %v1306_v6  ;;  %v1322_v20 = vld [vmem:[%s1408_s29 + $0x30] sm:$0xff]   ;;  %v1324_v22 = vld [vmem:[%s1408_s29 + $0x38] sm:$0xff]  }
  0x16   : > { %v1323_v21 = vld [vmem:[%s1408_s29 + $0x70] sm:$0xff]   ;;  %v1325_v23 = vld [vmem:[%s1408_s29 + $0x78] sm:$0xff]  }
  0x18   : > { %1223 = vmatpush3.bf16.msra.mxu0 %v1306_v6  ;;  %1274 = vmatpush3.bf16.msra.mxu1 %v1306_v6 }
  0x19   : > { %1224 = vmatprep.subr.bf16.mxu0 %v1307_v7  ;;  %1267 = vmatprep.subr.bf16.mxu1 %v1307_v7 }
  0x1c   : > { %1225 = vmatpush3.bf16.msra.mxu0 %v1307_v7  ;;  %1275 = vmatpush3.bf16.msra.mxu1 %v1307_v7 }
  0x1d   : > { %1226 = vmatprep.subr.bf16.mxu0 %v1308_v8  ;;  %1268 = vmatprep.subr.bf16.mxu1 %v1308_v8 }
  0x20   : > { %1227 = vmatpush3.bf16.msra.mxu0 %v1308_v8  ;;  %1276 = vmatpush3.bf16.msra.mxu1 %v1308_v8 }
  0x21   : > { %1228 = vmatprep.subr.bf16.mxu0 %v1309_v9  ;;  %1269 = vmatprep.subr.bf16.mxu1 %v1309_v9 }
  0x24   : > { %1229 = vmatpush3.bf16.msra.mxu0 %v1309_v9  ;;  %1277 = vmatpush3.bf16.msra.mxu1 %v1309_v9 }
  0x27   : > { %1231 = vmatmul.mubr.bf16.vlgmr.msra.gmra.mrb[0].mxu0 %v1312_v10  ;;  %1247 = vmatmul.mubr.bf16.vlgmr.msra.gmra.mrb[0].mxu1 %v1313_v11 }
  0x28   : > { %1234 = vmatprep.mubr.bf16.mxu0 %v1314_v12  ;;  %1250 = vmatprep.mubr.bf16.mxu1 %v1315_v13 }
  0x2f   : > { %1235 = vmatmul.mubr.bf16.gmra.mrb[4].mxu0 %v1316_v14  ;;  %1251 = vmatmul.mubr.bf16.gmra.mrb[4].mxu1 %v1317_v15 }
  0x30   : > { %1238 = vmatprep.mubr.bf16.mxu0 %v1318_v16  ;;  %1254 = vmatprep.mubr.bf16.mxu1 %v1319_v17 }
  0x37   : > { %1239 = vmatmul.mubr.bf16.gmra.mrb[8].mxu0 %v1320_v18  ;;  %1255 = vmatmul.mubr.bf16.gmra.mrb[8].mxu1 %v1321_v19 }
  0x38   : > { %1242 = vmatprep.mubr.bf16.mxu0 %v1322_v20  ;;  %1258 = vmatprep.mubr.bf16.mxu1 %v1323_v21 }
  0x3f   : > { %1243 = vmatmul.mubr.bf16.gmra.mrb[12].mxu0 %v1324_v22  ;;  %1259 = vmatmul.mubr.bf16.gmra.mrb[12].mxu1 %v1325_v23 }
  0xfa   : > { %v1232_v25 = vpop.f32.mrb[0].mxu0  ;;  %v1248_v27 = vpop.f32.mrb[0].mxu1 }
  0xfb   : > { %v830_v28 = vmul.f32 %v1232_v25, %v1444_v24  ;;  %v846_v29 = vmul.f32 %v1248_v27, %v1444_v24  ;;  %v595_v30 = vpop.f32.mrb[1].mxu0  ;;  %v659_v31 = vpop.f32.mrb[1].mxu1 }
  0xfc   : > { %v828_v32 = vmul.f32 %v1444_v24, %v595_v30  ;;  %v844_v33 = vmul.f32 %v1444_v24, %v659_v31  ;;  %v1233_v34 = vpop.f32.mrb[2].mxu0  ;;  %v1249_v35 = vpop.f32.mrb[2].mxu1 }
  0xfd   : > { %v869_v36 = vadd.f32 %v1449_v26, %v830_v28  ;;  %v885_v37 = vadd.f32 %v1449_v26, %v846_v29  ;;  %v831_v38 = vmul.f32 %v1233_v34, %v1444_v24  ;;  %v847_v39 = vmul.f32 %v1249_v35, %v1444_v24  ;;  %v598_v40 = vpop.f32.mrb[3].mxu0  ;;  %v662_v41 = vpop.f32.mrb[3].mxu1 }
  0xfe   : > { %v867_v42 = vadd.f32 %v1449_v26, %v828_v32  ;;  %v883_v43 = vadd.f32 %v1449_v26, %v844_v33  ;;  %v829_v44 = vmul.f32 %v1444_v24, %v598_v40  ;;  %v845_v45 = vmul.f32 %v1444_v24, %v662_v41 }
  0xff   : > { %vm901_vm0 = vcmp.ge.f32.partialorder %v869_v36, 0.0  ;;  %v933_v46 = vmul.f32 0.2, %v869_v36  ;;  %vm917_vm1 = vcmp.ge.f32.partialorder %v885_v37, 0.0  ;;  %v949_v47 = vmul.f32 0.2, %v885_v37 }
 0x100   : > { %vm899_vm2 = vcmp.ge.f32.partialorder %v867_v42, 0.0  ;;  %v931_v48 = vmul.f32 0.2, %v867_v42  ;;  %vm915_vm3 = vcmp.ge.f32.partialorder %v883_v43, 0.0  ;;  %v947_v49 = vmul.f32 0.2, %v883_v43 }
 0x101   : > { %v965_v50 = vsel %vm901_vm0, %v869_v36, %v933_v46  ;;  %v981_v51 = vsel %vm917_vm1, %v885_v37, %v949_v47  ;;  %v870_v52 = vadd.f32 %v1449_v26, %v831_v38  ;;  %v886_v53 = vadd.f32 %v1449_v26, %v847_v39 }
 0x102   : > { %997 = vst [vmem:[%s1467_s24 + $0x10] sm:$0xff] %v965_v50  ;;  %1013 = vst [vmem:[%s1467_s24 + $0x90] sm:$0xff] %v981_v51  ;;  %v963_v54 = vsel %vm899_vm2, %v867_v42, %v931_v48  ;;  %v979_v55 = vsel %vm915_vm3, %v883_v43, %v947_v49  ;;  %v868_v56 = vadd.f32 %v1449_v26, %v829_v44  ;;  %v1236_v58 = vpop.f32.mrb[4].mxu0  ;;  %v1252_v59 = vpop.f32.mrb[4].mxu1 }
 0x103   : > { %v884_v57 = vadd.f32 %v1449_v26, %v845_v45  ;;  %995 = vst [vmem:[%s1467_s24] sm:$0xff] %v963_v54  ;;  %1011 = vst [vmem:[%s1467_s24 + $0x80] sm:$0xff] %v979_v55  ;;  %vm902_vm4 = vcmp.ge.f32.partialorder %v870_v52, 0.0  ;;  %v934_v60 = vmul.f32 0.2, %v870_v52  ;;  %vm918_vm5 = vcmp.ge.f32.partialorder %v886_v53, 0.0  ;;  %v611_v4 = vpop.f32.mrb[5].mxu0 }
 0x104   : > { %v950_v61 = vmul.f32 0.2, %v886_v53  ;;  %vm900_vm6 = vcmp.ge.f32.partialorder %v868_v56, 0.0  ;;  %v932_v62 = vmul.f32 0.2, %v868_v56  ;;  %v834_v2 = vmul.f32 %v1236_v58, %v1444_v24  ;;  %v675_v5 = vpop.f32.mrb[5].mxu1 }
 0x105   : > { %vm916_vm7 = vcmp.ge.f32.partialorder %v884_v57, 0.0  ;;  %v948_v63 = vmul.f32 0.2, %v884_v57  ;;  %v966_v0 = vsel %vm902_vm4, %v870_v52, %v934_v60  ;;  %v850_v3 = vmul.f32 %v1252_v59, %v1444_v24  ;;  %v1237_v10 = vpop.f32.mrb[6].mxu0  ;;  %v1253_v11 = vpop.f32.mrb[6].mxu1 }
 0x106   : > { %v982_v1 = vsel %vm918_vm5, %v886_v53, %v950_v61  ;;  %998 = vst [vmem:[%s1467_s24 + $0x18] sm:$0xff] %v966_v0  ;;  %v964_v6 = vsel %vm900_vm6, %v868_v56, %v932_v62  ;;  %v832_v8 = vmul.f32 %v1444_v24, %v611_v4  ;;  %v848_v9 = vmul.f32 %v1444_v24, %v675_v5  ;;  %v614_v16 = vpop.f32.mrb[7].mxu0  ;;  %v678_v17 = vpop.f32.mrb[7].mxu1 }
 0x107   : > { %1014 = vst [vmem:[%s1467_s24 + $0x98] sm:$0xff] %v982_v1  ;;  %v980_v7 = vsel %vm916_vm7, %v884_v57, %v948_v63  ;;  %996 = vst [vmem:[%s1467_s24 + $0x8] sm:$0xff] %v964_v6  ;;  %v873_v12 = vadd.f32 %v1449_v26, %v834_v2  ;;  %v889_v13 = vadd.f32 %v1449_v26, %v850_v3 }
 0x108   : > { %1012 = vst [vmem:[%s1467_s24 + $0x88] sm:$0xff] %v980_v7  ;;  %v835_v14 = vmul.f32 %v1237_v10, %v1444_v24  ;;  %v851_v15 = vmul.f32 %v1253_v11, %v1444_v24  ;;  %v871_v18 = vadd.f32 %v1449_v26, %v832_v8  ;;  %v887_v19 = vadd.f32 %v1449_v26, %v848_v9 }
 0x109   : > { %v833_v20 = vmul.f32 %v1444_v24, %v614_v16  ;;  %v849_v21 = vmul.f32 %v1444_v24, %v678_v17  ;;  %vm905_vm8 = vcmp.ge.f32.partialorder %v873_v12, 0.0  ;;  %v937_v22 = vmul.f32 0.2, %v873_v12 }
 0x10a   : > { %vm921_vm9 = vcmp.ge.f32.partialorder %v889_v13, 0.0  ;;  %v953_v23 = vmul.f32 0.2, %v889_v13  ;;  %vm903_vm10 = vcmp.ge.f32.partialorder %v871_v18, 0.0  ;;  %v935_v25 = vmul.f32 0.2, %v871_v18 }
 0x10b   : > { %vm919_vm11 = vcmp.ge.f32.partialorder %v887_v19, 0.0  ;;  %v951_v27 = vmul.f32 0.2, %v887_v19  ;;  %v969_v28 = vsel %vm905_vm8, %v873_v12, %v937_v22  ;;  %v874_v30 = vadd.f32 %v1449_v26, %v835_v14  ;;  %v1240_v32 = vpop.f32.mrb[8].mxu0  ;;  %v1256_v33 = vpop.f32.mrb[8].mxu1 }
 0x10c   : > { %v985_v29 = vsel %vm921_vm9, %v889_v13, %v953_v23  ;;  %v890_v31 = vadd.f32 %v1449_v26, %v851_v15  ;;  %1001 = vst [vmem:[%s1467_s24 + $0x30] sm:$0xff] %v969_v28  ;;  %v967_v34 = vsel %vm903_vm10, %v871_v18, %v935_v25  ;;  %v872_v36 = vadd.f32 %v1449_v26, %v833_v20  ;;  %v627_v38 = vpop.f32.mrb[9].mxu0  ;;  %v691_v39 = vpop.f32.mrb[9].mxu1 }
 0x10d   : > { %1017 = vst [vmem:[%s1467_s24 + $0xb0] sm:$0xff] %v985_v29  ;;  %v983_v35 = vsel %vm919_vm11, %v887_v19, %v951_v27  ;;  %v888_v37 = vadd.f32 %v1449_v26, %v849_v21  ;;  %999 = vst [vmem:[%s1467_s24 + $0x20] sm:$0xff] %v967_v34  ;;  %vm906_vm12 = vcmp.ge.f32.partialorder %v874_v30, 0.0  ;;  %v938_v40 = vmul.f32 0.2, %v874_v30  ;;  %v1241_v48 = vpop.f32.mrb[10].mxu0 }
 0x10e   : > { %1015 = vst [vmem:[%s1467_s24 + $0xa0] sm:$0xff] %v983_v35  ;;  %vm922_vm13 = vcmp.ge.f32.partialorder %v890_v31, 0.0  ;;  %v954_v41 = vmul.f32 0.2, %v890_v31  ;;  %vm904_vm14 = vcmp.ge.f32.partialorder %v872_v36, 0.0  ;;  %v838_v46 = vmul.f32 %v1240_v32, %v1444_v24  ;;  %v1257_v49 = vpop.f32.mrb[10].mxu1 }
 0x10f   : > { %v936_v42 = vmul.f32 0.2, %v872_v36  ;;  %vm920_vm15 = vcmp.ge.f32.partialorder %v888_v37, 0.0  ;;  %v952_v43 = vmul.f32 0.2, %v888_v37  ;;  %v970_v44 = vsel %vm906_vm12, %v874_v30, %v938_v40  ;;  %v630_v54 = vpop.f32.mrb[11].mxu0 }
 0x110   : > { %v986_v45 = vsel %vm922_vm13, %v890_v31, %v954_v41  ;;  %v854_v47 = vmul.f32 %v1256_v33, %v1444_v24  ;;  %1002 = vst [vmem:[%s1467_s24 + $0x38] sm:$0xff] %v970_v44  ;;  %v836_v52 = vmul.f32 %v1444_v24, %v627_v38  ;;  %v852_v53 = vmul.f32 %v1444_v24, %v691_v39  ;;  %v694_v55 = vpop.f32.mrb[11].mxu1 }
 0x111   : > { %1018 = vst [vmem:[%s1467_s24 + $0xb8] sm:$0xff] %v986_v45  ;;  %v968_v50 = vsel %vm904_vm14, %v872_v36, %v936_v42  ;;  %v984_v51 = vsel %vm920_vm15, %v888_v37, %v952_v43  ;;  %v877_v56 = vadd.f32 %v1449_v26, %v838_v46  ;;  %v839_v58 = vmul.f32 %v1241_v48, %v1444_v24 }
 0x112   : > { %1000 = vst [vmem:[%s1467_s24 + $0x28] sm:$0xff] %v968_v50  ;;  %1016 = vst [vmem:[%s1467_s24 + $0xa8] sm:$0xff] %v984_v51  ;;  %v893_v57 = vadd.f32 %v1449_v26, %v854_v47  ;;  %v855_v59 = vmul.f32 %v1257_v49, %v1444_v24  ;;  %v875_v60 = vadd.f32 %v1449_v26, %v836_v52  ;;  %v1244_v0 = vpop.f32.mrb[12].mxu0  ;;  %v1260_v1 = vpop.f32.mrb[12].mxu1 }
 0x113   : > { %v891_v61 = vadd.f32 %v1449_v26, %v852_v53  ;;  %v837_v62 = vmul.f32 %v1444_v24, %v630_v54  ;;  %v853_v63 = vmul.f32 %v1444_v24, %v694_v55  ;;  %vm909_vm0 = vcmp.ge.f32.partialorder %v877_v56, 0.0  ;;  %v643_v10 = vpop.f32.mrb[13].mxu0  ;;  %v707_v11 = vpop.f32.mrb[13].mxu1 }
 0x114   : > { %v941_v2 = vmul.f32 0.2, %v877_v56  ;;  %vm925_vm1 = vcmp.ge.f32.partialorder %v893_v57, 0.0  ;;  %v957_v3 = vmul.f32 0.2, %v893_v57  ;;  %vm907_vm2 = vcmp.ge.f32.partialorder %v875_v60, 0.0 }
 0x115   : > { %v939_v4 = vmul.f32 0.2, %v875_v60  ;;  %vm923_vm3 = vcmp.ge.f32.partialorder %v891_v61, 0.0  ;;  %v955_v5 = vmul.f32 0.2, %v891_v61  ;;  %v878_v8 = vadd.f32 %v1449_v26, %v839_v58  ;;  %v1245_v16 = vpop.f32.mrb[14].mxu0 }
 0x116   : > { %v973_v6 = vsel %vm909_vm0, %v877_v56, %v941_v2  ;;  %v989_v7 = vsel %vm925_vm1, %v893_v57, %v957_v3  ;;  %v894_v9 = vadd.f32 %v1449_v26, %v855_v59  ;;  %v876_v14 = vadd.f32 %v1449_v26, %v837_v62  ;;  %v1261_v17 = vpop.f32.mrb[14].mxu1  ;;  %v646_v28 = vpop.f32.mrb[15].mxu0 }
 0x117   : > { %1005 = vst [vmem:[%s1467_s24 + $0x50] sm:$0xff] %v973_v6  ;;  %1021 = vst [vmem:[%s1467_s24 + $0xd0] sm:$0xff] %v989_v7  ;;  %v971_v12 = vsel %vm907_vm2, %v875_v60, %v939_v4  ;;  %v987_v13 = vsel %vm923_vm3, %v891_v61, %v955_v5  ;;  %v892_v15 = vadd.f32 %v1449_v26, %v853_v63  ;;  %vm910_vm4 = vcmp.ge.f32.partialorder %v878_v8, 0.0  ;;  %v710_v29 = vpop.f32.mrb[15].mxu1 }
 0x118   : > { %1003 = vst [vmem:[%s1467_s24 + $0x40] sm:$0xff] %v971_v12  ;;  %1019 = vst [vmem:[%s1467_s24 + $0xc0] sm:$0xff] %v987_v13  ;;  %v942_v18 = vmul.f32 0.2, %v878_v8  ;;  %vm926_vm5 = vcmp.ge.f32.partialorder %v894_v9, 0.0  ;;  %vm908_vm6 = vcmp.ge.f32.partialorder %v876_v14, 0.0  ;;  %v842_v25 = vmul.f32 %v1244_v0, %v1444_v24 }
 0x119   : > { %v958_v19 = vmul.f32 0.2, %v894_v9  ;;  %v940_v20 = vmul.f32 0.2, %v876_v14  ;;  %vm924_vm7 = vcmp.ge.f32.partialorder %v892_v15, 0.0  ;;  %v858_v27 = vmul.f32 %v1260_v1, %v1444_v24 }
 0x11a   : > { %v956_v21 = vmul.f32 0.2, %v892_v15  ;;  %v974_v22 = vsel %vm910_vm4, %v878_v8, %v942_v18  ;;  %v840_v32 = vmul.f32 %v1444_v24, %v643_v10  ;;  %v856_v33 = vmul.f32 %v1444_v24, %v707_v11 }
 0x11b   : > { %v990_v23 = vsel %vm926_vm5, %v894_v9, %v958_v19  ;;  %1006 = vst [vmem:[%s1467_s24 + $0x58] sm:$0xff] %v974_v22  ;;  %v972_v30 = vsel %vm908_vm6, %v876_v14, %v940_v20  ;;  %v881_v34 = vadd.f32 %v1449_v26, %v842_v25  ;;  %v897_v35 = vadd.f32 %v1449_v26, %v858_v27 }
 0x11c   : > { %1022 = vst [vmem:[%s1467_s24 + $0xd8] sm:$0xff] %v990_v23  ;;  %v988_v31 = vsel %vm924_vm7, %v892_v15, %v956_v21  ;;  %1004 = vst [vmem:[%s1467_s24 + $0x48] sm:$0xff] %v972_v30  ;;  %v843_v36 = vmul.f32 %v1245_v16, %v1444_v24  ;;  %v859_v37 = vmul.f32 %v1261_v17, %v1444_v24 }
 0x11d   : > { %1020 = vst [vmem:[%s1467_s24 + $0xc8] sm:$0xff] %v988_v31  ;;  %v879_v38 = vadd.f32 %v1449_v26, %v840_v32  ;;  %v895_v39 = vadd.f32 %v1449_v26, %v856_v33  ;;  %v841_v40 = vmul.f32 %v1444_v24, %v646_v28  ;;  %v857_v41 = vmul.f32 %v1444_v24, %v710_v29 }
 0x11e   : > { %vm913_vm8 = vcmp.ge.f32.partialorder %v881_v34, 0.0  ;;  %v945_v42 = vmul.f32 0.2, %v881_v34  ;;  %vm929_vm9 = vcmp.ge.f32.partialorder %v897_v35, 0.0  ;;  %v961_v43 = vmul.f32 0.2, %v897_v35 }
 0x11f   : > { %vm911_vm10 = vcmp.ge.f32.partialorder %v879_v38, 0.0  ;;  %v943_v44 = vmul.f32 0.2, %v879_v38  ;;  %vm927_vm11 = vcmp.ge.f32.partialorder %v895_v39, 0.0  ;;  %v959_v45 = vmul.f32 0.2, %v895_v39 }
 0x120   : > { %v977_v46 = vsel %vm913_vm8, %v881_v34, %v945_v42  ;;  %v993_v47 = vsel %vm929_vm9, %v897_v35, %v961_v43  ;;  %v882_v48 = vadd.f32 %v1449_v26, %v843_v36  ;;  %v898_v49 = vadd.f32 %v1449_v26, %v859_v37 }
 0x121   : > { %1009 = vst [vmem:[%s1467_s24 + $0x70] sm:$0xff] %v977_v46  ;;  %1025 = vst [vmem:[%s1467_s24 + $0xf0] sm:$0xff] %v993_v47  ;;  %v975_v50 = vsel %vm911_vm10, %v879_v38, %v943_v44  ;;  %v991_v24 = vsel %vm927_vm11, %v895_v39, %v959_v45  ;;  %v880_v51 = vadd.f32 %v1449_v26, %v841_v40 }
 0x122   : > { %v896_v52 = vadd.f32 %v1449_v26, %v857_v41  ;;  %1007 = vst [vmem:[%s1467_s24 + $0x60] sm:$0xff] %v975_v50  ;;  %1023 = vst [vmem:[%s1467_s24 + $0xe0] sm:$0xff] %v991_v24  ;;  %vm914_vm12 = vcmp.ge.f32.partialorder %v882_v48, 0.0  ;;  %v946_v53 = vmul.f32 0.2, %v882_v48  ;;  %vm930_vm13 = vcmp.ge.f32.partialorder %v898_v49, 0.0 }
 0x123   : > { %v962_v54 = vmul.f32 0.2, %v898_v49  ;;  %vm912_vm14 = vcmp.ge.f32.partialorder %v880_v51, 0.0  ;;  %v944_v55 = vmul.f32 0.2, %v880_v51 }
 0x124   : > { %vm928_vm15 = vcmp.ge.f32.partialorder %v896_v52, 0.0  ;;  %v960_v56 = vmul.f32 0.2, %v896_v52  ;;  %v978_v57 = vsel %vm914_vm12, %v882_v48, %v946_v53 }
 0x125   : > { %v994_v58 = vsel %vm930_vm13, %v898_v49, %v962_v54  ;;  %1010 = vst [vmem:[%s1467_s24 + $0x78] sm:$0xff] %v978_v57  ;;  %v976_v59 = vsel %vm912_vm14, %v880_v51, %v944_v55 }
 0x126   : > { %1026 = vst [vmem:[%s1467_s24 + $0xf8] sm:$0xff] %v994_v58  ;;  %v992_v60 = vsel %vm928_vm15, %v896_v52, %v960_v56  ;;  %1008 = vst [vmem:[%s1467_s24 + $0x68] sm:$0xff] %v976_v59 }
 0x127   : > { %1024 = vst [vmem:[%s1467_s24 + $0xe8] sm:$0xff] %v992_v60 }
 0x128 PF: > { %s14_s17 = sadd.s32 1, %s1348_s17   ;;  %s1567_s15 = smov %s1344_s16 }
 0x129   : > { %p11_p5 = scmp.ge.s32.totalorder %s14_s17, 10   ;;  %s1568_s16 = smov %s1570_s18 }
 0x12b   :  { %13 = sbr.rel (!%p11_p5) target bundleno = 2 (0x2), region = 83 }

// kernel: cnn_discriminator_forward.6
= control target key start
LH: loop header
LB: loop body
LE: loop exit
PB: predicated region body
PF: predicated region fallthrough
CT: control target
= control target key end

     0   :  { %s3043_s15 = smov 0   ;;  %s3045_s16 = smov 0   ;;  %s3674_s0 = inlined_call_operand.vmem [shape: bf16[512,2048], index: 0, kind: input, shape index: {}]   ;;  %s3675_s1 = inlined_call_operand.vmem [shape: bf16[2048,256], index: 1, kind: input, shape index: {}]   ;;  %s3676_s2 = inlined_call_operand.vmem [shape: f32[1,256], index: 2, kind: input, shape index: {}]   ;;  %s3677_s3 = inlined_call_operand.vmem [shape: f32[1,256], index: 3, kind: input, shape index: {}]   ;;  %s3678_s4 = inlined_call_operand.vmem [shape: f32[512,256], index: 4, kind: output, shape index: {}]  }
   0x1   :  { %s3047_s17 = smov 0   ;;  %s3049_s18 = smov 0  }
   0x2   :  { %s3051_s19 = smov 0   ;;  %s3053_s20 = smov 0  }
   0x3   :  { %s3055_s21 = smov 0  }
   0x4 LB: > { %s26_s22 = sadd.s32 1, %s3007_s19  ;;  %s33_s23 = sadd.s32 1, %s3011_s20  ;;  %s3015_s21 = sphi %s3055_s21, %s14_s21   ;;  %s3011_s20 = sphi %s3053_s20, %s3684_s20   ;;  %s3007_s19 = sphi %s3051_s19, %s3683_s19   ;;  %s3003_s18 = sphi %s3049_s18, %s3682_s18   ;;  %s2999_s17 = sphi %s3047_s17, %s3681_s17   ;;  %s2995_s16 = sphi %s3045_s16, %s3680_s16   ;;  %s2991_s15 = sphi %s3043_s15, %s3679_s15  }
   0x5   : > { %p27_p0 = scmp.ge.s32.totalorder %s26_s22, 4  ;;  %p49_p1 = scmp.ne.s32.totalorder %s2995_s16, %s2991_s15 }
   0x6   : > { %p50_p2 = scmp.eq.s32.totalorder %s3015_s21, 0  ;;  %s42_s27 = sadd.s32 1, %s2995_s16 }
   0x7   : > { %s3686_s22 = smov (%p27_p0, %s26_s22), 0  ;;  %s3688_s23 = smov (!%p27_p0, %s33_s23), %s3011_s20 }
   0x8   : > { %p51_p3 = por %p50_p2, %p49_p1  ;;  %p35_p4 = scmp.ge.s32.totalorder %s3688_s23, 2 }
   0x9   : > { %s38_s24 = ssub.s32 %s3007_s19, %s3686_s22  ;;  %p2499_p6 = scmp.ge.s32.totalorder %s3015_s21, 8 }
   0xa   : > { %s3690_s23 = smov (%p35_p4, %s3688_s23), 0 }
   0xb   : > { %s37_s25 = ssub.s32 %s3011_s20, %s3690_s23  ;;  %199 = sbr.rel (%p2499_p6) target bundleno = 57 (0x39), region = 24 }
   0xc   : > { %s39_s26 = sor.u32 %s38_s24, %s37_s25 }
   0xd   : > { %p40_p5 = scmp.eq.s32.totalorder %s39_s26, 0 }
   0xf   : > { %s3094_s28 = scalar_select %p40_p5, %s2995_s16, %s42_s27  }
  0x12   : > { %202 = sbr.rel (!%p51_p3) target bundleno = 57 (0x39), region = 28  ;;  %s204_s29 = sand.u32 (%p51_p3), 1, %s2995_s16  }
  0x13   : > { %s2502_s30 = sshll.u32 (%p51_p3), %s3007_s19, 2  ;;  %s2500_s5 = sshll.u32 (%p51_p3), %s204_s29, 9 }
  0x14   : > { %s2645_s6 = sshll.u32 (%p51_p3), %s3011_s20, 9  ;;  %s3108_s12 = scalar_lea.vmem (%p51_p3), [#allocation3], %s2500_s5 }
  0x15   : > { %s210_s7 = sadd.s32 (%p51_p3), %s2645_s6, %s2502_s30 }
  0x16   : > { %s2504_s8 = sshll.u32 (%p51_p3), %s210_s7, 2 }
  0x17   : > { %s3103_s11 = scalar_lea.vmem (%p51_p3), %s3674_s0, %s2504_s8 }
  0x18   : > { %v225_v0 = vld [vmem:[%s3103_s11] sm:$0xff] (%p51_p3)  ;;  %v227_v1 = vld [vmem:[%s3103_s11 + $0x8] sm:$0xff] (%p51_p3) }
  0x19   : > { %v229_v2 = vld [vmem:[%s3103_s11 + $0x40] sm:$0xff]  ;;  %226 = vst [vmem:[%s3108_s12] sm:$0xff] %v225_v0  ;;  %228 = vst [vmem:[%s3108_s12 + $0x8] sm:$0xff] %v227_v1  ;;  %v231_v3 = vld [vmem:[%s3103_s11 + $0x48] sm:$0xff] }
  0x1a   : > { %230 = vst [vmem:[%s3108_s12 + $0x10] sm:$0xff] %v229_v2  ;;  %v233_v4 = vld [vmem:[%s3103_s11 + $0x80] sm:$0xff]  ;;  %v235_v5 = vld [vmem:[%s3103_s11 + $0x88] sm:$0xff]  ;;  %232 = vst [vmem:[%s3108_s12 + $0x18] sm:$0xff] %v231_v3 }
  0x1b   : > { %234 = vst [vmem:[%s3108_s12 + $0x20] sm:$0xff] %v233_v4  ;;  %236 = vst [vmem:[%s3108_s12 + $0x28] sm:$0xff] %v235_v5  ;;  %v237_v6 = vld [vmem:[%s3103_s11 + $0xc0] sm:$0xff]  ;;  %v239_v7 = vld [vmem:[%s3103_s11 + $0xc8] sm:$0xff] }
  0x1c   : > { %v241_v8 = vld [vmem:[%s3103_s11 + $0x100] sm:$0xff]  ;;  %238 = vst [vmem:[%s3108_s12 + $0x30] sm:$0xff] %v237_v6  ;;  %240 = vst [vmem:[%s3108_s12 + $0x38] sm:$0xff] %v239_v7  ;;  %v243_v9 = vld [vmem:[%s3103_s11 + $0x108] sm:$0xff] }
  0x1d   : > { %242 = vst [vmem:[%s3108_s12 + $0x40] sm:$0xff] %v241_v8  ;;  %v245_v10 = vld [vmem:[%s3103_s11 + $0x140] sm:$0xff]  ;;  %v247_v11 = vld [vmem:[%s3103_s11 + $0x148] sm:$0xff]  ;;  %244 = vst [vmem:[%s3108_s12 + $0x48] sm:$0xff] %v243_v9 }
  0x1e   : > { %246 = vst [vmem:[%s3108_s12 + $0x50] sm:$0xff] %v245_v10  ;;  %248 = vst [vmem:[%s3108_s12 + $0x58] sm:$0xff] %v247_v11  ;;  %v249_v12 = vld [vmem:[%s3103_s11 + $0x180] sm:$0xff]  ;;  %v251_v13 = vld [vmem:[%s3103_s11 + $0x188] sm:$0xff] }
  0x1f   : > { %v253_v14 = vld [vmem:[%s3103_s11 + $0x1c0] sm:$0xff]  ;;  %250 = vst [vmem:[%s3108_s12 + $0x60] sm:$0xff] %v249_v12  ;;  %252 = vst [vmem:[%s3108_s12 + $0x68] sm:$0xff] %v251_v13  ;;  %v255_v15 = vld [vmem:[%s3103_s11 + $0x1c8] sm:$0xff] }
  0x20   : > { %254 = vst [vmem:[%s3108_s12 + $0x70] sm:$0xff] %v253_v14  ;;  %v257_v16 = vld [vmem:[%s3103_s11 + $0x200] sm:$0xff]  ;;  %v259_v17 = vld [vmem:[%s3103_s11 + $0x208] sm:$0xff]  ;;  %256 = vst [vmem:[%s3108_s12 + $0x78] sm:$0xff] %v255_v15 }
  0x21   : > { %258 = vst [vmem:[%s3108_s12 + $0x80] sm:$0xff] %v257_v16  ;;  %260 = vst [vmem:[%s3108_s12 + $0x88] sm:$0xff] %v259_v17  ;;  %v261_v18 = vld [vmem:[%s3103_s11 + $0x240] sm:$0xff]  ;;  %v263_v19 = vld [vmem:[%s3103_s11 + $0x248] sm:$0xff] }
  0x22   : > { %v265_v20 = vld [vmem:[%s3103_s11 + $0x280] sm:$0xff]  ;;  %262 = vst [vmem:[%s3108_s12 + $0x90] sm:$0xff] %v261_v18  ;;  %264 = vst [vmem:[%s3108_s12 + $0x98] sm:$0xff] %v263_v19  ;;  %v267_v21 = vld [vmem:[%s3103_s11 + $0x288] sm:$0xff] }
  0x23   : > { %266 = vst [vmem:[%s3108_s12 + $0xa0] sm:$0xff] %v265_v20  ;;  %v269_v22 = vld [vmem:[%s3103_s11 + $0x2c0] sm:$0xff]  ;;  %v271_v23 = vld [vmem:[%s3103_s11 + $0x2c8] sm:$0xff]  ;;  %268 = vst [vmem:[%s3108_s12 + $0xa8] sm:$0xff] %v267_v21 }
  0x24   : > { %270 = vst [vmem:[%s3108_s12 + $0xb0] sm:$0xff] %v269_v22  ;;  %272 = vst [vmem:[%s3108_s12 + $0xb8] sm:$0xff] %v271_v23  ;;  %v273_v24 = vld [vmem:[%s3103_s11 + $0x300] sm:$0xff]  ;;  %v275_v25 = vld [vmem:[%s3103_s11 + $0x308] sm:$0xff] }
  0x25   : > { %v277_v26 = vld [vmem:[%s3103_s11 + $0x340] sm:$0xff]  ;;  %274 = vst [vmem:[%s3108_s12 + $0xc0] sm:$0xff] %v273_v24  ;;  %276 = vst [vmem:[%s3108_s12 + $0xc8] sm:$0xff] %v275_v25  ;;  %v279_v27 = vld [vmem:[%s3103_s11 + $0x348] sm:$0xff] }
  0x26   : > { %278 = vst [vmem:[%s3108_s12 + $0xd0] sm:$0xff] %v277_v26  ;;  %v281_v28 = vld [vmem:[%s3103_s11 + $0x380] sm:$0xff]  ;;  %v283_v29 = vld [vmem:[%s3103_s11 + $0x388] sm:$0xff]  ;;  %280 = vst [vmem:[%s3108_s12 + $0xd8] sm:$0xff] %v279_v27 }
  0x27   : > { %282 = vst [vmem:[%s3108_s12 + $0xe0] sm:$0xff] %v281_v28  ;;  %284 = vst [vmem:[%s3108_s12 + $0xe8] sm:$0xff] %v283_v29  ;;  %v285_v30 = vld [vmem:[%s3103_s11 + $0x3c0] sm:$0xff]  ;;  %v287_v31 = vld [vmem:[%s3103_s11 + $0x3c8] sm:$0xff] }
  0x28   : > { %v289_v32 = vld [vmem:[%s3103_s11 + $0x400] sm:$0xff]  ;;  %286 = vst [vmem:[%s3108_s12 + $0xf0] sm:$0xff] %v285_v30  ;;  %288 = vst [vmem:[%s3108_s12 + $0xf8] sm:$0xff] %v287_v31  ;;  %v291_v33 = vld [vmem:[%s3103_s11 + $0x408] sm:$0xff] }
  0x29   : > { %290 = vst [vmem:[%s3108_s12 + $0x100] sm:$0xff] %v289_v32  ;;  %v293_v34 = vld [vmem:[%s3103_s11 + $0x440] sm:$0xff]  ;;  %v295_v35 = vld [vmem:[%s3103_s11 + $0x448] sm:$0xff]  ;;  %292 = vst [vmem:[%s3108_s12 + $0x108] sm:$0xff] %v291_v33 }
  0x2a   : > { %294 = vst [vmem:[%s3108_s12 + $0x110] sm:$0xff] %v293_v34  ;;  %296 = vst [vmem:[%s3108_s12 + $0x118] sm:$0xff] %v295_v35  ;;  %v297_v36 = vld [vmem:[%s3103_s11 + $0x480] sm:$0xff]  ;;  %v299_v37 = vld [vmem:[%s3103_s11 + $0x488] sm:$0xff] }
  0x2b   : > { %v301_v38 = vld [vmem:[%s3103_s11 + $0x4c0] sm:$0xff]  ;;  %298 = vst [vmem:[%s3108_s12 + $0x120] sm:$0xff] %v297_v36  ;;  %300 = vst [vmem:[%s3108_s12 + $0x128] sm:$0xff] %v299_v37  ;;  %v303_v39 = vld [vmem:[%s3103_s11 + $0x4c8] sm:$0xff] }
  0x2c   : > { %302 = vst [vmem:[%s3108_s12 + $0x130] sm:$0xff] %v301_v38  ;;  %v305_v40 = vld [vmem:[%s3103_s11 + $0x500] sm:$0xff]  ;;  %v307_v41 = vld [vmem:[%s3103_s11 + $0x508] sm:$0xff]  ;;  %304 = vst [vmem:[%s3108_s12 + $0x138] sm:$0xff] %v303_v39 }
  0x2d   : > { %306 = vst [vmem:[%s3108_s12 + $0x140] sm:$0xff] %v305_v40  ;;  %308 = vst [vmem:[%s3108_s12 + $0x148] sm:$0xff] %v307_v41  ;;  %v309_v42 = vld [vmem:[%s3103_s11 + $0x540] sm:$0xff]  ;;  %v311_v43 = vld [vmem:[%s3103_s11 + $0x548] sm:$0xff] }
  0x2e   : > { %v313_v44 = vld [vmem:[%s3103_s11 + $0x580] sm:$0xff]  ;;  %310 = vst [vmem:[%s3108_s12 + $0x150] sm:$0xff] %v309_v42  ;;  %312 = vst [vmem:[%s3108_s12 + $0x158] sm:$0xff] %v311_v43  ;;  %v315_v45 = vld [vmem:[%s3103_s11 + $0x588] sm:$0xff] }
  0x2f   : > { %314 = vst [vmem:[%s3108_s12 + $0x160] sm:$0xff] %v313_v44  ;;  %v317_v46 = vld [vmem:[%s3103_s11 + $0x5c0] sm:$0xff]  ;;  %v319_v47 = vld [vmem:[%s3103_s11 + $0x5c8] sm:$0xff]  ;;  %316 = vst [vmem:[%s3108_s12 + $0x168] sm:$0xff] %v315_v45 }
  0x30   : > { %318 = vst [vmem:[%s3108_s12 + $0x170] sm:$0xff] %v317_v46  ;;  %320 = vst [vmem:[%s3108_s12 + $0x178] sm:$0xff] %v319_v47  ;;  %v321_v48 = vld [vmem:[%s3103_s11 + $0x600] sm:$0xff]  ;;  %v323_v49 = vld [vmem:[%s3103_s11 + $0x608] sm:$0xff] }
  0x31   : > { %v325_v50 = vld [vmem:[%s3103_s11 + $0x640] sm:$0xff]  ;;  %322 = vst [vmem:[%s3108_s12 + $0x180] sm:$0xff] %v321_v48  ;;  %324 = vst [vmem:[%s3108_s12 + $0x188] sm:$0xff] %v323_v49  ;;  %v327_v51 = vld [vmem:[%s3103_s11 + $0x648] sm:$0xff] }
  0x32   : > { %326 = vst [vmem:[%s3108_s12 + $0x190] sm:$0xff] %v325_v50  ;;  %v329_v52 = vld [vmem:[%s3103_s11 + $0x680] sm:$0xff]  ;;  %v331_v53 = vld [vmem:[%s3103_s11 + $0x688] sm:$0xff]  ;;  %328 = vst [vmem:[%s3108_s12 + $0x198] sm:$0xff] %v327_v51 }
  0x33   : > { %330 = vst [vmem:[%s3108_s12 + $0x1a0] sm:$0xff] %v329_v52  ;;  %332 = vst [vmem:[%s3108_s12 + $0x1a8] sm:$0xff] %v331_v53  ;;  %v333_v54 = vld [vmem:[%s3103_s11 + $0x6c0] sm:$0xff]  ;;  %v335_v55 = vld [vmem:[%s3103_s11 + $0x6c8] sm:$0xff] }
  0x34   : > { %v337_v56 = vld [vmem:[%s3103_s11 + $0x700] sm:$0xff]  ;;  %334 = vst [vmem:[%s3108_s12 + $0x1b0] sm:$0xff] %v333_v54  ;;  %336 = vst [vmem:[%s3108_s12 + $0x1b8] sm:$0xff] %v335_v55  ;;  %v339_v57 = vld [vmem:[%s3103_s11 + $0x708] sm:$0xff] }
  0x35   : > { %338 = vst [vmem:[%s3108_s12 + $0x1c0] sm:$0xff] %v337_v56  ;;  %v341_v58 = vld [vmem:[%s3103_s11 + $0x740] sm:$0xff]  ;;  %v343_v59 = vld [vmem:[%s3103_s11 + $0x748] sm:$0xff]  ;;  %340 = vst [vmem:[%s3108_s12 + $0x1c8] sm:$0xff] %v339_v57 }
  0x36   : > { %342 = vst [vmem:[%s3108_s12 + $0x1d0] sm:$0xff] %v341_v58  ;;  %344 = vst [vmem:[%s3108_s12 + $0x1d8] sm:$0xff] %v343_v59  ;;  %v345_v60 = vld [vmem:[%s3103_s11 + $0x780] sm:$0xff]  ;;  %v347_v61 = vld [vmem:[%s3103_s11 + $0x788] sm:$0xff] }
  0x37   : > { %v349_v62 = vld [vmem:[%s3103_s11 + $0x7c0] sm:$0xff]  ;;  %346 = vst [vmem:[%s3108_s12 + $0x1e0] sm:$0xff] %v345_v60  ;;  %348 = vst [vmem:[%s3108_s12 + $0x1e8] sm:$0xff] %v347_v61  ;;  %v351_v63 = vld [vmem:[%s3103_s11 + $0x7c8] sm:$0xff] }
  0x38   : > { %350 = vst [vmem:[%s3108_s12 + $0x1f0] sm:$0xff] %v349_v62  ;;  %352 = vst [vmem:[%s3108_s12 + $0x1f8] sm:$0xff] %v351_v63 }
  0x39 PF: > { %p2505_p7 = scmp.ge.s32.totalorder %s3015_s21, 1  ;;  %p372_p8 = scmp.lt.s32.totalorder %s3015_s21, 9 }
  0x3b   : > { %p373_p9 = pnand %p2505_p7, %p372_p8 }
  0x3c   : > { %s379_s13 = sand.u32 (!%p373_p9), 1, %s2991_s15   ;;  %s2507_s14 = sshll.u32 (!%p373_p9), %s2999_s17, 6 }
  0x3d   : > { %376 = sbr.rel (%p373_p9) target bundleno = 581 (0x245), region = 55  ;;  %s2506_s24 = sshll.u32 (!%p373_p9), %s379_s13, 9 }
  0x3e   : > { %p431_p10 = scmp.lt.s32.totalorder (!%p373_p9), %s2507_s14, 255  ;;  %s2510_s25 = sshll.u32 (!%p373_p9), %s3003_s18, 5 }
  0x3f   : > { %p453_p11 = scmp.lt.s32.totalorder (!%p373_p9), %s2510_s25, 63  ;;  %s3250_s15 = scalar_lea.vmem (!%p373_p9), [#allocation3], %s2506_s24 }
  0x40   : > { %p2513_p12 = scmp.ne.s32.totalorder (!%p373_p9), %s2999_s17, 0 }
  0x44   : > { %s3692_s14 = smov (!%p431_p10, %s2507_s14), 255  ;;  %s3694_s25 = smov (!%p453_p11, %s2510_s25), 63 }
  0x45   : > { %s2646_s26 = sshll.u32 %s3692_s14, 3  ;;  %s2647_s5 = sshll.u32 %s3694_s25, 4  ;;  %v3017_v0 = vmov (!%p2513_p12), 0.0  }
  0x46   : > { %s3243_s30 = scalar_lea.vmem %s3675_s1, %s2646_s26  ;;  %s3248_s8 = scalar_lea.vmem %s3678_s4, %s2647_s5  ;;  %467 = vst [vmem:[#allocation2] sm:$0xff] (!%p2513_p12), %v3017_v0  ;;  %468 = vst [vmem:[#allocation2 + $0x8] sm:$0xff] (!%p2513_p12), %v3017_v0 }
  0x47   : > { %466 = sbr.rel (%p2513_p12) target bundleno = 102 (0x66), region = 63  ;;  %469 = vst [vmem:[#allocation2 + $0x10] sm:$0xff] (!%p2513_p12), %v3017_v0  ;;  %470 = vst [vmem:[#allocation2 + $0x18] sm:$0xff] (!%p2513_p12), %v3017_v0 }
  0x48   : > { %471 = vst [vmem:[#allocation2 + $0x20] sm:$0xff] (!%p2513_p12), %v3017_v0  ;;  %472 = vst [vmem:[#allocation2 + $0x28] sm:$0xff] (!%p2513_p12), %v3017_v0 }
  0x49   : > { %473 = vst [vmem:[#allocation2 + $0x30] sm:$0xff] (!%p2513_p12), %v3017_v0  ;;  %474 = vst [vmem:[#allocation2 + $0x38] sm:$0xff] (!%p2513_p12), %v3017_v0 }
  0x4a   : > { %475 = vst [vmem:[#allocation2 + $0x40] sm:$0xff] (!%p2513_p12), %v3017_v0  ;;  %476 = vst [vmem:[#allocation2 + $0x48] sm:$0xff] (!%p2513_p12), %v3017_v0 }
  0x4b   : > { %477 = vst [vmem:[#allocation2 + $0x50] sm:$0xff] (!%p2513_p12), %v3017_v0  ;;  %478 = vst [vmem:[#allocation2 + $0x58] sm:$0xff] (!%p2513_p12), %v3017_v0 }
  0x4c   : > { %479 = vst [vmem:[#allocation2 + $0x60] sm:$0xff] (!%p2513_p12), %v3017_v0  ;;  %480 = vst [vmem:[#allocation2 + $0x68] sm:$0xff] (!%p2513_p12), %v3017_v0 }
  0x4d   : > { %481 = vst [vmem:[#allocation2 + $0x70] sm:$0xff] (!%p2513_p12), %v3017_v0  ;;  %482 = vst [vmem:[#allocation2 + $0x78] sm:$0xff] (!%p2513_p12), %v3017_v0 }
  0x4e   : > { %483 = vst [vmem:[#allocation2 + $0x80] sm:$0xff] %v3017_v0  ;;  %484 = vst [vmem:[#allocation2 + $0x88] sm:$0xff] %v3017_v0 }
  0x4f   : > { %485 = vst [vmem:[#allocation2 + $0x90] sm:$0xff] %v3017_v0  ;;  %486 = vst [vmem:[#allocation2 + $0x98] sm:$0xff] %v3017_v0 }
  0x50   : > { %487 = vst [vmem:[#allocation2 + $0xa0] sm:$0xff] %v3017_v0  ;;  %488 = vst [vmem:[#allocation2 + $0xa8] sm:$0xff] %v3017_v0 }
  0x51   : > { %489 = vst [vmem:[#allocation2 + $0xb0] sm:$0xff] %v3017_v0  ;;  %490 = vst [vmem:[#allocation2 + $0xb8] sm:$0xff] %v3017_v0 }
  0x52   : > { %491 = vst [vmem:[#allocation2 + $0xc0] sm:$0xff] %v3017_v0  ;;  %492 = vst [vmem:[#allocation2 + $0xc8] sm:$0xff] %v3017_v0 }
  0x53   : > { %493 = vst [vmem:[#allocation2 + $0xd0] sm:$0xff] %v3017_v0  ;;  %494 = vst [vmem:[#allocation2 + $0xd8] sm:$0xff] %v3017_v0 }
  0x54   : > { %495 = vst [vmem:[#allocation2 + $0xe0] sm:$0xff] %v3017_v0  ;;  %496 = vst [vmem:[#allocation2 + $0xe8] sm:$0xff] %v3017_v0 }
  0x55   : > { %497 = vst [vmem:[#allocation2 + $0xf0] sm:$0xff] %v3017_v0  ;;  %498 = vst [vmem:[#allocation2 + $0xf8] sm:$0xff] %v3017_v0 }
  0x56   : > { %499 = vst [vmem:[#allocation2 + $0x100] sm:$0xff] %v3017_v0  ;;  %500 = vst [vmem:[#allocation2 + $0x108] sm:$0xff] %v3017_v0 }
  0x57   : > { %501 = vst [vmem:[#allocation2 + $0x110] sm:$0xff] %v3017_v0  ;;  %502 = vst [vmem:[#allocation2 + $0x118] sm:$0xff] %v3017_v0 }
  0x58   : > { %503 = vst [vmem:[#allocation2 + $0x120] sm:$0xff] %v3017_v0  ;;  %504 = vst [vmem:[#allocation2 + $0x128] sm:$0xff] %v3017_v0 }
  0x59   : > { %505 = vst [vmem:[#allocation2 + $0x130] sm:$0xff] %v3017_v0  ;;  %506 = vst [vmem:[#allocation2 + $0x138] sm:$0xff] %v3017_v0 }
  0x5a   : > { %507 = vst [vmem:[#allocation2 + $0x140] sm:$0xff] %v3017_v0  ;;  %508 = vst [vmem:[#allocation2 + $0x148] sm:$0xff] %v3017_v0 }
  0x5b   : > { %509 = vst [vmem:[#allocation2 + $0x150] sm:$0xff] %v3017_v0  ;;  %510 = vst [vmem:[#allocation2 + $0x158] sm:$0xff] %v3017_v0 }
  0x5c   : > { %511 = vst [vmem:[#allocation2 + $0x160] sm:$0xff] %v3017_v0  ;;  %512 = vst [vmem:[#allocation2 + $0x168] sm:$0xff] %v3017_v0 }
  0x5d   : > { %513 = vst [vmem:[#allocation2 + $0x170] sm:$0xff] %v3017_v0  ;;  %514 = vst [vmem:[#allocation2 + $0x178] sm:$0xff] %v3017_v0 }
  0x5e   : > { %515 = vst [vmem:[#allocation2 + $0x180] sm:$0xff] %v3017_v0  ;;  %516 = vst [vmem:[#allocation2 + $0x188] sm:$0xff] %v3017_v0 }
  0x5f   : > { %517 = vst [vmem:[#allocation2 + $0x190] sm:$0xff] %v3017_v0  ;;  %518 = vst [vmem:[#allocation2 + $0x198] sm:$0xff] %v3017_v0 }
  0x60   : > { %519 = vst [vmem:[#allocation2 + $0x1a0] sm:$0xff] %v3017_v0  ;;  %520 = vst [vmem:[#allocation2 + $0x1a8] sm:$0xff] %v3017_v0 }
  0x61   : > { %521 = vst [vmem:[#allocation2 + $0x1b0] sm:$0xff] %v3017_v0  ;;  %522 = vst [vmem:[#allocation2 + $0x1b8] sm:$0xff] %v3017_v0 }
  0x62   : > { %523 = vst [vmem:[#allocation2 + $0x1c0] sm:$0xff] %v3017_v0  ;;  %524 = vst [vmem:[#allocation2 + $0x1c8] sm:$0xff] %v3017_v0 }
  0x63   : > { %525 = vst [vmem:[#allocation2 + $0x1d0] sm:$0xff] %v3017_v0  ;;  %526 = vst [vmem:[#allocation2 + $0x1d8] sm:$0xff] %v3017_v0 }
  0x64   : > { %527 = vst [vmem:[#allocation2 + $0x1e0] sm:$0xff] %v3017_v0  ;;  %528 = vst [vmem:[#allocation2 + $0x1e8] sm:$0xff] %v3017_v0 }
  0x65   : > { %529 = vst [vmem:[#allocation2 + $0x1f0] sm:$0xff] %v3017_v0  ;;  %530 = vst [vmem:[#allocation2 + $0x1f8] sm:$0xff] %v3017_v0 }
  0x66 PF: > { %v2769_v1 = vld [vmem:[%s3243_s30 + $0x4] ss:$8 sps:$4 sm:$0xff]   ;;  %v2773_v3 = vld [vmem:[%s3243_s30] ss:$8 sps:$4 sm:$0xff]   ;;  %v2775_v5 = vld [vmem:[%s3243_s30 + $0x14] ss:$8 sps:$4 sm:$0xff]  }
  0x67   : > { %v2771_v2 = vld [vmem:[%s3243_s30 + $0x104] ss:$8 sps:$4 sm:$0xff]   ;;  %1363 = vmatprep.subr.bf16.mxu1 %v2769_v1  ;;  %v2774_v4 = vld [vmem:[%s3243_s30 + $0x100] ss:$8 sps:$4 sm:$0xff]   ;;  %v2777_v6 = vld [vmem:[%s3243_s30 + $0x114] ss:$8 sps:$4 sm:$0xff]  }
  0x68   : > { %1556 = vmatprep.subr.bf16.mxu0 %v2771_v2  ;;  %1364 = vmatpush1.bf16.msra.mxu1 %v2773_v3  ;;  %v2779_v7 = vld [vmem:[%s3243_s30 + $0x10] ss:$8 sps:$4 sm:$0xff]   ;;  %v2781_v9 = vld [vmem:[%s3243_s30 + $0x24] ss:$8 sps:$4 sm:$0xff]   ;;  %v2785_v11 = vld [vmem:[%s3243_s30 + $0x20] ss:$8 sps:$4 sm:$0xff]  }
  0x69   : > { %1557 = vmatpush1.bf16.msra.mxu0 %v2774_v4  ;;  %1365 = vmatprep.subr.bf16.mxu1 %v2775_v5  ;;  %v2780_v8 = vld [vmem:[%s3243_s30 + $0x110] ss:$8 sps:$4 sm:$0xff]   ;;  %v2783_v10 = vld [vmem:[%s3243_s30 + $0x124] ss:$8 sps:$4 sm:$0xff]   ;;  %v2786_v12 = vld [vmem:[%s3243_s30 + $0x120] ss:$8 sps:$4 sm:$0xff]  }
  0x6a   : > { %1558 = vmatprep.subr.bf16.mxu0 %v2777_v6  ;;  %v2787_v13 = vld [vmem:[%s3243_s30 + $0x34] ss:$8 sps:$4 sm:$0xff]   ;;  %v2791_v15 = vld [vmem:[%s3243_s30 + $0x30] ss:$8 sps:$4 sm:$0xff]   ;;  %v2793_v17 = vld [vmem:[%s3243_s30 + $0x44] ss:$8 sps:$4 sm:$0xff]  }
  0x6b   : > { %v2789_v14 = vld [vmem:[%s3243_s30 + $0x134] ss:$8 sps:$4 sm:$0xff]   ;;  %v2792_v16 = vld [vmem:[%s3243_s30 + $0x130] ss:$8 sps:$4 sm:$0xff]   ;;  %v2795_v18 = vld [vmem:[%s3243_s30 + $0x144] ss:$8 sps:$4 sm:$0xff]  }
  0x6c   : > { %1366 = vmatpush1.bf16.msra.mxu1 %v2779_v7  ;;  %v2797_v19 = vld [vmem:[%s3243_s30 + $0x40] ss:$8 sps:$4 sm:$0xff]   ;;  %v2799_v21 = vld [vmem:[%s3243_s30 + $0x54] ss:$8 sps:$4 sm:$0xff]   ;;  %v2803_v23 = vld [vmem:[%s3243_s30 + $0x50] ss:$8 sps:$4 sm:$0xff]  }
  0x6d   : > { %1559 = vmatpush1.bf16.msra.mxu0 %v2780_v8  ;;  %1367 = vmatprep.subr.bf16.mxu1 %v2781_v9  ;;  %v2798_v20 = vld [vmem:[%s3243_s30 + $0x140] ss:$8 sps:$4 sm:$0xff]   ;;  %v2801_v22 = vld [vmem:[%s3243_s30 + $0x154] ss:$8 sps:$4 sm:$0xff]   ;;  %v2804_v24 = vld [vmem:[%s3243_s30 + $0x150] ss:$8 sps:$4 sm:$0xff]  }
  0x6e   : > { %1560 = vmatprep.subr.bf16.mxu0 %v2783_v10  ;;  %v2805_v25 = vld [vmem:[%s3243_s30 + $0x64] ss:$8 sps:$4 sm:$0xff]   ;;  %v2809_v27 = vld [vmem:[%s3243_s30 + $0x60] ss:$8 sps:$4 sm:$0xff]   ;;  %v2811_v29 = vld [vmem:[%s3243_s30 + $0x74] ss:$8 sps:$4 sm:$0xff]  }
  0x6f   : > { %v2807_v26 = vld [vmem:[%s3243_s30 + $0x164] ss:$8 sps:$4 sm:$0xff]   ;;  %v2810_v28 = vld [vmem:[%s3243_s30 + $0x160] ss:$8 sps:$4 sm:$0xff]   ;;  %v2813_v30 = vld [vmem:[%s3243_s30 + $0x174] ss:$8 sps:$4 sm:$0xff]  }
  0x70   : > { %1368 = vmatpush1.bf16.msra.mxu1 %v2785_v11  ;;  %v2815_v31 = vld [vmem:[%s3243_s30 + $0x70] ss:$8 sps:$4 sm:$0xff]   ;;  %v2817_v33 = vld [vmem:[%s3243_s30 + $0x84] ss:$8 sps:$4 sm:$0xff]   ;;  %v2821_v35 = vld [vmem:[%s3243_s30 + $0x80] ss:$8 sps:$4 sm:$0xff]  }
  0x71   : > { %1561 = vmatpush1.bf16.msra.mxu0 %v2786_v12  ;;  %1369 = vmatprep.subr.bf16.mxu1 %v2787_v13  ;;  %v2816_v32 = vld [vmem:[%s3243_s30 + $0x170] ss:$8 sps:$4 sm:$0xff]   ;;  %v2819_v34 = vld [vmem:[%s3243_s30 + $0x184] ss:$8 sps:$4 sm:$0xff]   ;;  %v2822_v36 = vld [vmem:[%s3243_s30 + $0x180] ss:$8 sps:$4 sm:$0xff]  }
  0x72   : > { %1562 = vmatprep.subr.bf16.mxu0 %v2789_v14  ;;  %v2823_v37 = vld [vmem:[%s3243_s30 + $0x94] ss:$8 sps:$4 sm:$0xff]   ;;  %v2827_v39 = vld [vmem:[%s3243_s30 + $0x90] ss:$8 sps:$4 sm:$0xff]   ;;  %v2829_v41 = vld [vmem:[%s3243_s30 + $0xa4] ss:$8 sps:$4 sm:$0xff]  }
  0x73   : > { %v2825_v38 = vld [vmem:[%s3243_s30 + $0x194] ss:$8 sps:$4 sm:$0xff]   ;;  %v2828_v40 = vld [vmem:[%s3243_s30 + $0x190] ss:$8 sps:$4 sm:$0xff]   ;;  %v2831_v42 = vld [vmem:[%s3243_s30 + $0x1a4] ss:$8 sps:$4 sm:$0xff]  }
  0x74   : > { %1370 = vmatpush1.bf16.msra.mxu1 %v2791_v15  ;;  %v2833_v43 = vld [vmem:[%s3243_s30 + $0xa0] ss:$8 sps:$4 sm:$0xff]   ;;  %v2835_v45 = vld [vmem:[%s3243_s30 + $0xb4] ss:$8 sps:$4 sm:$0xff]   ;;  %v2839_v47 = vld [vmem:[%s3243_s30 + $0xb0] ss:$8 sps:$4 sm:$0xff]  }
  0x75   : > { %1563 = vmatpush1.bf16.msra.mxu0 %v2792_v16  ;;  %1371 = vmatprep.subr.bf16.mxu1 %v2793_v17  ;;  %v2834_v44 = vld [vmem:[%s3243_s30 + $0x1a0] ss:$8 sps:$4 sm:$0xff]   ;;  %v2837_v46 = vld [vmem:[%s3243_s30 + $0x1b4] ss:$8 sps:$4 sm:$0xff]   ;;  %v2840_v48 = vld [vmem:[%s3243_s30 + $0x1b0] ss:$8 sps:$4 sm:$0xff]  }
  0x76   : > { %1564 = vmatprep.subr.bf16.mxu0 %v2795_v18  ;;  %v2841_v49 = vld [vmem:[%s3243_s30 + $0xc4] ss:$8 sps:$4 sm:$0xff]   ;;  %v2845_v53 = vld [vmem:[%s3243_s30 + $0xc0] ss:$8 sps:$4 sm:$0xff]   ;;  %v2847_v55 = vld [vmem:[%s3243_s30 + $0xd4] ss:$8 sps:$4 sm:$0xff]  }
  0x77   : > { %v2867_v50 = vld [vmem:[%s3250_s15 + $0x4] ss:$16 sps:$4 sm:$0xff]   ;;  %v2870_v52 = vld [vmem:[%s3250_s15 + $0xc] ss:$16 sps:$4 sm:$0xff]   ;;  %v2846_v54 = vld [vmem:[%s3243_s30 + $0x1c0] ss:$8 sps:$4 sm:$0xff]  }
  0x78   : > { %1372 = vmatpush1.bf16.msra.mxu1 %v2797_v19  ;;  %v2843_v51 = vld [vmem:[%s3243_s30 + $0x1c4] ss:$8 sps:$4 sm:$0xff]   ;;  %1395 = vmatprep.mubr.bf16.mxu1 %v2867_v50  ;;  %v2849_v56 = vld [vmem:[%s3243_s30 + $0x1d4] ss:$8 sps:$4 sm:$0xff]   ;;  %v2851_v57 = vld [vmem:[%s3243_s30 + $0xd0] ss:$8 sps:$4 sm:$0xff]  }
  0x79   : > { %1565 = vmatpush1.bf16.msra.mxu0 %v2798_v20  ;;  %1373 = vmatprep.subr.bf16.mxu1 %v2799_v21  ;;  %v2852_v58 = vld [vmem:[%s3243_s30 + $0x1d0] ss:$8 sps:$4 sm:$0xff]   ;;  %v2853_v59 = vld [vmem:[%s3243_s30 + $0xe4] ss:$8 sps:$4 sm:$0xff]   ;;  %v2857_v61 = vld [vmem:[%s3243_s30 + $0xe0] ss:$8 sps:$4 sm:$0xff]  }
  0x7a   : > { %1566 = vmatprep.subr.bf16.mxu0 %v2801_v22  ;;  %1588 = vmatprep.mubr.bf16.mxu0 %v2870_v52  ;;  %v2855_v60 = vld [vmem:[%s3243_s30 + $0x1e4] ss:$8 sps:$4 sm:$0xff]   ;;  %v2858_v62 = vld [vmem:[%s3243_s30 + $0x1e0] ss:$8 sps:$4 sm:$0xff]   ;;  %v2859_v63 = vld [vmem:[%s3243_s30 + $0xf4] ss:$8 sps:$4 sm:$0xff]  }
  0x7b   : > { %v2861_v0 = vld [vmem:[%s3243_s30 + $0x1f4] ss:$8 sps:$4 sm:$0xff]   ;;  %v2863_v1 = vld [vmem:[%s3243_s30 + $0xf0] ss:$8 sps:$4 sm:$0xff]   ;;  %p2642_p13 = scmp.ne.s32.totalorder %s2999_s17, 3 }
  0x7c   : > { %1374 = vmatpush1.bf16.msra.mxu1 %v2803_v23  ;;  %v2864_v2 = vld [vmem:[%s3243_s30 + $0x1f0] ss:$8 sps:$4 sm:$0xff]   ;;  %v2871_v5 = vld [vmem:[%s3250_s15 + $0x24] ss:$16 sps:$4 sm:$0xff]   ;;  %v2873_v6 = vld [vmem:[%s3250_s15 + $0x2c] ss:$16 sps:$4 sm:$0xff]  }
  0x7d   : > { %1567 = vmatpush1.bf16.msra.mxu0 %v2804_v24  ;;  %1375 = vmatprep.subr.bf16.mxu1 %v2805_v25  ;;  %v2865_v3 = vld [vmem:[%s3250_s15] ss:$16 sps:$4 sm:$0xff]   ;;  %v2868_v4 = vld [vmem:[%s3250_s15 + $0x8] ss:$16 sps:$4 sm:$0xff]   ;;  %v2877_v9 = vld [vmem:[%s3250_s15 + $0x44] ss:$16 sps:$4 sm:$0xff]  }
  0x7e   : > { %1568 = vmatprep.subr.bf16.mxu0 %v2807_v26  ;;  %v2875_v7 = vld [vmem:[%s3250_s15 + $0x20] ss:$16 sps:$4 sm:$0xff]   ;;  %v2876_v8 = vld [vmem:[%s3250_s15 + $0x28] ss:$16 sps:$4 sm:$0xff]   ;;  %v2879_v10 = vld [vmem:[%s3250_s15 + $0x4c] ss:$16 sps:$4 sm:$0xff]  }
  0x7f   : > { %v2881_v11 = vld [vmem:[%s3250_s15 + $0x40] ss:$16 sps:$4 sm:$0xff]   ;;  %v2882_v12 = vld [vmem:[%s3250_s15 + $0x48] ss:$16 sps:$4 sm:$0xff]   ;;  %v2883_v13 = vld [vmem:[%s3250_s15 + $0x64] ss:$16 sps:$4 sm:$0xff]  }
  0x80   : > { %1376 = vmatpush1.bf16.msra.mxu1 %v2809_v27  ;;  %v2885_v14 = vld [vmem:[%s3250_s15 + $0x6c] ss:$16 sps:$4 sm:$0xff]   ;;  %v2887_v15 = vld [vmem:[%s3250_s15 + $0x60] ss:$16 sps:$4 sm:$0xff]   ;;  %v2888_v16 = vld [vmem:[%s3250_s15 + $0x68] ss:$16 sps:$4 sm:$0xff]  }
  0x81   : > { %1569 = vmatpush1.bf16.msra.mxu0 %v2810_v28  ;;  %1377 = vmatprep.subr.bf16.mxu1 %v2811_v29  ;;  %v2889_v17 = vld [vmem:[%s3250_s15 + $0x84] ss:$16 sps:$4 sm:$0xff]   ;;  %v2891_v18 = vld [vmem:[%s3250_s15 + $0x8c] ss:$16 sps:$4 sm:$0xff]   ;;  %v2893_v19 = vld [vmem:[%s3250_s15 + $0x80] ss:$16 sps:$4 sm:$0xff]  }
  0x82   : > { %1570 = vmatprep.subr.bf16.mxu0 %v2813_v30  ;;  %v2894_v20 = vld [vmem:[%s3250_s15 + $0x88] ss:$16 sps:$4 sm:$0xff]   ;;  %v2895_v21 = vld [vmem:[%s3250_s15 + $0xa4] ss:$16 sps:$4 sm:$0xff]   ;;  %v2897_v22 = vld [vmem:[%s3250_s15 + $0xac] ss:$16 sps:$4 sm:$0xff]  }
  0x83   : > { %v2899_v23 = vld [vmem:[%s3250_s15 + $0xa0] ss:$16 sps:$4 sm:$0xff]   ;;  %v2900_v24 = vld [vmem:[%s3250_s15 + $0xa8] ss:$16 sps:$4 sm:$0xff]   ;;  %v2901_v25 = vld [vmem:[%s3250_s15 + $0xc4] ss:$16 sps:$4 sm:$0xff]  }
  0x84   : > { %1378 = vmatpush1.bf16.msra.mxu1 %v2815_v31  ;;  %v2903_v26 = vld [vmem:[%s3250_s15 + $0xcc] ss:$16 sps:$4 sm:$0xff]   ;;  %v2905_v27 = vld [vmem:[%s3250_s15 + $0xc0] ss:$16 sps:$4 sm:$0xff]   ;;  %v2906_v28 = vld [vmem:[%s3250_s15 + $0xc8] ss:$16 sps:$4 sm:$0xff]  }
  0x85   : > { %1571 = vmatpush1.bf16.msra.mxu0 %v2816_v32  ;;  %1379 = vmatprep.subr.bf16.mxu1 %v2817_v33  ;;  %v2907_v29 = vld [vmem:[%s3250_s15 + $0xe4] ss:$16 sps:$4 sm:$0xff]   ;;  %v2909_v30 = vld [vmem:[%s3250_s15 + $0xec] ss:$16 sps:$4 sm:$0xff]   ;;  %v2911_v31 = vld [vmem:[%s3250_s15 + $0xe0] ss:$16 sps:$4 sm:$0xff]  }
  0x86   : > { %1572 = vmatprep.subr.bf16.mxu0 %v2819_v34  ;;  %v2912_v32 = vld [vmem:[%s3250_s15 + $0xe8] ss:$16 sps:$4 sm:$0xff]   ;;  %v2913_v33 = vld [vmem:[%s3250_s15 + $0x104] ss:$16 sps:$4 sm:$0xff]   ;;  %v2915_v34 = vld [vmem:[%s3250_s15 + $0x10c] ss:$16 sps:$4 sm:$0xff]  }
  0x87   : > { %v2939_v50 = vld [vmem:[%s3250_s15 + $0x18c] ss:$16 sps:$4 sm:$0xff]   ;;  %v2942_v52 = vld [vmem:[%s3250_s15 + $0x188] ss:$16 sps:$4 sm:$0xff]  }
  0x88   : > { %1380 = vmatpush1.bf16.msra.mxu1 %v2821_v35  ;;  %v2917_v35 = vld [vmem:[%s3250_s15 + $0x100] ss:$16 sps:$4 sm:$0xff]  }
  0x89   : > { %1573 = vmatpush1.bf16.msra.mxu0 %v2822_v36  ;;  %1381 = vmatprep.subr.bf16.mxu1 %v2823_v37  ;;  %v2918_v36 = vld [vmem:[%s3250_s15 + $0x108] ss:$16 sps:$4 sm:$0xff]   ;;  %v2919_v37 = vld [vmem:[%s3250_s15 + $0x124] ss:$16 sps:$4 sm:$0xff]  }
  0x8a   : > { %1574 = vmatprep.subr.bf16.mxu0 %v2825_v38  ;;  %v2921_v38 = vld [vmem:[%s3250_s15 + $0x12c] ss:$16 sps:$4 sm:$0xff]  }
  0x8c   : > { %1382 = vmatpush1.bf16.msra.mxu1 %v2827_v39  ;;  %v2923_v39 = vld [vmem:[%s3250_s15 + $0x120] ss:$16 sps:$4 sm:$0xff]  }
  0x8d   : > { %1575 = vmatpush1.bf16.msra.mxu0 %v2828_v40  ;;  %1383 = vmatprep.subr.bf16.mxu1 %v2829_v41  ;;  %v2924_v40 = vld [vmem:[%s3250_s15 + $0x128] ss:$16 sps:$4 sm:$0xff]   ;;  %v2925_v41 = vld [vmem:[%s3250_s15 + $0x144] ss:$16 sps:$4 sm:$0xff]  }
  0x8e   : > { %1576 = vmatprep.subr.bf16.mxu0 %v2831_v42  ;;  %v2927_v42 = vld [vmem:[%s3250_s15 + $0x14c] ss:$16 sps:$4 sm:$0xff]  }
  0x90   : > { %1384 = vmatpush1.bf16.msra.mxu1 %v2833_v43  ;;  %v2929_v43 = vld [vmem:[%s3250_s15 + $0x140] ss:$16 sps:$4 sm:$0xff]  }
  0x91   : > { %1577 = vmatpush1.bf16.msra.mxu0 %v2834_v44  ;;  %1385 = vmatprep.subr.bf16.mxu1 %v2835_v45  ;;  %v2930_v44 = vld [vmem:[%s3250_s15 + $0x148] ss:$16 sps:$4 sm:$0xff]   ;;  %v2931_v45 = vld [vmem:[%s3250_s15 + $0x164] ss:$16 sps:$4 sm:$0xff]  }
  0x92   : > { %1578 = vmatprep.subr.bf16.mxu0 %v2837_v46  ;;  %v2933_v46 = vld [vmem:[%s3250_s15 + $0x16c] ss:$16 sps:$4 sm:$0xff]  }
  0x94   : > { %1386 = vmatpush1.bf16.msra.mxu1 %v2839_v47  ;;  %v2935_v47 = vld [vmem:[%s3250_s15 + $0x160] ss:$16 sps:$4 sm:$0xff]  }
  0x95   : > { %1579 = vmatpush1.bf16.msra.mxu0 %v2840_v48  ;;  %1387 = vmatprep.subr.bf16.mxu1 %v2841_v49  ;;  %v2936_v48 = vld [vmem:[%s3250_s15 + $0x168] ss:$16 sps:$4 sm:$0xff]   ;;  %v2937_v49 = vld [vmem:[%s3250_s15 + $0x184] ss:$16 sps:$4 sm:$0xff]  }
  0x96   : > { %1580 = vmatprep.subr.bf16.mxu0 %v2843_v51  ;;  %v2941_v51 = vld [vmem:[%s3250_s15 + $0x180] ss:$16 sps:$4 sm:$0xff]  }
  0x98   : > { %1388 = vmatpush1.bf16.msra.mxu1 %v2845_v53  ;;  %v2943_v53 = vld [vmem:[%s3250_s15 + $0x1a4] ss:$16 sps:$4 sm:$0xff]  }
  0x99   : > { %1581 = vmatpush1.bf16.msra.mxu0 %v2846_v54  ;;  %1389 = vmatprep.subr.bf16.mxu1 %v2847_v55  ;;  %v2945_v54 = vld [vmem:[%s3250_s15 + $0x1ac] ss:$16 sps:$4 sm:$0xff]   ;;  %v2947_v55 = vld [vmem:[%s3250_s15 + $0x1a0] ss:$16 sps:$4 sm:$0xff]  }
  0x9a   : > { %1582 = vmatprep.subr.bf16.mxu0 %v2849_v56  ;;  %v2948_v56 = vld [vmem:[%s3250_s15 + $0x1a8] ss:$16 sps:$4 sm:$0xff]  }
  0x9c   : > { %1390 = vmatpush1.bf16.msra.mxu1 %v2851_v57  ;;  %v2949_v57 = vld [vmem:[%s3250_s15 + $0x1c4] ss:$16 sps:$4 sm:$0xff]  }
  0x9d   : > { %1583 = vmatpush1.bf16.msra.mxu0 %v2852_v58  ;;  %1391 = vmatprep.subr.bf16.mxu1 %v2853_v59  ;;  %v2951_v58 = vld [vmem:[%s3250_s15 + $0x1cc] ss:$16 sps:$4 sm:$0xff]   ;;  %v2953_v59 = vld [vmem:[%s3250_s15 + $0x1c0] ss:$16 sps:$4 sm:$0xff]  }
  0x9e   : > { %1584 = vmatprep.subr.bf16.mxu0 %v2855_v60  ;;  %v2954_v60 = vld [vmem:[%s3250_s15 + $0x1c8] ss:$16 sps:$4 sm:$0xff]  }
  0xa0   : > { %1392 = vmatpush1.bf16.msra.mxu1 %v2857_v61  ;;  %v2955_v61 = vld [vmem:[%s3250_s15 + $0x1e4] ss:$16 sps:$4 sm:$0xff]  }
  0xa1   : > { %1585 = vmatpush1.bf16.msra.mxu0 %v2858_v62  ;;  %1393 = vmatprep.subr.bf16.mxu1 %v2859_v63  ;;  %v2957_v62 = vld [vmem:[%s3250_s15 + $0x1ec] ss:$16 sps:$4 sm:$0xff]   ;;  %v2959_v63 = vld [vmem:[%s3250_s15 + $0x1e0] ss:$16 sps:$4 sm:$0xff]  }
  0xa2   : > { %1586 = vmatprep.subr.bf16.mxu0 %v2861_v0  ;;  %v2960_v0 = vld [vmem:[%s3250_s15 + $0x1e8] ss:$16 sps:$4 sm:$0xff]  }
  0xa4   : > { %1394 = vmatpush1.bf16.msra.mxu1 %v2863_v1 }
  0xa5   : > { %1587 = vmatpush1.bf16.msra.mxu0 %v2864_v2  ;;  %v531_v2 = vld [vmem:[#allocation2] sm:$0xff] }
  0xa7   : > { %1396 = vmatmul.mubr.bf16.vlgmr.msra.gmra.mrb[0].mxu1 %v2865_v3 }
  0xa8   : > { %1589 = vmatmul.mubr.bf16.vlgmr.msra.gmra.mrb[0].mxu0 %v2868_v4  ;;  %1405 = vmatprep.mubr.bf16.mxu1 %v2871_v5 }
  0xa9   : > { %1598 = vmatprep.mubr.bf16.mxu0 %v2873_v6  ;;  %v532_v6 = vld [vmem:[#allocation2 + $0x8] sm:$0xff] }
  0xaf   : > { %1406 = vmatmul.mubr.bf16.gmra.mrb[4].mxu1 %v2875_v7 }
  0xb0   : > { %1599 = vmatmul.mubr.bf16.gmra.mrb[4].mxu0 %v2876_v8  ;;  %1415 = vmatprep.mubr.bf16.mxu1 %v2877_v9 }
  0xb1   : > { %1608 = vmatprep.mubr.bf16.mxu0 %v2879_v10  ;;  %v533_v10 = vld [vmem:[#allocation2 + $0x10] sm:$0xff] }
  0xb7   : > { %1416 = vmatmul.mubr.bf16.gmra.mrb[8].mxu1 %v2881_v11 }
  0xb8   : > { %1609 = vmatmul.mubr.bf16.gmra.mrb[8].mxu0 %v2882_v12  ;;  %1425 = vmatprep.mubr.bf16.mxu1 %v2883_v13 }
  0xb9   : > { %1618 = vmatprep.mubr.bf16.mxu0 %v2885_v14 }
  0xbf   : > { %1426 = vmatmul.mubr.bf16.gmra.mrb[12].mxu1 %v2887_v15  ;;  %v534_v15 = vld [vmem:[#allocation2 + $0x18] sm:$0xff] }
  0xc0   : > { %1619 = vmatmul.mubr.bf16.gmra.mrb[12].mxu0 %v2888_v16  ;;  %1435 = vmatprep.mubr.bf16.mxu1 %v2889_v17 }
  0xc1   : > { %1628 = vmatprep.mubr.bf16.mxu0 %v2891_v18 }
  0xc7   : > { %1436 = vmatmul.mubr.bf16.gmra.mrb[16].mxu1 %v2893_v19 }
  0xc8   : > { %1629 = vmatmul.mubr.bf16.gmra.mrb[16].mxu0 %v2894_v20  ;;  %1445 = vmatprep.mubr.bf16.mxu1 %v2895_v21 }
  0xc9   : > { %1638 = vmatprep.mubr.bf16.mxu0 %v2897_v22  ;;  %v535_v22 = vld [vmem:[#allocation2 + $0x20] sm:$0xff] }
  0xcf   : > { %1446 = vmatmul.mubr.bf16.gmra.mrb[20].mxu1 %v2899_v23 }
  0xd0   : > { %1639 = vmatmul.mubr.bf16.gmra.mrb[20].mxu0 %v2900_v24  ;;  %1455 = vmatprep.mubr.bf16.mxu1 %v2901_v25 }
  0xd1   : > { %1648 = vmatprep.mubr.bf16.mxu0 %v2903_v26  ;;  %v536_v26 = vld [vmem:[#allocation2 + $0x28] sm:$0xff] }
  0xd7   : > { %1456 = vmatmul.mubr.bf16.gmra.mrb[24].mxu1 %v2905_v27 }
  0xd8   : > { %1649 = vmatmul.mubr.bf16.gmra.mrb[24].mxu0 %v2906_v28  ;;  %1465 = vmatprep.mubr.bf16.mxu1 %v2907_v29 }
  0xd9   : > { %1658 = vmatprep.mubr.bf16.mxu0 %v2909_v30  ;;  %v537_v30 = vld [vmem:[#allocation2 + $0x30] sm:$0xff] }
  0xdf   : > { %1466 = vmatmul.mubr.bf16.gmra.mrb[28].mxu1 %v2911_v31 }
  0xe0   : > { %1659 = vmatmul.mubr.bf16.gmra.mrb[28].mxu0 %v2912_v32  ;;  %1475 = vmatprep.mubr.bf16.mxu1 %v2913_v33 }
  0xe1   : > { %1668 = vmatprep.mubr.bf16.mxu0 %v2915_v34 }
  0xe7   : > { %1476 = vmatmul.mubr.bf16.gmra.mrb[32].mxu1 %v2917_v35  ;;  %v538_v35 = vld [vmem:[#allocation2 + $0x38] sm:$0xff] }
  0xe8   : > { %1669 = vmatmul.mubr.bf16.gmra.mrb[32].mxu0 %v2918_v36  ;;  %1485 = vmatprep.mubr.bf16.mxu1 %v2919_v37 }
  0xe9   : > { %1678 = vmatprep.mubr.bf16.mxu0 %v2921_v38 }
  0xef   : > { %1486 = vmatmul.mubr.bf16.gmra.mrb[36].mxu1 %v2923_v39 }
  0xf0   : > { %1679 = vmatmul.mubr.bf16.gmra.mrb[36].mxu0 %v2924_v40  ;;  %1495 = vmatprep.mubr.bf16.mxu1 %v2925_v41 }
  0xf1   : > { %1688 = vmatprep.mubr.bf16.mxu0 %v2927_v42  ;;  %v539_v42 = vld [vmem:[#allocation2 + $0x40] sm:$0xff] }
  0xf7   : > { %1496 = vmatmul.mubr.bf16.gmra.mrb[40].mxu1 %v2929_v43 }
  0xf8   : > { %1689 = vmatmul.mubr.bf16.gmra.mrb[40].mxu0 %v2930_v44  ;;  %1505 = vmatprep.mubr.bf16.mxu1 %v2931_v45 }
  0xf9   : > { %1698 = vmatprep.mubr.bf16.mxu0 %v2933_v46  ;;  %v540_v46 = vld [vmem:[#allocation2 + $0x48] sm:$0xff] }
  0xff   : > { %1506 = vmatmul.mubr.bf16.gmra.mrb[44].mxu1 %v2935_v47 }
 0x100   : > { %1699 = vmatmul.mubr.bf16.gmra.mrb[44].mxu0 %v2936_v48  ;;  %1515 = vmatprep.mubr.bf16.mxu1 %v2937_v49 }
 0x101   : > { %1708 = vmatprep.mubr.bf16.mxu0 %v2939_v50  ;;  %v541_v50 = vld [vmem:[#allocation2 + $0x50] sm:$0xff] }
 0x107   : > { %1516 = vmatmul.mubr.bf16.gmra.mrb[48].mxu1 %v2941_v51 }
 0x108   : > { %1709 = vmatmul.mubr.bf16.gmra.mrb[48].mxu0 %v2942_v52  ;;  %1525 = vmatprep.mubr.bf16.mxu1 %v2943_v53 }
 0x109   : > { %1718 = vmatprep.mubr.bf16.mxu0 %v2945_v54 }
 0x10f   : > { %1526 = vmatmul.mubr.bf16.gmra.mrb[52].mxu1 %v2947_v55  ;;  %v542_v55 = vld [vmem:[#allocation2 + $0x58] sm:$0xff] }
 0x110   : > { %1719 = vmatmul.mubr.bf16.gmra.mrb[52].mxu0 %v2948_v56  ;;  %1535 = vmatprep.mubr.bf16.mxu1 %v2949_v57 }
 0x111   : > { %1728 = vmatprep.mubr.bf16.mxu0 %v2951_v58 }
 0x117   : > { %1536 = vmatmul.mubr.bf16.gmra.mrb[56].mxu1 %v2953_v59 }
 0x118   : > { %1729 = vmatmul.mubr.bf16.gmra.mrb[56].mxu0 %v2954_v60  ;;  %1545 = vmatprep.mubr.bf16.mxu1 %v2955_v61 }
 0x119   : > { %1738 = vmatprep.mubr.bf16.mxu0 %v2957_v62  ;;  %v543_v62 = vld [vmem:[#allocation2 + $0x60] sm:$0xff] }
 0x11f   : > { %1546 = vmatmul.mubr.bf16.gmra.mrb[60].mxu1 %v2959_v63 }
 0x120   : > { %1739 = vmatmul.mubr.bf16.gmra.mrb[60].mxu0 %v2960_v0 }
 0x17a   : > { %v1397_v1 = vpop.f32.mrb[0].mxu1 }
 0x17b   : > { %v1590_v3 = vpop.f32.mrb[0].mxu0  ;;  %v1399_v5 = vpop.f32.mrb[1].mxu1 }
 0x17c   : > { %v1591_v4 = vadd.f32 %v1590_v3, %v1397_v1  ;;  %v1592_v7 = vpop.f32.mrb[1].mxu0  ;;  %v1401_v9 = vpop.f32.mrb[2].mxu1 }
 0x17d   : > { %v1593_v8 = vadd.f32 %v1592_v7, %v1399_v5  ;;  %v1594_v11 = vpop.f32.mrb[2].mxu0  ;;  %v1403_v14 = vpop.f32.mrb[3].mxu1 }
 0x17e   : > { %v1749_v12 = vadd.f32 %v1591_v4, %v531_v2  ;;  %v1595_v13 = vadd.f32 %v1594_v11, %v1401_v9  ;;  %v1596_v16 = vpop.f32.mrb[3].mxu0  ;;  %v544_v2 = vld [vmem:[#allocation2 + $0x68] sm:$0xff]  ;;  %v546_v11 = vld [vmem:[#allocation2 + $0x78] sm:$0xff] }
 0x17f   : > { %v1750_v17 = vadd.f32 %v1593_v8, %v532_v6  ;;  %v1597_v18 = vadd.f32 %v1596_v16, %v1403_v14  ;;  %v545_v6 = vld [vmem:[#allocation2 + $0x70] sm:$0xff] }
 0x180   : > { %1813 = vst [vmem:[#allocation2] sm:$0xff] %v1749_v12  ;;  %v1751_v19 = vadd.f32 %v1595_v13, %v533_v10 }
 0x181   : > { %1814 = vst [vmem:[#allocation2 + $0x8] sm:$0xff] %v1750_v17  ;;  %v1752_v20 = vadd.f32 %v1597_v18, %v534_v15  ;;  %v547_v18 = vld [vmem:[#allocation2 + $0x80] sm:$0xff] }
 0x182   : > { %1815 = vst [vmem:[#allocation2 + $0x10] sm:$0xff] %v1751_v19  ;;  %v1407_v21 = vpop.f32.mrb[4].mxu1 }
 0x183   : > { %1816 = vst [vmem:[#allocation2 + $0x18] sm:$0xff] %v1752_v20  ;;  %v1600_v23 = vpop.f32.mrb[4].mxu0  ;;  %v1409_v25 = vpop.f32.mrb[5].mxu1 }
 0x184   : > { %v1601_v24 = vadd.f32 %v1600_v23, %v1407_v21  ;;  %v1602_v27 = vpop.f32.mrb[5].mxu0  ;;  %v1411_v29 = vpop.f32.mrb[6].mxu1 }
 0x185   : > { %v1603_v28 = vadd.f32 %v1602_v27, %v1409_v25  ;;  %v1604_v31 = vpop.f32.mrb[6].mxu0  ;;  %v1413_v34 = vpop.f32.mrb[7].mxu1 }
 0x186   : > { %v1753_v32 = vadd.f32 %v1601_v24, %v535_v22  ;;  %v1605_v33 = vadd.f32 %v1604_v31, %v1411_v29  ;;  %v1606_v36 = vpop.f32.mrb[7].mxu0  ;;  %v548_v22 = vld [vmem:[#allocation2 + $0x88] sm:$0xff]  ;;  %v550_v31 = vld [vmem:[#allocation2 + $0x98] sm:$0xff] }
 0x187   : > { %v1754_v37 = vadd.f32 %v1603_v28, %v536_v26  ;;  %v1607_v38 = vadd.f32 %v1606_v36, %v1413_v34  ;;  %v549_v26 = vld [vmem:[#allocation2 + $0x90] sm:$0xff] }
 0x188   : > { %1817 = vst [vmem:[#allocation2 + $0x20] sm:$0xff] %v1753_v32  ;;  %v1755_v39 = vadd.f32 %v1605_v33, %v537_v30 }
 0x189   : > { %1818 = vst [vmem:[#allocation2 + $0x28] sm:$0xff] %v1754_v37  ;;  %v1756_v40 = vadd.f32 %v1607_v38, %v538_v35  ;;  %v551_v38 = vld [vmem:[#allocation2 + $0xa0] sm:$0xff] }
 0x18a   : > { %1819 = vst [vmem:[#allocation2 + $0x30] sm:$0xff] %v1755_v39  ;;  %v1417_v41 = vpop.f32.mrb[8].mxu1 }
 0x18b   : > { %1820 = vst [vmem:[#allocation2 + $0x38] sm:$0xff] %v1756_v40  ;;  %v1610_v43 = vpop.f32.mrb[8].mxu0  ;;  %v1419_v45 = vpop.f32.mrb[9].mxu1 }
 0x18c   : > { %v1611_v44 = vadd.f32 %v1610_v43, %v1417_v41  ;;  %v1612_v47 = vpop.f32.mrb[9].mxu0  ;;  %v1421_v49 = vpop.f32.mrb[10].mxu1 }
 0x18d   : > { %v1613_v48 = vadd.f32 %v1612_v47, %v1419_v45  ;;  %v1614_v51 = vpop.f32.mrb[10].mxu0  ;;  %v1423_v54 = vpop.f32.mrb[11].mxu1 }
 0x18e   : > { %v1757_v52 = vadd.f32 %v1611_v44, %v539_v42  ;;  %v1615_v53 = vadd.f32 %v1614_v51, %v1421_v49  ;;  %v1616_v56 = vpop.f32.mrb[11].mxu0  ;;  %v552_v42 = vld [vmem:[#allocation2 + $0xa8] sm:$0xff]  ;;  %v554_v51 = vld [vmem:[#allocation2 + $0xb8] sm:$0xff] }
 0x18f   : > { %v1758_v57 = vadd.f32 %v1613_v48, %v540_v46  ;;  %v1617_v58 = vadd.f32 %v1616_v56, %v1423_v54  ;;  %v553_v46 = vld [vmem:[#allocation2 + $0xb0] sm:$0xff] }
 0x190   : > { %1821 = vst [vmem:[#allocation2 + $0x40] sm:$0xff] %v1757_v52  ;;  %v1759_v59 = vadd.f32 %v1615_v53, %v541_v50 }
 0x191   : > { %1822 = vst [vmem:[#allocation2 + $0x48] sm:$0xff] %v1758_v57  ;;  %v1760_v60 = vadd.f32 %v1617_v58, %v542_v55  ;;  %v555_v58 = vld [vmem:[#allocation2 + $0xc0] sm:$0xff] }
 0x192   : > { %1823 = vst [vmem:[#allocation2 + $0x50] sm:$0xff] %v1759_v59  ;;  %v1427_v61 = vpop.f32.mrb[12].mxu1 }
 0x193   : > { %1824 = vst [vmem:[#allocation2 + $0x58] sm:$0xff] %v1760_v60  ;;  %v1620_v63 = vpop.f32.mrb[12].mxu0  ;;  %v1429_v1 = vpop.f32.mrb[13].mxu1 }
 0x194   : > { %v1621_v0 = vadd.f32 %v1620_v63, %v1427_v61  ;;  %v1622_v3 = vpop.f32.mrb[13].mxu0  ;;  %v1431_v5 = vpop.f32.mrb[14].mxu1 }
 0x195   : > { %v1623_v4 = vadd.f32 %v1622_v3, %v1429_v1  ;;  %v1624_v7 = vpop.f32.mrb[14].mxu0  ;;  %v1433_v10 = vpop.f32.mrb[15].mxu1 }
 0x196   : > { %v1761_v8 = vadd.f32 %v1621_v0, %v543_v62  ;;  %v1625_v9 = vadd.f32 %v1624_v7, %v1431_v5  ;;  %v1626_v12 = vpop.f32.mrb[15].mxu0  ;;  %v556_v62 = vld [vmem:[#allocation2 + $0xc8] sm:$0xff]  ;;  %v558_v7 = vld [vmem:[#allocation2 + $0xd8] sm:$0xff] }
 0x197   : > { %v1762_v13 = vadd.f32 %v1623_v4, %v544_v2  ;;  %v1627_v14 = vadd.f32 %v1626_v12, %v1433_v10  ;;  %v557_v2 = vld [vmem:[#allocation2 + $0xd0] sm:$0xff] }
 0x198   : > { %1825 = vst [vmem:[#allocation2 + $0x60] sm:$0xff] %v1761_v8  ;;  %v1763_v15 = vadd.f32 %v1625_v9, %v545_v6 }
 0x199   : > { %1826 = vst [vmem:[#allocation2 + $0x68] sm:$0xff] %v1762_v13  ;;  %v1764_v16 = vadd.f32 %v1627_v14, %v546_v11  ;;  %v559_v14 = vld [vmem:[#allocation2 + $0xe0] sm:$0xff] }
 0x19a   : > { %1827 = vst [vmem:[#allocation2 + $0x70] sm:$0xff] %v1763_v15  ;;  %v1437_v17 = vpop.f32.mrb[16].mxu1 }
 0x19b   : > { %1828 = vst [vmem:[#allocation2 + $0x78] sm:$0xff] %v1764_v16  ;;  %v1630_v19 = vpop.f32.mrb[16].mxu0  ;;  %v1439_v21 = vpop.f32.mrb[17].mxu1 }
 0x19c   : > { %v1631_v20 = vadd.f32 %v1630_v19, %v1437_v17  ;;  %v1632_v23 = vpop.f32.mrb[17].mxu0  ;;  %v1441_v25 = vpop.f32.mrb[18].mxu1 }
 0x19d   : > { %v1633_v24 = vadd.f32 %v1632_v23, %v1439_v21  ;;  %v1634_v27 = vpop.f32.mrb[18].mxu0  ;;  %v1443_v30 = vpop.f32.mrb[19].mxu1 }
 0x19e   : > { %v1765_v28 = vadd.f32 %v1631_v20, %v547_v18  ;;  %v1635_v29 = vadd.f32 %v1634_v27, %v1441_v25  ;;  %v1636_v32 = vpop.f32.mrb[19].mxu0  ;;  %v560_v18 = vld [vmem:[#allocation2 + $0xe8] sm:$0xff]  ;;  %v562_v27 = vld [vmem:[#allocation2 + $0xf8] sm:$0xff] }
 0x19f   : > { %v1766_v33 = vadd.f32 %v1633_v24, %v548_v22  ;;  %v1637_v34 = vadd.f32 %v1636_v32, %v1443_v30  ;;  %v561_v22 = vld [vmem:[#allocation2 + $0xf0] sm:$0xff] }
 0x1a0   : > { %1829 = vst [vmem:[#allocation2 + $0x80] sm:$0xff] %v1765_v28  ;;  %v1767_v35 = vadd.f32 %v1635_v29, %v549_v26 }
 0x1a1   : > { %1830 = vst [vmem:[#allocation2 + $0x88] sm:$0xff] %v1766_v33  ;;  %v1768_v36 = vadd.f32 %v1637_v34, %v550_v31  ;;  %v563_v34 = vld [vmem:[#allocation2 + $0x100] sm:$0xff] }
 0x1a2   : > { %1831 = vst [vmem:[#allocation2 + $0x90] sm:$0xff] %v1767_v35  ;;  %v1447_v37 = vpop.f32.mrb[20].mxu1 }
 0x1a3   : > { %1832 = vst [vmem:[#allocation2 + $0x98] sm:$0xff] %v1768_v36  ;;  %v1640_v39 = vpop.f32.mrb[20].mxu0  ;;  %v1449_v41 = vpop.f32.mrb[21].mxu1 }
 0x1a4   : > { %v1641_v40 = vadd.f32 %v1640_v39, %v1447_v37  ;;  %v1642_v43 = vpop.f32.mrb[21].mxu0  ;;  %v1451_v45 = vpop.f32.mrb[22].mxu1 }
 0x1a5   : > { %v1643_v44 = vadd.f32 %v1642_v43, %v1449_v41  ;;  %v1644_v47 = vpop.f32.mrb[22].mxu0  ;;  %v1453_v50 = vpop.f32.mrb[23].mxu1 }
 0x1a6   : > { %v1769_v48 = vadd.f32 %v1641_v40, %v551_v38  ;;  %v1645_v49 = vadd.f32 %v1644_v47, %v1451_v45  ;;  %v1646_v52 = vpop.f32.mrb[23].mxu0  ;;  %v564_v38 = vld [vmem:[#allocation2 + $0x108] sm:$0xff]  ;;  %v566_v47 = vld [vmem:[#allocation2 + $0x118] sm:$0xff] }
 0x1a7   : > { %v1770_v53 = vadd.f32 %v1643_v44, %v552_v42  ;;  %v1647_v54 = vadd.f32 %v1646_v52, %v1453_v50  ;;  %v565_v42 = vld [vmem:[#allocation2 + $0x110] sm:$0xff] }
 0x1a8   : > { %1833 = vst [vmem:[#allocation2 + $0xa0] sm:$0xff] %v1769_v48  ;;  %v1771_v55 = vadd.f32 %v1645_v49, %v553_v46 }
 0x1a9   : > { %1834 = vst [vmem:[#allocation2 + $0xa8] sm:$0xff] %v1770_v53  ;;  %v1772_v56 = vadd.f32 %v1647_v54, %v554_v51  ;;  %v567_v54 = vld [vmem:[#allocation2 + $0x120] sm:$0xff] }
 0x1aa   : > { %1835 = vst [vmem:[#allocation2 + $0xb0] sm:$0xff] %v1771_v55  ;;  %v1457_v57 = vpop.f32.mrb[24].mxu1 }
 0x1ab   : > { %1836 = vst [vmem:[#allocation2 + $0xb8] sm:$0xff] %v1772_v56  ;;  %v1650_v59 = vpop.f32.mrb[24].mxu0  ;;  %v1459_v61 = vpop.f32.mrb[25].mxu1 }
 0x1ac   : > { %v1651_v60 = vadd.f32 %v1650_v59, %v1457_v57  ;;  %v1652_v63 = vpop.f32.mrb[25].mxu0  ;;  %v1461_v1 = vpop.f32.mrb[26].mxu1 }
 0x1ad   : > { %v1653_v0 = vadd.f32 %v1652_v63, %v1459_v61  ;;  %v1654_v3 = vpop.f32.mrb[26].mxu0  ;;  %v1463_v6 = vpop.f32.mrb[27].mxu1 }
 0x1ae   : > { %v1773_v4 = vadd.f32 %v1651_v60, %v555_v58  ;;  %v1655_v5 = vadd.f32 %v1654_v3, %v1461_v1  ;;  %v1656_v8 = vpop.f32.mrb[27].mxu0  ;;  %v568_v58 = vld [vmem:[#allocation2 + $0x128] sm:$0xff]  ;;  %v570_v3 = vld [vmem:[#allocation2 + $0x138] sm:$0xff] }
 0x1af   : > { %v1774_v9 = vadd.f32 %v1653_v0, %v556_v62  ;;  %v1657_v10 = vadd.f32 %v1656_v8, %v1463_v6  ;;  %v569_v62 = vld [vmem:[#allocation2 + $0x130] sm:$0xff] }
 0x1b0   : > { %1837 = vst [vmem:[#allocation2 + $0xc0] sm:$0xff] %v1773_v4  ;;  %v1775_v11 = vadd.f32 %v1655_v5, %v557_v2 }
 0x1b1   : > { %1838 = vst [vmem:[#allocation2 + $0xc8] sm:$0xff] %v1774_v9  ;;  %v1776_v12 = vadd.f32 %v1657_v10, %v558_v7  ;;  %v571_v10 = vld [vmem:[#allocation2 + $0x140] sm:$0xff] }
 0x1b2   : > { %1839 = vst [vmem:[#allocation2 + $0xd0] sm:$0xff] %v1775_v11  ;;  %v1467_v13 = vpop.f32.mrb[28].mxu1 }
 0x1b3   : > { %1840 = vst [vmem:[#allocation2 + $0xd8] sm:$0xff] %v1776_v12  ;;  %v1660_v15 = vpop.f32.mrb[28].mxu0  ;;  %v1469_v17 = vpop.f32.mrb[29].mxu1 }
 0x1b4   : > { %v1661_v16 = vadd.f32 %v1660_v15, %v1467_v13  ;;  %v1662_v19 = vpop.f32.mrb[29].mxu0  ;;  %v1471_v21 = vpop.f32.mrb[30].mxu1 }
 0x1b5   : > { %v1663_v20 = vadd.f32 %v1662_v19, %v1469_v17  ;;  %v1664_v23 = vpop.f32.mrb[30].mxu0  ;;  %v1473_v26 = vpop.f32.mrb[31].mxu1 }
 0x1b6   : > { %v1777_v24 = vadd.f32 %v1661_v16, %v559_v14  ;;  %v1665_v25 = vadd.f32 %v1664_v23, %v1471_v21  ;;  %v1666_v28 = vpop.f32.mrb[31].mxu0  ;;  %v572_v14 = vld [vmem:[#allocation2 + $0x148] sm:$0xff]  ;;  %v574_v23 = vld [vmem:[#allocation2 + $0x158] sm:$0xff] }
 0x1b7   : > { %v1778_v29 = vadd.f32 %v1663_v20, %v560_v18  ;;  %v1667_v30 = vadd.f32 %v1666_v28, %v1473_v26  ;;  %v573_v18 = vld [vmem:[#allocation2 + $0x150] sm:$0xff] }
 0x1b8   : > { %1841 = vst [vmem:[#allocation2 + $0xe0] sm:$0xff] %v1777_v24  ;;  %v1779_v31 = vadd.f32 %v1665_v25, %v561_v22 }
 0x1b9   : > { %1842 = vst [vmem:[#allocation2 + $0xe8] sm:$0xff] %v1778_v29  ;;  %v1780_v32 = vadd.f32 %v1667_v30, %v562_v27  ;;  %v575_v30 = vld [vmem:[#allocation2 + $0x160] sm:$0xff] }
 0x1ba   : > { %1843 = vst [vmem:[#allocation2 + $0xf0] sm:$0xff] %v1779_v31  ;;  %v1477_v33 = vpop.f32.mrb[32].mxu1 }
 0x1bb   : > { %1844 = vst [vmem:[#allocation2 + $0xf8] sm:$0xff] %v1780_v32  ;;  %v1670_v35 = vpop.f32.mrb[32].mxu0  ;;  %v1479_v37 = vpop.f32.mrb[33].mxu1 }
 0x1bc   : > { %v1671_v36 = vadd.f32 %v1670_v35, %v1477_v33  ;;  %v1672_v39 = vpop.f32.mrb[33].mxu0  ;;  %v1481_v41 = vpop.f32.mrb[34].mxu1 }
 0x1bd   : > { %v1673_v40 = vadd.f32 %v1672_v39, %v1479_v37  ;;  %v1674_v43 = vpop.f32.mrb[34].mxu0  ;;  %v1483_v46 = vpop.f32.mrb[35].mxu1 }
 0x1be   : > { %v1781_v44 = vadd.f32 %v1671_v36, %v563_v34  ;;  %v1675_v45 = vadd.f32 %v1674_v43, %v1481_v41  ;;  %v1676_v48 = vpop.f32.mrb[35].mxu0  ;;  %v576_v34 = vld [vmem:[#allocation2 + $0x168] sm:$0xff]  ;;  %v578_v43 = vld [vmem:[#allocation2 + $0x178] sm:$0xff] }
 0x1bf   : > { %v1782_v49 = vadd.f32 %v1673_v40, %v564_v38  ;;  %v1677_v50 = vadd.f32 %v1676_v48, %v1483_v46  ;;  %v577_v38 = vld [vmem:[#allocation2 + $0x170] sm:$0xff] }
 0x1c0   : > { %1845 = vst [vmem:[#allocation2 + $0x100] sm:$0xff] %v1781_v44  ;;  %v1783_v51 = vadd.f32 %v1675_v45, %v565_v42 }
 0x1c1   : > { %1846 = vst [vmem:[#allocation2 + $0x108] sm:$0xff] %v1782_v49  ;;  %v1784_v52 = vadd.f32 %v1677_v50, %v566_v47  ;;  %v579_v50 = vld [vmem:[#allocation2 + $0x180] sm:$0xff] }
 0x1c2   : > { %1847 = vst [vmem:[#allocation2 + $0x110] sm:$0xff] %v1783_v51  ;;  %v1487_v53 = vpop.f32.mrb[36].mxu1 }
 0x1c3   : > { %1848 = vst [vmem:[#allocation2 + $0x118] sm:$0xff] %v1784_v52  ;;  %v1680_v55 = vpop.f32.mrb[36].mxu0  ;;  %v1489_v57 = vpop.f32.mrb[37].mxu1 }
 0x1c4   : > { %v1681_v56 = vadd.f32 %v1680_v55, %v1487_v53  ;;  %v1682_v59 = vpop.f32.mrb[37].mxu0  ;;  %v1491_v61 = vpop.f32.mrb[38].mxu1 }
 0x1c5   : > { %v1683_v60 = vadd.f32 %v1682_v59, %v1489_v57  ;;  %v1684_v63 = vpop.f32.mrb[38].mxu0  ;;  %v1493_v2 = vpop.f32.mrb[39].mxu1 }
 0x1c6   : > { %v1785_v0 = vadd.f32 %v1681_v56, %v567_v54  ;;  %v1685_v1 = vadd.f32 %v1684_v63, %v1491_v61  ;;  %v1686_v4 = vpop.f32.mrb[39].mxu0  ;;  %v580_v54 = vld [vmem:[#allocation2 + $0x188] sm:$0xff]  ;;  %v582_v63 = vld [vmem:[#allocation2 + $0x198] sm:$0xff] }
 0x1c7   : > { %v1786_v5 = vadd.f32 %v1683_v60, %v568_v58  ;;  %v1687_v6 = vadd.f32 %v1686_v4, %v1493_v2  ;;  %v581_v58 = vld [vmem:[#allocation2 + $0x190] sm:$0xff] }
 0x1c8   : > { %1849 = vst [vmem:[#allocation2 + $0x120] sm:$0xff] %v1785_v0  ;;  %v1787_v7 = vadd.f32 %v1685_v1, %v569_v62 }
 0x1c9   : > { %1850 = vst [vmem:[#allocation2 + $0x128] sm:$0xff] %v1786_v5  ;;  %v1788_v8 = vadd.f32 %v1687_v6, %v570_v3  ;;  %v583_v6 = vld [vmem:[#allocation2 + $0x1a0] sm:$0xff] }
 0x1ca   : > { %1851 = vst [vmem:[#allocation2 + $0x130] sm:$0xff] %v1787_v7  ;;  %v1497_v9 = vpop.f32.mrb[40].mxu1 }
 0x1cb   : > { %1852 = vst [vmem:[#allocation2 + $0x138] sm:$0xff] %v1788_v8  ;;  %v1690_v11 = vpop.f32.mrb[40].mxu0  ;;  %v1499_v13 = vpop.f32.mrb[41].mxu1 }
 0x1cc   : > { %v1691_v12 = vadd.f32 %v1690_v11, %v1497_v9  ;;  %v1692_v15 = vpop.f32.mrb[41].mxu0  ;;  %v1501_v17 = vpop.f32.mrb[42].mxu1 }
 0x1cd   : > { %v1693_v16 = vadd.f32 %v1692_v15, %v1499_v13  ;;  %v1694_v19 = vpop.f32.mrb[42].mxu0  ;;  %v1503_v22 = vpop.f32.mrb[43].mxu1 }
 0x1ce   : > { %v1789_v20 = vadd.f32 %v1691_v12, %v571_v10  ;;  %v1695_v21 = vadd.f32 %v1694_v19, %v1501_v17  ;;  %v1696_v24 = vpop.f32.mrb[43].mxu0  ;;  %v584_v10 = vld [vmem:[#allocation2 + $0x1a8] sm:$0xff]  ;;  %v586_v19 = vld [vmem:[#allocation2 + $0x1b8] sm:$0xff] }
 0x1cf   : > { %v1790_v25 = vadd.f32 %v1693_v16, %v572_v14  ;;  %v1697_v26 = vadd.f32 %v1696_v24, %v1503_v22  ;;  %v585_v14 = vld [vmem:[#allocation2 + $0x1b0] sm:$0xff] }
 0x1d0   : > { %1853 = vst [vmem:[#allocation2 + $0x140] sm:$0xff] %v1789_v20  ;;  %v1791_v27 = vadd.f32 %v1695_v21, %v573_v18 }
 0x1d1   : > { %1854 = vst [vmem:[#allocation2 + $0x148] sm:$0xff] %v1790_v25  ;;  %v1792_v28 = vadd.f32 %v1697_v26, %v574_v23  ;;  %v587_v26 = vld [vmem:[#allocation2 + $0x1c0] sm:$0xff] }
 0x1d2   : > { %1855 = vst [vmem:[#allocation2 + $0x150] sm:$0xff] %v1791_v27  ;;  %v1507_v29 = vpop.f32.mrb[44].mxu1 }
 0x1d3   : > { %1856 = vst [vmem:[#allocation2 + $0x158] sm:$0xff] %v1792_v28  ;;  %v1700_v31 = vpop.f32.mrb[44].mxu0  ;;  %v1509_v33 = vpop.f32.mrb[45].mxu1 }
 0x1d4   : > { %v1701_v32 = vadd.f32 %v1700_v31, %v1507_v29  ;;  %v1702_v35 = vpop.f32.mrb[45].mxu0  ;;  %v1511_v37 = vpop.f32.mrb[46].mxu1 }
 0x1d5   : > { %v1703_v36 = vadd.f32 %v1702_v35, %v1509_v33  ;;  %v1704_v39 = vpop.f32.mrb[46].mxu0  ;;  %v1513_v42 = vpop.f32.mrb[47].mxu1 }
 0x1d6   : > { %v1793_v40 = vadd.f32 %v1701_v32, %v575_v30  ;;  %v1705_v41 = vadd.f32 %v1704_v39, %v1511_v37  ;;  %v1706_v44 = vpop.f32.mrb[47].mxu0  ;;  %v588_v30 = vld [vmem:[#allocation2 + $0x1c8] sm:$0xff]  ;;  %v590_v39 = vld [vmem:[#allocation2 + $0x1d8] sm:$0xff] }
 0x1d7   : > { %v1794_v45 = vadd.f32 %v1703_v36, %v576_v34  ;;  %v1707_v46 = vadd.f32 %v1706_v44, %v1513_v42  ;;  %v589_v34 = vld [vmem:[#allocation2 + $0x1d0] sm:$0xff] }
 0x1d8   : > { %1857 = vst [vmem:[#allocation2 + $0x160] sm:$0xff] %v1793_v40  ;;  %v1795_v47 = vadd.f32 %v1705_v41, %v577_v38 }
 0x1d9   : > { %1858 = vst [vmem:[#allocation2 + $0x168] sm:$0xff] %v1794_v45  ;;  %v1796_v48 = vadd.f32 %v1707_v46, %v578_v43  ;;  %v591_v46 = vld [vmem:[#allocation2 + $0x1e0] sm:$0xff] }
 0x1da   : > { %1859 = vst [vmem:[#allocation2 + $0x170] sm:$0xff] %v1795_v47  ;;  %v1517_v49 = vpop.f32.mrb[48].mxu1 }
 0x1db   : > { %1860 = vst [vmem:[#allocation2 + $0x178] sm:$0xff] %v1796_v48  ;;  %v1710_v51 = vpop.f32.mrb[48].mxu0  ;;  %v1519_v53 = vpop.f32.mrb[49].mxu1 }
 0x1dc   : > { %v1711_v52 = vadd.f32 %v1710_v51, %v1517_v49  ;;  %v1712_v55 = vpop.f32.mrb[49].mxu0  ;;  %v1521_v57 = vpop.f32.mrb[50].mxu1 }
 0x1dd   : > { %v1713_v56 = vadd.f32 %v1712_v55, %v1519_v53  ;;  %v1714_v59 = vpop.f32.mrb[50].mxu0  ;;  %v1523_v62 = vpop.f32.mrb[51].mxu1 }
 0x1de   : > { %v1797_v60 = vadd.f32 %v1711_v52, %v579_v50  ;;  %v1715_v61 = vadd.f32 %v1714_v59, %v1521_v57  ;;  %v1716_v0 = vpop.f32.mrb[51].mxu0  ;;  %v592_v50 = vld [vmem:[#allocation2 + $0x1e8] sm:$0xff]  ;;  %v594_v59 = vld [vmem:[#allocation2 + $0x1f8] sm:$0xff] }
 0x1df   : > { %v1798_v1 = vadd.f32 %v1713_v56, %v580_v54  ;;  %v1717_v2 = vadd.f32 %v1716_v0, %v1523_v62  ;;  %v593_v54 = vld [vmem:[#allocation2 + $0x1f0] sm:$0xff] }
 0x1e0   : > { %1861 = vst [vmem:[#allocation2 + $0x180] sm:$0xff] %v1797_v60  ;;  %v1799_v3 = vadd.f32 %v1715_v61, %v581_v58 }
 0x1e1   : > { %1862 = vst [vmem:[#allocation2 + $0x188] sm:$0xff] %v1798_v1  ;;  %v1800_v4 = vadd.f32 %v1717_v2, %v582_v63  ;;  %v1947_v1 = vlaneseq (!%p2642_p13) }
 0x1e2   : > { %1863 = vst [vmem:[#allocation2 + $0x190] sm:$0xff] %v1799_v3  ;;  %v1527_v5 = vpop.f32.mrb[52].mxu1  ;;  %v1945_v3 = vld [vmem:[%s3676_s2] sm:$0x3] (!%p2642_p13) }
 0x1e3   : > { %1864 = vst [vmem:[#allocation2 + $0x198] sm:$0xff] %v1800_v4  ;;  %v1720_v7 = vpop.f32.mrb[52].mxu0  ;;  %v1529_v9 = vpop.f32.mrb[53].mxu1  ;;  %v1948_v2 = vshrl.u32 (!%p2642_p13), %v1947_v1, 7  ;;  %v2021_v4 = vld [vmem:[%s3677_s3] sm:$0x3] (!%p2642_p13) }
 0x1e4   : > { %v1721_v8 = vadd.f32 %v1720_v7, %v1527_v5  ;;  %v1722_v11 = vpop.f32.mrb[53].mxu0  ;;  %v1531_v13 = vpop.f32.mrb[54].mxu1  ;;  %v1881_v5 = vld [vmem:[#allocation2] sm:$0xff] (!%p2642_p13)  ;;  %v1882_v7 = vld [vmem:[#allocation2 + $0x8] sm:$0xff] (!%p2642_p13) }
 0x1e5   : > { %v1723_v12 = vadd.f32 %v1722_v11, %v1529_v9  ;;  %v1724_v15 = vpop.f32.mrb[54].mxu0  ;;  %v1533_v18 = vpop.f32.mrb[55].mxu1  ;;  %v1883_v9 = vld [vmem:[#allocation2 + $0x10] sm:$0xff] (!%p2642_p13)  ;;  %v1885_v11 = vld [vmem:[#allocation2 + $0x20] sm:$0xff] (!%p2642_p13) }
 0x1e6   : > { %v1801_v16 = vadd.f32 %v1721_v8, %v583_v6  ;;  %v1725_v17 = vadd.f32 %v1724_v15, %v1531_v13  ;;  %v1726_v20 = vpop.f32.mrb[55].mxu0  ;;  %v1949_v6 = vsub.s32 (!%p2642_p13), 0, %v1948_v2  ;;  %v1953_v8 = vsub.s32 (!%p2642_p13), 1, %v1948_v2 }
 0x1e7   : > { %v1802_v21 = vadd.f32 %v1723_v12, %v584_v10  ;;  %v1727_v22 = vadd.f32 %v1726_v20, %v1533_v18  ;;  %v1884_v10 = vld [vmem:[#allocation2 + $0x18] sm:$0xff] (!%p2642_p13) }
 0x1e8   : > { %1865 = vst [vmem:[#allocation2 + $0x1a0] sm:$0xff] %v1801_v16  ;;  %v1803_v23 = vadd.f32 %v1725_v17, %v585_v14  ;;  %v3452_v12 = vrot.slane (!%p2642_p13), %v1945_v3, %v1949_v6  ;;  %v3454_v13 = vrot.slane (!%p2642_p13), %v2021_v4, %v1949_v6  ;;  %v3456_v14 = vrot.slane (!%p2642_p13), %v1945_v3, %v1953_v8  ;;  %v1886_v16 = vld [vmem:[#allocation2 + $0x28] sm:$0xff] (!%p2642_p13)  ;;  %v1887_v17 = vld [vmem:[#allocation2 + $0x30] sm:$0xff] (!%p2642_p13)  ;;  %v1888_v18 = vld [vmem:[#allocation2 + $0x38] sm:$0xff] (!%p2642_p13) }
 0x1e9   : > { %1866 = vst [vmem:[#allocation2 + $0x1a8] sm:$0xff] %v1802_v21  ;;  %v1804_v24 = vadd.f32 %v1727_v22, %v586_v19  ;;  %v3458_v15 = vrot.slane (!%p2642_p13), %v2021_v4, %v1953_v8  ;;  %v1896_v6 = vld [vmem:[#allocation2 + $0x78] sm:$0xff] (!%p2642_p13)  ;;  %v1898_v8 = vld [vmem:[#allocation2 + $0x88] sm:$0xff] (!%p2642_p13) }
 0x1ea   : > { %1867 = vst [vmem:[#allocation2 + $0x1b0] sm:$0xff] %v1803_v23  ;;  %v1537_v25 = vpop.f32.mrb[56].mxu1  ;;  %v1957_v19 = vmul.f32 (!%p2642_p13), %v3452_v12, %v1881_v5  ;;  %v1958_v20 = vmul.f32 (!%p2642_p13), %v3456_v14, %v1882_v7  ;;  %v1959_v21 = vmul.f32 (!%p2642_p13), %v3452_v12, %v1883_v9  ;;  %v1960_v22 = vmul.f32 (!%p2642_p13), %v3456_v14, %v1884_v10  ;;  %v1897_v7 = vld [vmem:[#allocation2 + $0x80] sm:$0xff] (!%p2642_p13) }
 0x1eb   : > { %1868 = vst [vmem:[#allocation2 + $0x1b8] sm:$0xff] %v1804_v24  ;;  %v1730_v27 = vpop.f32.mrb[56].mxu0  ;;  %v1539_v29 = vpop.f32.mrb[57].mxu1  ;;  %v1961_v23 = vmul.f32 (!%p2642_p13), %v3452_v12, %v1885_v11  ;;  %v1962_v24 = vmul.f32 (!%p2642_p13), %v3456_v14, %v1886_v16 }
 0x1ec   : > { %v1731_v28 = vadd.f32 %v1730_v27, %v1537_v25  ;;  %v1732_v31 = vpop.f32.mrb[57].mxu0  ;;  %v1541_v33 = vpop.f32.mrb[58].mxu1  ;;  %v1963_v25 = vmul.f32 (!%p2642_p13), %v3452_v12, %v1887_v17  ;;  %v2033_v27 = vadd.f32 (!%p2642_p13), %v3454_v13, %v1957_v19 }
 0x1ed   : > { %v1733_v32 = vadd.f32 %v1732_v31, %v1539_v29  ;;  %v1734_v35 = vpop.f32.mrb[58].mxu0  ;;  %v1543_v38 = vpop.f32.mrb[59].mxu1  ;;  %v2035_v29 = vadd.f32 (!%p2642_p13), %v3454_v13, %v1959_v21  ;;  %v2037_v31 = vadd.f32 (!%p2642_p13), %v3454_v13, %v1961_v23 }
 0x1ee   : > { %v1805_v36 = vadd.f32 %v1731_v28, %v587_v26  ;;  %v1735_v37 = vadd.f32 %v1734_v35, %v1541_v33  ;;  %v1736_v40 = vpop.f32.mrb[59].mxu0  ;;  %v1964_v26 = vmul.f32 (!%p2642_p13), %v3456_v14, %v1888_v18  ;;  %v2034_v28 = vadd.f32 (!%p2642_p13), %v3458_v15, %v1958_v20 }
 0x1ef   : > { %v1806_v41 = vadd.f32 %v1733_v32, %v588_v30  ;;  %v1737_v42 = vadd.f32 %v1736_v40, %v1543_v38  ;;  %v2036_v30 = vadd.f32 (!%p2642_p13), %v3458_v15, %v1960_v22  ;;  %v2038_v32 = vadd.f32 (!%p2642_p13), %v3458_v15, %v1962_v24  ;;  %v1899_v24 = vld [vmem:[#allocation2 + $0x90] sm:$0xff] (!%p2642_p13) }
 0x1f0   : > { %1869 = vst [vmem:[#allocation2 + $0x1c0] sm:$0xff] %v1805_v36  ;;  %v1807_v43 = vadd.f32 %v1735_v37, %v589_v34  ;;  %v2039_v33 = vadd.f32 (!%p2642_p13), %v3454_v13, %v1963_v25  ;;  %v2040_v34 = vadd.f32 (!%p2642_p13), %v3458_v15, %v1964_v26  ;;  %vm2097_vm0 = vcmp.ge.f32.partialorder (!%p2642_p13), %v2033_v27, 0.0 }
 0x1f1   : > { %1870 = vst [vmem:[#allocation2 + $0x1c8] sm:$0xff] %v1806_v41  ;;  %v1808_v44 = vadd.f32 %v1737_v42, %v590_v39  ;;  %v2161_v35 = vmul.f32 (!%p2642_p13), 0.2, %v2033_v27  ;;  %vm2098_vm1 = vcmp.ge.f32.partialorder (!%p2642_p13), %v2034_v28, 0.0  ;;  %v2162_v36 = vmul.f32 (!%p2642_p13), 0.2, %v2034_v28 }
 0x1f2   : > { %1871 = vst [vmem:[#allocation2 + $0x1d0] sm:$0xff] %v1807_v43  ;;  %v1547_v45 = vpop.f32.mrb[60].mxu1  ;;  %vm2099_vm2 = vcmp.ge.f32.partialorder (!%p2642_p13), %v2035_v29, 0.0  ;;  %v2163_v37 = vmul.f32 (!%p2642_p13), 0.2, %v2035_v29  ;;  %vm2100_vm3 = vcmp.ge.f32.partialorder (!%p2642_p13), %v2036_v30, 0.0  ;;  %v1972_v26 = vmul.f32 (!%p2642_p13), %v3456_v14, %v1896_v6 }
 0x1f3   : > { %1872 = vst [vmem:[#allocation2 + $0x1d8] sm:$0xff] %v1808_v44  ;;  %v1740_v47 = vpop.f32.mrb[60].mxu0  ;;  %v1549_v49 = vpop.f32.mrb[61].mxu1  ;;  %v2164_v38 = vmul.f32 (!%p2642_p13), 0.2, %v2036_v30  ;;  %v2225_v39 = vsel (!%p2642_p13), %vm2097_vm0, %v2033_v27, %v2161_v35  ;;  %v2226_v40 = vsel (!%p2642_p13), %vm2098_vm1, %v2034_v28, %v2162_v36  ;;  %vm2101_vm4 = vcmp.ge.f32.partialorder (!%p2642_p13), %v2037_v31, 0.0 }
 0x1f4   : > { %v1741_v48 = vadd.f32 %v1740_v47, %v1547_v45  ;;  %v1742_v51 = vpop.f32.mrb[61].mxu0  ;;  %v1551_v53 = vpop.f32.mrb[62].mxu1  ;;  %v2165_v41 = vmul.f32 (!%p2642_p13), 0.2, %v2037_v31  ;;  %v1889_v42 = vld [vmem:[#allocation2 + $0x40] sm:$0xff] (!%p2642_p13)  ;;  %v1890_v43 = vld [vmem:[#allocation2 + $0x48] sm:$0xff] (!%p2642_p13)  ;;  %2289 = vst [vmem:[%s3248_s8] sm:$0xff] (!%p2642_p13), %v2225_v39  ;;  %v2227_v44 = vsel (!%p2642_p13), %vm2099_vm2, %v2035_v29, %v2163_v37  ;;  %v1973_v27 = vmul.f32 (!%p2642_p13), %v3452_v12, %v1897_v7 }
 0x1f5   : > { %v1743_v52 = vadd.f32 %v1742_v51, %v1549_v49  ;;  %v1744_v55 = vpop.f32.mrb[62].mxu0  ;;  %v1553_v58 = vpop.f32.mrb[63].mxu1  ;;  %1880 = sbr.rel (%p2642_p13) target bundleno = 581 (0x245), region = 67  ;;  %2290 = vst [vmem:[%s3248_s8 + $0x8] sm:$0xff] (!%p2642_p13), %v2226_v40  ;;  %v2228_v45 = vsel (!%p2642_p13), %vm2100_vm3, %v2036_v30, %v2164_v38  ;;  %vm2102_vm5 = vcmp.ge.f32.partialorder (!%p2642_p13), %v2038_v32, 0.0  ;;  %v1891_v47 = vld [vmem:[#allocation2 + $0x50] sm:$0xff] (!%p2642_p13)  ;;  %v1974_v28 = vmul.f32 (!%p2642_p13), %v3456_v14, %v1898_v8 }
 0x1f6   : > { %v1809_v56 = vadd.f32 %v1741_v48, %v591_v46  ;;  %v1745_v57 = vadd.f32 %v1744_v55, %v1551_v53  ;;  %v1746_v60 = vpop.f32.mrb[63].mxu0  ;;  %v2166_v46 = vmul.f32 (!%p2642_p13), 0.2, %v2038_v32  ;;  %v1892_v48 = vld [vmem:[#allocation2 + $0x58] sm:$0xff] (!%p2642_p13)  ;;  %v1893_v49 = vld [vmem:[#allocation2 + $0x60] sm:$0xff] (!%p2642_p13)  ;;  %2291 = vst [vmem:[%s3248_s8 + $0x10] sm:$0xff] (!%p2642_p13), %v2227_v44  ;;  %v1965_v55 = vmul.f32 (!%p2642_p13), %v3452_v12, %v1889_v42 }
 0x1f7   : > { %v1810_v61 = vadd.f32 %v1743_v52, %v592_v50  ;;  %v1747_v62 = vadd.f32 %v1746_v60, %v1553_v58  ;;  %2292 = vst [vmem:[%s3248_s8 + $0x18] sm:$0xff] (!%p2642_p13), %v2228_v45  ;;  %v2229_v50 = vsel (!%p2642_p13), %vm2101_vm4, %v2037_v31, %v2165_v41  ;;  %vm2103_vm6 = vcmp.ge.f32.partialorder (!%p2642_p13), %v2039_v33, 0.0  ;;  %v1894_v52 = vld [vmem:[#allocation2 + $0x68] sm:$0xff] (!%p2642_p13)  ;;  %v1900_v29 = vld [vmem:[#allocation2 + $0x98] sm:$0xff] (!%p2642_p13)  ;;  %v1901_v30 = vld [vmem:[#allocation2 + $0xa0] sm:$0xff] (!%p2642_p13) }
 0x1f8   : > { %1873 = vst [vmem:[#allocation2 + $0x1e0] sm:$0xff] %v1809_v56  ;;  %v1811_v63 = vadd.f32 %v1745_v57, %v593_v54  ;;  %v2167_v51 = vmul.f32 (!%p2642_p13), 0.2, %v2039_v33  ;;  %vm2104_vm7 = vcmp.ge.f32.partialorder (!%p2642_p13), %v2040_v34, 0.0  ;;  %2293 = vst [vmem:[%s3248_s8 + $0x20] sm:$0xff] (!%p2642_p13), %v2229_v50  ;;  %v2230_v53 = vsel (!%p2642_p13), %vm2102_vm5, %v2038_v32, %v2166_v46  ;;  %v1895_v57 = vld [vmem:[#allocation2 + $0x70] sm:$0xff] (!%p2642_p13) }
 0x1f9   : > { %1874 = vst [vmem:[#allocation2 + $0x1e8] sm:$0xff] %v1810_v61  ;;  %v1812_v0 = vadd.f32 %v1747_v62, %v594_v59  ;;  %v2168_v54 = vmul.f32 (!%p2642_p13), 0.2, %v2040_v34  ;;  %v1966_v56 = vmul.f32 (!%p2642_p13), %v3456_v14, %v1890_v43  ;;  %2294 = vst [vmem:[%s3248_s8 + $0x28] sm:$0xff] (!%p2642_p13), %v2230_v53  ;;  %v1967_v59 = vmul.f32 (!%p2642_p13), %v3452_v12, %v1891_v47  ;;  %v1902_v41 = vld [vmem:[#allocation2 + $0xa8] sm:$0xff] (!%p2642_p13)  ;;  %v1905_v53 = vld [vmem:[#allocation2 + $0xc0] sm:$0xff] (!%p2642_p13) }
 0x1fa   : > { %1875 = vst [vmem:[#allocation2 + $0x1f0] sm:$0xff] %v1811_v63  ;;  %v2231_v58 = vsel (!%p2642_p13), %vm2103_vm6, %v2039_v33, %v2167_v51  ;;  %v1968_v60 = vmul.f32 (!%p2642_p13), %v3456_v14, %v1892_v48  ;;  %v1969_v61 = vmul.f32 (!%p2642_p13), %v3452_v12, %v1893_v49  ;;  %v2041_v63 = vadd.f32 (!%p2642_p13), %v3454_v13, %v1965_v55  ;;  %v1903_v51 = vld [vmem:[#allocation2 + $0xb0] sm:$0xff] (!%p2642_p13) }
 0x1fb   : > { %1876 = vst [vmem:[#allocation2 + $0x1f8] sm:$0xff] %v1812_v0  ;;  %2295 = vst [vmem:[%s3248_s8 + $0x30] sm:$0xff] (!%p2642_p13), %v2231_v58  ;;  %v2232_v62 = vsel (!%p2642_p13), %vm2104_vm7, %v2040_v34, %v2168_v54  ;;  %v2042_v0 = vadd.f32 (!%p2642_p13), %v3458_v15, %v1966_v56  ;;  %v1970_v1 = vmul.f32 (!%p2642_p13), %v3456_v14, %v1894_v52  ;;  %v1904_v52 = vld [vmem:[#allocation2 + $0xb8] sm:$0xff] (!%p2642_p13) }
 0x1fc   : > { %2296 = vst [vmem:[%s3248_s8 + $0x38] sm:$0xff] %v2232_v62  ;;  %v2043_v2 = vadd.f32 %v3454_v13, %v1967_v59  ;;  %v2044_v3 = vadd.f32 %v3458_v15, %v1968_v60  ;;  %v2045_v4 = vadd.f32 %v3454_v13, %v1969_v61  ;;  %v1971_v5 = vmul.f32 %v3452_v12, %v1895_v57  ;;  %v1906_v59 = vld [vmem:[#allocation2 + $0xc8] sm:$0xff] }
 0x1fd   : > { %vm2105_vm8 = vcmp.ge.f32.partialorder %v2041_v63, 0.0  ;;  %v2169_v9 = vmul.f32 0.2, %v2041_v63  ;;  %vm2106_vm9 = vcmp.ge.f32.partialorder %v2042_v0, 0.0  ;;  %v2170_v10 = vmul.f32 0.2, %v2042_v0 }
 0x1fe   : > { %vm2107_vm10 = vcmp.ge.f32.partialorder %v2043_v2, 0.0  ;;  %v2171_v11 = vmul.f32 0.2, %v2043_v2  ;;  %vm2108_vm11 = vcmp.ge.f32.partialorder %v2044_v3, 0.0  ;;  %v2172_v16 = vmul.f32 0.2, %v2044_v3 }
 0x1ff   : > { %v2233_v17 = vsel %vm2105_vm8, %v2041_v63, %v2169_v9  ;;  %v2234_v18 = vsel %vm2106_vm9, %v2042_v0, %v2170_v10  ;;  %vm2109_vm12 = vcmp.ge.f32.partialorder %v2045_v4, 0.0  ;;  %v2173_v19 = vmul.f32 0.2, %v2045_v4  ;;  %v1907_v0 = vld [vmem:[#allocation2 + $0xd0] sm:$0xff] }
 0x200   : > { %2297 = vst [vmem:[%s3248_s8 + $0x40] sm:$0xff] %v2233_v17  ;;  %2298 = vst [vmem:[%s3248_s8 + $0x48] sm:$0xff] %v2234_v18  ;;  %v2235_v20 = vsel %vm2107_vm10, %v2043_v2, %v2171_v11  ;;  %v2236_v21 = vsel %vm2108_vm11, %v2044_v3, %v2172_v16  ;;  %v2046_v22 = vadd.f32 %v3458_v15, %v1970_v1  ;;  %v1908_v1 = vld [vmem:[#allocation2 + $0xd8] sm:$0xff]  ;;  %v1909_v2 = vld [vmem:[#allocation2 + $0xe0] sm:$0xff] }
 0x201   : > { %v2047_v23 = vadd.f32 %v3454_v13, %v1971_v5  ;;  %2299 = vst [vmem:[%s3248_s8 + $0x50] sm:$0xff] %v2235_v20  ;;  %2300 = vst [vmem:[%s3248_s8 + $0x58] sm:$0xff] %v2236_v21  ;;  %v2237_v25 = vsel %vm2109_vm12, %v2045_v4, %v2173_v19  ;;  %v2048_v33 = vadd.f32 %v3458_v15, %v1972_v26 }
 0x202   : > { %2301 = vst [vmem:[%s3248_s8 + $0x60] sm:$0xff] %v2237_v25  ;;  %vm2110_vm13 = vcmp.ge.f32.partialorder %v2046_v22, 0.0  ;;  %v2174_v31 = vmul.f32 0.2, %v2046_v22  ;;  %v2049_v34 = vadd.f32 %v3454_v13, %v1973_v27  ;;  %v2050_v35 = vadd.f32 %v3458_v15, %v1974_v28  ;;  %v1910_v27 = vld [vmem:[#allocation2 + $0xe8] sm:$0xff]  ;;  %v1911_v28 = vld [vmem:[#allocation2 + $0xf0] sm:$0xff] }
 0x203   : > { %vm2111_vm14 = vcmp.ge.f32.partialorder %v2047_v23, 0.0  ;;  %v2175_v32 = vmul.f32 0.2, %v2047_v23  ;;  %v1975_v36 = vmul.f32 %v3452_v12, %v1899_v24  ;;  %v1976_v39 = vmul.f32 %v3456_v14, %v1900_v29  ;;  %v1912_v29 = vld [vmem:[#allocation2 + $0xf8] sm:$0xff] }
 0x204   : > { %v2238_v37 = vsel %vm2110_vm13, %v2046_v22, %v2174_v31  ;;  %v1977_v40 = vmul.f32 %v3452_v12, %v1901_v30  ;;  %vm2112_vm15 = vcmp.ge.f32.partialorder %v2048_v33, 0.0  ;;  %v2176_v42 = vmul.f32 0.2, %v2048_v33 }
 0x205   : > { %v2239_v38 = vsel %vm2111_vm14, %v2047_v23, %v2175_v32  ;;  %2302 = vst [vmem:[%s3248_s8 + $0x68] sm:$0xff] %v2238_v37  ;;  %vm2113_vm0 = vcmp.ge.f32.partialorder %v2049_v34, 0.0  ;;  %v2177_v43 = vmul.f32 0.2, %v2049_v34  ;;  %vm2114_vm1 = vcmp.ge.f32.partialorder %v2050_v35, 0.0  ;;  %v1913_v32 = vld [vmem:[#allocation2 + $0x100] sm:$0xff] }
 0x206   : > { %2303 = vst [vmem:[%s3248_s8 + $0x70] sm:$0xff] %v2239_v38  ;;  %v2178_v44 = vmul.f32 0.2, %v2050_v35  ;;  %v2051_v45 = vadd.f32 %v3454_v13, %v1975_v36  ;;  %v2052_v46 = vadd.f32 %v3458_v15, %v1976_v39  ;;  %v2240_v47 = vsel %vm2112_vm15, %v2048_v33, %v2176_v42  ;;  %v1914_v33 = vld [vmem:[#allocation2 + $0x108] sm:$0xff] }
 0x207   : > { %v2241_v48 = vsel %vm2113_vm0, %v2049_v34, %v2177_v43  ;;  %v2053_v49 = vadd.f32 %v3454_v13, %v1977_v40  ;;  %v1978_v50 = vmul.f32 %v3456_v14, %v1902_v41  ;;  %2304 = vst [vmem:[%s3248_s8 + $0x78] sm:$0xff] %v2240_v47  ;;  %v1979_v61 = vmul.f32 %v3452_v12, %v1903_v51  ;;  %v1915_v40 = vld [vmem:[#allocation2 + $0x110] sm:$0xff]  ;;  %v1916_v41 = vld [vmem:[#allocation2 + $0x118] sm:$0xff] }
 0x208   : > { %2305 = vst [vmem:[%s3248_s8 + $0x80] sm:$0xff] %v2241_v48  ;;  %v2242_v54 = vsel %vm2114_vm1, %v2050_v35, %v2178_v44  ;;  %vm2115_vm2 = vcmp.ge.f32.partialorder %v2051_v45, 0.0  ;;  %v2179_v55 = vmul.f32 0.2, %v2051_v45  ;;  %vm2116_vm3 = vcmp.ge.f32.partialorder %v2052_v46, 0.0 }
 0x209   : > { %2306 = vst [vmem:[%s3248_s8 + $0x88] sm:$0xff] %v2242_v54  ;;  %v2180_v56 = vmul.f32 0.2, %v2052_v46  ;;  %vm2117_vm4 = vcmp.ge.f32.partialorder %v2053_v49, 0.0  ;;  %v2181_v57 = vmul.f32 0.2, %v2053_v49  ;;  %v2054_v58 = vadd.f32 %v3458_v15, %v1978_v50 }
 0x20a   : > { %v2243_v60 = vsel %vm2115_vm2, %v2051_v45, %v2179_v55  ;;  %v1980_v62 = vmul.f32 %v3456_v14, %v1904_v52  ;;  %v1981_v63 = vmul.f32 %v3452_v12, %v1905_v53  ;;  %v2055_v6 = vadd.f32 %v3454_v13, %v1979_v61  ;;  %v1917_v54 = vld [vmem:[#allocation2 + $0x120] sm:$0xff] }
 0x20b   : > { %2307 = vst [vmem:[%s3248_s8 + $0x90] sm:$0xff] %v2243_v60  ;;  %v2244_v3 = vsel %vm2116_vm3, %v2052_v46, %v2180_v56  ;;  %v2245_v4 = vsel %vm2117_vm4, %v2053_v49, %v2181_v57  ;;  %vm2118_vm5 = vcmp.ge.f32.partialorder %v2054_v58, 0.0  ;;  %v2182_v5 = vmul.f32 0.2, %v2054_v58 }
 0x20c   : > { %2308 = vst [vmem:[%s3248_s8 + $0x98] sm:$0xff] %v2244_v3  ;;  %2309 = vst [vmem:[%s3248_s8 + $0xa0] sm:$0xff] %v2245_v4  ;;  %v2056_v7 = vadd.f32 %v3458_v15, %v1980_v62  ;;  %v2057_v8 = vadd.f32 %v3454_v13, %v1981_v63  ;;  %v1982_v9 = vmul.f32 %v3456_v14, %v1906_v59  ;;  %vm2119_vm6 = vcmp.ge.f32.partialorder %v2055_v6, 0.0  ;;  %v1918_v63 = vld [vmem:[#allocation2 + $0x128] sm:$0xff]  ;;  %v1919_v4 = vld [vmem:[#allocation2 + $0x130] sm:$0xff] }
 0x20d   : > { %v2246_v10 = vsel %vm2118_vm5, %v2054_v58, %v2182_v5  ;;  %v1983_v11 = vmul.f32 %v3452_v12, %v1907_v0  ;;  %v1984_v16 = vmul.f32 %v3456_v14, %v1908_v1  ;;  %v1985_v17 = vmul.f32 %v3452_v12, %v1909_v2  ;;  %v1920_v5 = vld [vmem:[#allocation2 + $0x138] sm:$0xff] }
 0x20e   : > { %2310 = vst [vmem:[%s3248_s8 + $0xa8] sm:$0xff] %v2246_v10  ;;  %v2183_v18 = vmul.f32 0.2, %v2055_v6  ;;  %vm2120_vm7 = vcmp.ge.f32.partialorder %v2056_v7, 0.0  ;;  %v2184_v19 = vmul.f32 0.2, %v2056_v7  ;;  %v2058_v21 = vadd.f32 %v3458_v15, %v1982_v9 }
 0x20f   : > { %vm2121_vm8 = vcmp.ge.f32.partialorder %v2057_v8, 0.0  ;;  %v2185_v20 = vmul.f32 0.2, %v2057_v8  ;;  %v2059_v22 = vadd.f32 %v3454_v13, %v1983_v11  ;;  %v2060_v25 = vadd.f32 %v3458_v15, %v1984_v16  ;;  %v1921_v11 = vld [vmem:[#allocation2 + $0x140] sm:$0xff]  ;;  %v1922_v16 = vld [vmem:[#allocation2 + $0x148] sm:$0xff] }
 0x210   : > { %v2247_v23 = vsel %vm2119_vm6, %v2055_v6, %v2183_v18  ;;  %v2248_v24 = vsel %vm2120_vm7, %v2056_v7, %v2184_v19  ;;  %v2061_v26 = vadd.f32 %v3454_v13, %v1985_v17  ;;  %vm2122_vm9 = vcmp.ge.f32.partialorder %v2058_v21, 0.0 }
 0x211   : > { %2311 = vst [vmem:[%s3248_s8 + $0xb0] sm:$0xff] %v2247_v23  ;;  %2312 = vst [vmem:[%s3248_s8 + $0xb8] sm:$0xff] %v2248_v24  ;;  %v2249_v30 = vsel %vm2121_vm8, %v2057_v8, %v2185_v20  ;;  %v2186_v31 = vmul.f32 0.2, %v2058_v21  ;;  %vm2123_vm10 = vcmp.ge.f32.partialorder %v2059_v22, 0.0  ;;  %vm2124_vm11 = vcmp.ge.f32.partialorder %v2060_v25, 0.0 }
 0x212   : > { %2313 = vst [vmem:[%s3248_s8 + $0xc0] sm:$0xff] %v2249_v30  ;;  %v2187_v34 = vmul.f32 0.2, %v2059_v22  ;;  %v2188_v35 = vmul.f32 0.2, %v2060_v25  ;;  %vm2125_vm12 = vcmp.ge.f32.partialorder %v2061_v26, 0.0  ;;  %v1986_v38 = vmul.f32 %v3456_v14, %v1910_v27 }
 0x213   : > { %v2250_v36 = vsel %vm2122_vm9, %v2058_v21, %v2186_v31  ;;  %v2189_v37 = vmul.f32 0.2, %v2061_v26  ;;  %v1987_v39 = vmul.f32 %v3452_v12, %v1911_v28  ;;  %v1988_v44 = vmul.f32 %v3456_v14, %v1912_v29  ;;  %v1923_v21 = vld [vmem:[#allocation2 + $0x150] sm:$0xff] }
 0x214   : > { %2314 = vst [vmem:[%s3248_s8 + $0xc8] sm:$0xff] %v2250_v36  ;;  %v2251_v42 = vsel %vm2123_vm10, %v2059_v22, %v2187_v34  ;;  %v2252_v43 = vsel %vm2124_vm11, %v2060_v25, %v2188_v35  ;;  %v1989_v45 = vmul.f32 %v3452_v12, %v1913_v32  ;;  %v2062_v47 = vadd.f32 %v3458_v15, %v1986_v38  ;;  %v1924_v32 = vld [vmem:[#allocation2 + $0x158] sm:$0xff] }
 0x215   : > { %2315 = vst [vmem:[%s3248_s8 + $0xd0] sm:$0xff] %v2251_v42  ;;  %2316 = vst [vmem:[%s3248_s8 + $0xd8] sm:$0xff] %v2252_v43  ;;  %v2253_v46 = vsel %vm2125_vm12, %v2061_v26, %v2189_v37  ;;  %v2063_v48 = vadd.f32 %v3454_v13, %v1987_v39  ;;  %v1990_v49 = vmul.f32 %v3456_v14, %v1914_v33  ;;  %v1925_v33 = vld [vmem:[#allocation2 + $0x160] sm:$0xff] }
 0x216   : > { %2317 = vst [vmem:[%s3248_s8 + $0xe0] sm:$0xff] %v2253_v46  ;;  %v2064_v50 = vadd.f32 %v3458_v15, %v1988_v44  ;;  %v2065_v51 = vadd.f32 %v3454_v13, %v1989_v45  ;;  %v1991_v52 = vmul.f32 %v3452_v12, %v1915_v40  ;;  %v1992_v53 = vmul.f32 %v3456_v14, %v1916_v41  ;;  %v1926_v44 = vld [vmem:[#allocation2 + $0x168] sm:$0xff]  ;;  %v1927_v45 = vld [vmem:[#allocation2 + $0x170] sm:$0xff] }
 0x217   : > { %vm2126_vm13 = vcmp.ge.f32.partialorder %v2062_v47, 0.0  ;;  %v2190_v55 = vmul.f32 0.2, %v2062_v47  ;;  %vm2127_vm14 = vcmp.ge.f32.partialorder %v2063_v48, 0.0  ;;  %v2191_v56 = vmul.f32 0.2, %v2063_v48 }
 0x218   : > { %vm2128_vm15 = vcmp.ge.f32.partialorder %v2064_v50, 0.0  ;;  %v2192_v57 = vmul.f32 0.2, %v2064_v50  ;;  %vm2129_vm0 = vcmp.ge.f32.partialorder %v2065_v51, 0.0  ;;  %v2193_v58 = vmul.f32 0.2, %v2065_v51 }
 0x219   : > { %v2254_v59 = vsel %vm2126_vm13, %v2062_v47, %v2190_v55  ;;  %v2255_v60 = vsel %vm2127_vm14, %v2063_v48, %v2191_v56  ;;  %v2066_v61 = vadd.f32 %v3458_v15, %v1990_v49  ;;  %v2067_v62 = vadd.f32 %v3454_v13, %v1991_v52  ;;  %v1929_v56 = vld [vmem:[#allocation2 + $0x180] sm:$0xff] }
 0x21a   : > { %2318 = vst [vmem:[%s3248_s8 + $0xe8] sm:$0xff] %v2254_v59  ;;  %2319 = vst [vmem:[%s3248_s8 + $0xf0] sm:$0xff] %v2255_v60  ;;  %v2256_v0 = vsel %vm2128_vm15, %v2064_v50, %v2192_v57  ;;  %v2257_v1 = vsel %vm2129_vm0, %v2065_v51, %v2193_v58  ;;  %v2068_v2 = vadd.f32 %v3458_v15, %v1992_v53  ;;  %v1928_v51 = vld [vmem:[#allocation2 + $0x178] sm:$0xff]  ;;  %v1930_v57 = vld [vmem:[#allocation2 + $0x188] sm:$0xff] }
 0x21b   : > { %v1993_v3 = vmul.f32 %v3452_v12, %v1917_v54  ;;  %2320 = vst [vmem:[%s3248_s8 + $0xf8] sm:$0xff] %v2256_v0  ;;  %2321 = vst [vmem:[%s3248_s8 + $0x100] sm:$0xff] %v2257_v1  ;;  %vm2130_vm1 = vcmp.ge.f32.partialorder %v2066_v61, 0.0  ;;  %v2194_v6 = vmul.f32 0.2, %v2066_v61  ;;  %vm2131_vm2 = vcmp.ge.f32.partialorder %v2067_v62, 0.0 }
 0x21c   : > { %v2195_v7 = vmul.f32 0.2, %v2067_v62  ;;  %vm2132_vm3 = vcmp.ge.f32.partialorder %v2068_v2, 0.0  ;;  %v2196_v8 = vmul.f32 0.2, %v2068_v2  ;;  %v1994_v10 = vmul.f32 %v3456_v14, %v1918_v63  ;;  %v1931_v58 = vld [vmem:[#allocation2 + $0x190] sm:$0xff] }
 0x21d   : > { %v2069_v9 = vadd.f32 %v3454_v13, %v1993_v3  ;;  %v2258_v17 = vsel %vm2130_vm1, %v2066_v61, %v2194_v6  ;;  %v1995_v19 = vmul.f32 %v3452_v12, %v1919_v4  ;;  %v1996_v20 = vmul.f32 %v3456_v14, %v1920_v5  ;;  %v1932_v5 = vld [vmem:[#allocation2 + $0x198] sm:$0xff]  ;;  %v1933_v6 = vld [vmem:[#allocation2 + $0x1a0] sm:$0xff] }
 0x21e   : > { %v2259_v18 = vsel %vm2131_vm2, %v2067_v62, %v2195_v7  ;;  %2322 = vst [vmem:[%s3248_s8 + $0x108] sm:$0xff] %v2258_v17  ;;  %v2260_v22 = vsel %vm2132_vm3, %v2068_v2, %v2196_v8  ;;  %v2070_v24 = vadd.f32 %v3458_v15, %v1994_v10  ;;  %v1997_v27 = vmul.f32 %v3452_v12, %v1921_v11 }
 0x21f   : > { %2323 = vst [vmem:[%s3248_s8 + $0x110] sm:$0xff] %v2259_v18  ;;  %vm2133_vm4 = vcmp.ge.f32.partialorder %v2069_v9, 0.0  ;;  %v2197_v23 = vmul.f32 0.2, %v2069_v9  ;;  %2324 = vst [vmem:[%s3248_s8 + $0x118] sm:$0xff] %v2260_v22  ;;  %v2071_v25 = vadd.f32 %v3454_v13, %v1995_v19  ;;  %v2072_v26 = vadd.f32 %v3458_v15, %v1996_v20 }
 0x220   : > { %v1998_v28 = vmul.f32 %v3456_v14, %v1922_v16  ;;  %vm2134_vm5 = vcmp.ge.f32.partialorder %v2070_v24, 0.0  ;;  %v2198_v30 = vmul.f32 0.2, %v2070_v24  ;;  %v1999_v31 = vmul.f32 %v3452_v12, %v1923_v21 }
 0x221   : > { %v2261_v29 = vsel %vm2133_vm4, %v2069_v9, %v2197_v23  ;;  %vm2135_vm6 = vcmp.ge.f32.partialorder %v2071_v25, 0.0  ;;  %v2199_v34 = vmul.f32 0.2, %v2071_v25  ;;  %vm2136_vm7 = vcmp.ge.f32.partialorder %v2072_v26, 0.0  ;;  %v1934_v23 = vld [vmem:[#allocation2 + $0x1a8] sm:$0xff] }
 0x222   : > { %2325 = vst [vmem:[%s3248_s8 + $0x120] sm:$0xff] %v2261_v29  ;;  %v2200_v35 = vmul.f32 0.2, %v2072_v26  ;;  %v2262_v36 = vsel %vm2134_vm5, %v2070_v24, %v2198_v30  ;;  %v2073_v37 = vadd.f32 %v3454_v13, %v1997_v27  ;;  %v2074_v38 = vadd.f32 %v3458_v15, %v1998_v28  ;;  %v1935_v24 = vld [vmem:[#allocation2 + $0x1b0] sm:$0xff] }
 0x223   : > { %v2075_v39 = vadd.f32 %v3454_v13, %v1999_v31  ;;  %2326 = vst [vmem:[%s3248_s8 + $0x128] sm:$0xff] %v2262_v36  ;;  %v2263_v40 = vsel %vm2135_vm6, %v2071_v25, %v2199_v34  ;;  %v2000_v42 = vmul.f32 %v3456_v14, %v1924_v32  ;;  %v2001_v43 = vmul.f32 %v3452_v12, %v1925_v33  ;;  %v1936_v31 = vld [vmem:[#allocation2 + $0x1b8] sm:$0xff]  ;;  %v1937_v36 = vld [vmem:[#allocation2 + $0x1c0] sm:$0xff] }
 0x224   : > { %v2264_v41 = vsel %vm2136_vm7, %v2072_v26, %v2200_v35  ;;  %2327 = vst [vmem:[%s3248_s8 + $0x130] sm:$0xff] %v2263_v40  ;;  %vm2137_vm8 = vcmp.ge.f32.partialorder %v2073_v37, 0.0  ;;  %v2201_v46 = vmul.f32 0.2, %v2073_v37  ;;  %vm2138_vm9 = vcmp.ge.f32.partialorder %v2074_v38, 0.0 }
 0x225   : > { %2328 = vst [vmem:[%s3248_s8 + $0x138] sm:$0xff] %v2264_v41  ;;  %v2202_v47 = vmul.f32 0.2, %v2074_v38  ;;  %vm2139_vm10 = vcmp.ge.f32.partialorder %v2075_v39, 0.0  ;;  %v2203_v48 = vmul.f32 0.2, %v2075_v39  ;;  %v2076_v49 = vadd.f32 %v3458_v15, %v2000_v42 }
 0x226   : > { %v2077_v50 = vadd.f32 %v3454_v13, %v2001_v43  ;;  %v2265_v52 = vsel %vm2137_vm8, %v2073_v37, %v2201_v46  ;;  %v2002_v54 = vmul.f32 %v3456_v14, %v1926_v44  ;;  %v2003_v55 = vmul.f32 %v3452_v12, %v1927_v45  ;;  %v1938_v37 = vld [vmem:[#allocation2 + $0x1c8] sm:$0xff] }
 0x227   : > { %v2266_v53 = vsel %vm2138_vm9, %v2074_v38, %v2202_v47  ;;  %2329 = vst [vmem:[%s3248_s8 + $0x140] sm:$0xff] %v2265_v52  ;;  %v2267_v59 = vsel %vm2139_vm10, %v2075_v39, %v2203_v48  ;;  %vm2140_vm11 = vcmp.ge.f32.partialorder %v2076_v49, 0.0  ;;  %v2204_v60 = vmul.f32 0.2, %v2076_v49  ;;  %v1939_v38 = vld [vmem:[#allocation2 + $0x1d0] sm:$0xff] }
 0x228   : > { %2330 = vst [vmem:[%s3248_s8 + $0x148] sm:$0xff] %v2266_v53  ;;  %vm2141_vm12 = vcmp.ge.f32.partialorder %v2077_v50, 0.0  ;;  %2331 = vst [vmem:[%s3248_s8 + $0x150] sm:$0xff] %v2267_v59  ;;  %v2205_v61 = vmul.f32 0.2, %v2077_v50  ;;  %v2078_v62 = vadd.f32 %v3458_v15, %v2002_v54  ;;  %v2079_v63 = vadd.f32 %v3454_v13, %v2003_v55 }
 0x229   : > { %v2004_v0 = vmul.f32 %v3456_v14, %v1928_v51  ;;  %v2268_v1 = vsel %vm2140_vm11, %v2076_v49, %v2204_v60  ;;  %v2005_v2 = vmul.f32 %v3452_v12, %v1929_v56  ;;  %v2006_v3 = vmul.f32 %v3456_v14, %v1930_v57  ;;  %v1940_v49 = vld [vmem:[#allocation2 + $0x1d8] sm:$0xff] }
 0x22a   : > { %v2007_v4 = vmul.f32 %v3452_v12, %v1931_v58  ;;  %2332 = vst [vmem:[%s3248_s8 + $0x158] sm:$0xff] %v2268_v1  ;;  %v2269_v7 = vsel %vm2141_vm12, %v2077_v50, %v2205_v61  ;;  %vm2142_vm13 = vcmp.ge.f32.partialorder %v2078_v62, 0.0  ;;  %v2206_v8 = vmul.f32 0.2, %v2078_v62  ;;  %v1941_v50 = vld [vmem:[#allocation2 + $0x1e0] sm:$0xff] }
 0x22b   : > { %vm2143_vm14 = vcmp.ge.f32.partialorder %v2079_v63, 0.0  ;;  %2333 = vst [vmem:[%s3248_s8 + $0x160] sm:$0xff] %v2269_v7  ;;  %v2207_v9 = vmul.f32 0.2, %v2079_v63  ;;  %v2080_v10 = vadd.f32 %v3458_v15, %v2004_v0  ;;  %v2081_v11 = vadd.f32 %v3454_v13, %v2005_v2  ;;  %v1943_v0 = vld [vmem:[#allocation2 + $0x1f0] sm:$0xff]  ;;  %v1944_v7 = vld [vmem:[#allocation2 + $0x1f8] sm:$0xff] }
 0x22c   : > { %v2082_v16 = vadd.f32 %v3458_v15, %v2006_v3  ;;  %v2270_v17 = vsel %vm2142_vm13, %v2078_v62, %v2206_v8  ;;  %v2083_v18 = vadd.f32 %v3454_v13, %v2007_v4  ;;  %v2008_v19 = vmul.f32 %v3456_v14, %v1932_v5 }
 0x22d   : > { %v2009_v20 = vmul.f32 %v3452_v12, %v1933_v6  ;;  %2334 = vst [vmem:[%s3248_s8 + $0x168] sm:$0xff] %v2270_v17  ;;  %v2271_v21 = vsel %vm2143_vm14, %v2079_v63, %v2207_v9  ;;  %vm2144_vm15 = vcmp.ge.f32.partialorder %v2080_v10, 0.0  ;;  %v2208_v22 = vmul.f32 0.2, %v2080_v10  ;;  %v1942_v63 = vld [vmem:[#allocation2 + $0x1e8] sm:$0xff] }
 0x22e   : > { %vm2145_vm0 = vcmp.ge.f32.partialorder %v2081_v11, 0.0  ;;  %2335 = vst [vmem:[%s3248_s8 + $0x170] sm:$0xff] %v2271_v21  ;;  %v2209_v25 = vmul.f32 0.2, %v2081_v11  ;;  %vm2146_vm1 = vcmp.ge.f32.partialorder %v2082_v16, 0.0  ;;  %vm2147_vm2 = vcmp.ge.f32.partialorder %v2083_v18, 0.0 }
 0x22f   : > { %v2210_v26 = vmul.f32 0.2, %v2082_v16  ;;  %v2272_v27 = vsel %vm2144_vm15, %v2080_v10, %v2208_v22  ;;  %v2211_v28 = vmul.f32 0.2, %v2083_v18  ;;  %v2084_v29 = vadd.f32 %v3458_v15, %v2008_v19 }
 0x230   : > { %v2085_v30 = vadd.f32 %v3454_v13, %v2009_v20  ;;  %2336 = vst [vmem:[%s3248_s8 + $0x178] sm:$0xff] %v2272_v27  ;;  %v2273_v32 = vsel %vm2145_vm0, %v2081_v11, %v2209_v25  ;;  %v2010_v34 = vmul.f32 %v3456_v14, %v1934_v23  ;;  %v2011_v35 = vmul.f32 %v3452_v12, %v1935_v24 }
 0x231   : > { %v2274_v33 = vsel %vm2146_vm1, %v2082_v16, %v2210_v26  ;;  %2337 = vst [vmem:[%s3248_s8 + $0x180] sm:$0xff] %v2273_v32  ;;  %v2275_v39 = vsel %vm2147_vm2, %v2083_v18, %v2211_v28  ;;  %vm2148_vm3 = vcmp.ge.f32.partialorder %v2084_v29, 0.0  ;;  %v2212_v40 = vmul.f32 0.2, %v2084_v29 }
 0x232   : > { %2338 = vst [vmem:[%s3248_s8 + $0x188] sm:$0xff] %v2274_v33  ;;  %vm2149_vm4 = vcmp.ge.f32.partialorder %v2085_v30, 0.0  ;;  %2339 = vst [vmem:[%s3248_s8 + $0x190] sm:$0xff] %v2275_v39  ;;  %v2213_v41 = vmul.f32 0.2, %v2085_v30  ;;  %v2086_v42 = vadd.f32 %v3458_v15, %v2010_v34  ;;  %v2087_v43 = vadd.f32 %v3454_v13, %v2011_v35 }
 0x233   : > { %v2012_v44 = vmul.f32 %v3456_v14, %v1936_v31  ;;  %v2276_v45 = vsel %vm2148_vm3, %v2084_v29, %v2212_v40  ;;  %v2013_v46 = vmul.f32 %v3452_v12, %v1937_v36  ;;  %v2014_v47 = vmul.f32 %v3456_v14, %v1938_v37 }
 0x234   : > { %v2015_v48 = vmul.f32 %v3452_v12, %v1939_v38  ;;  %2340 = vst [vmem:[%s3248_s8 + $0x198] sm:$0xff] %v2276_v45  ;;  %v2277_v51 = vsel %vm2149_vm4, %v2085_v30, %v2213_v41  ;;  %vm2150_vm5 = vcmp.ge.f32.partialorder %v2086_v42, 0.0  ;;  %v2214_v52 = vmul.f32 0.2, %v2086_v42 }
 0x235   : > { %vm2151_vm6 = vcmp.ge.f32.partialorder %v2087_v43, 0.0  ;;  %2341 = vst [vmem:[%s3248_s8 + $0x1a0] sm:$0xff] %v2277_v51  ;;  %v2215_v53 = vmul.f32 0.2, %v2087_v43  ;;  %v2088_v54 = vadd.f32 %v3458_v15, %v2012_v44  ;;  %v2089_v55 = vadd.f32 %v3454_v13, %v2013_v46 }
 0x236   : > { %v2090_v56 = vadd.f32 %v3458_v15, %v2014_v47  ;;  %v2278_v57 = vsel %vm2150_vm5, %v2086_v42, %v2214_v52  ;;  %v2091_v58 = vadd.f32 %v3454_v13, %v2015_v48  ;;  %v2016_v59 = vmul.f32 %v3456_v14, %v1940_v49 }
 0x237   : > { %v2017_v60 = vmul.f32 %v3452_v12, %v1941_v50  ;;  %2342 = vst [vmem:[%s3248_s8 + $0x1a8] sm:$0xff] %v2278_v57  ;;  %v2279_v61 = vsel %vm2151_vm6, %v2087_v43, %v2215_v53  ;;  %vm2152_vm7 = vcmp.ge.f32.partialorder %v2088_v54, 0.0  ;;  %v2216_v62 = vmul.f32 0.2, %v2088_v54 }
 0x238   : > { %vm2153_vm8 = vcmp.ge.f32.partialorder %v2089_v55, 0.0  ;;  %2343 = vst [vmem:[%s3248_s8 + $0x1b0] sm:$0xff] %v2279_v61  ;;  %v2217_v1 = vmul.f32 0.2, %v2089_v55  ;;  %vm2154_vm9 = vcmp.ge.f32.partialorder %v2090_v56, 0.0  ;;  %vm2155_vm10 = vcmp.ge.f32.partialorder %v2091_v58, 0.0 }
 0x239   : > { %v2218_v2 = vmul.f32 0.2, %v2090_v56  ;;  %v2280_v3 = vsel %vm2152_vm7, %v2088_v54, %v2216_v62  ;;  %v2219_v4 = vmul.f32 0.2, %v2091_v58  ;;  %v2092_v5 = vadd.f32 %v3458_v15, %v2016_v59 }
 0x23a   : > { %v2093_v6 = vadd.f32 %v3454_v13, %v2017_v60  ;;  %2344 = vst [vmem:[%s3248_s8 + $0x1b8] sm:$0xff] %v2280_v3  ;;  %v2281_v8 = vsel %vm2153_vm8, %v2089_v55, %v2217_v1  ;;  %v2018_v10 = vmul.f32 %v3456_v14, %v1942_v63  ;;  %v2019_v11 = vmul.f32 %v3452_v12, %v1943_v0 }
 0x23b   : > { %v2282_v9 = vsel %vm2154_vm9, %v2090_v56, %v2218_v2  ;;  %2345 = vst [vmem:[%s3248_s8 + $0x1c0] sm:$0xff] %v2281_v8  ;;  %v2283_v16 = vsel %vm2155_vm10, %v2091_v58, %v2219_v4  ;;  %vm2156_vm11 = vcmp.ge.f32.partialorder %v2092_v5, 0.0  ;;  %v2220_v17 = vmul.f32 0.2, %v2092_v5 }
 0x23c   : > { %2346 = vst [vmem:[%s3248_s8 + $0x1c8] sm:$0xff] %v2282_v9  ;;  %vm2157_vm12 = vcmp.ge.f32.partialorder %v2093_v6, 0.0  ;;  %2347 = vst [vmem:[%s3248_s8 + $0x1d0] sm:$0xff] %v2283_v16  ;;  %v2221_v18 = vmul.f32 0.2, %v2093_v6  ;;  %v2094_v19 = vadd.f32 %v3458_v15, %v2018_v10  ;;  %v2095_v20 = vadd.f32 %v3454_v13, %v2019_v11 }
 0x23d   : > { %v2020_v21 = vmul.f32 %v3456_v14, %v1944_v7  ;;  %v2284_v22 = vsel %vm2156_vm11, %v2092_v5, %v2220_v17 }
 0x23e   : > { %2348 = vst [vmem:[%s3248_s8 + $0x1d8] sm:$0xff] %v2284_v22  ;;  %v2285_v12 = vsel %vm2157_vm12, %v2093_v6, %v2221_v18  ;;  %vm2158_vm13 = vcmp.ge.f32.partialorder %v2094_v19, 0.0  ;;  %v2222_v23 = vmul.f32 0.2, %v2094_v19  ;;  %vm2159_vm14 = vcmp.ge.f32.partialorder %v2095_v20, 0.0 }
 0x23f   : > { %2349 = vst [vmem:[%s3248_s8 + $0x1e0] sm:$0xff] %v2285_v12  ;;  %v2223_v24 = vmul.f32 0.2, %v2095_v20  ;;  %v2096_v25 = vadd.f32 %v3458_v15, %v2020_v21 }
 0x240   : > { %v2286_v26 = vsel %vm2158_vm13, %v2094_v19, %v2222_v23 }
 0x241   : > { %2350 = vst [vmem:[%s3248_s8 + $0x1e8] sm:$0xff] %v2286_v26  ;;  %v2287_v27 = vsel %vm2159_vm14, %v2095_v20, %v2223_v24  ;;  %vm2160_vm15 = vcmp.ge.f32.partialorder %v2096_v25, 0.0  ;;  %v2224_v28 = vmul.f32 0.2, %v2096_v25 }
 0x242   : > { %2351 = vst [vmem:[%s3248_s8 + $0x1f0] sm:$0xff] %v2287_v27 }
 0x243   : > { %v2288_v13 = vsel %vm2160_vm15, %v2096_v25, %v2224_v28 }
 0x244   : > { %2352 = vst [vmem:[%s3248_s8 + $0x1f8] sm:$0xff] %v2288_v13 }
 0x245 PF: > { %s14_s21 = sadd.s32 1, %s3015_s21   ;;  %s3679_s15 = smov %s2995_s16 }
 0x246   : > { %p11_p0 = scmp.ge.s32.totalorder %s14_s21, 10   ;;  %s3680_s16 = smov %s3094_s28 }
 0x247   : > { %s3681_s17 = smov %s3007_s19  ;;  %s3682_s18 = smov %s3011_s20 }
 0x248   : > { %s3683_s19 = smov %s3686_s22  ;;  %s3684_s20 = smov %s3690_s23 }
 0x249   :  { %13 = sbr.rel (!%p11_p0) target bundleno = 4 (0x4), region = 111 }

// kernel: cnn_discriminator_forward.7
= control target key start
LH: loop header
LB: loop body
LE: loop exit
PB: predicated region body
PF: predicated region fallthrough
CT: control target
= control target key end

     0   :  { %s3206_s0 = inlined_call_operand.vmem [shape: bf16[128,4096], index: 0, kind: input, shape index: {}]   ;;  %s3207_s1 = inlined_call_operand.vmem [shape: bf16[4096,512], index: 1, kind: input, shape index: {}]   ;;  %s3208_s2 = inlined_call_operand.vmem [shape: f32[1,512], index: 2, kind: input, shape index: {}]   ;;  %s3209_s3 = inlined_call_operand.vmem [shape: f32[1,512], index: 3, kind: input, shape index: {}]   ;;  %s3210_s4 = inlined_call_operand.vmem [shape: f32[128,512], index: 4, kind: output, shape index: {}]  }
   0x1   :  { %3213 = sst [smem:[#allocation8_spill]] %s3206_s0 }
   0x2   :  { %3214 = sst [smem:[#allocation9_spill]] %s3207_s1 }
   0x3   :  { %s2553_s15 = smov 0   ;;  %s2555_s16 = smov 0  }
   0x4   :  { %s2557_s17 = smov 0   ;;  %s2559_s18 = smov 0  }
   0x5   :  { %s2561_s19 = smov 0   ;;  %s2563_s20 = smov 0  }
   0x6   :  { %s2565_s21 = smov 0   ;;  %s2567_s22 = smov 0  }
   0x7   :  { %s2569_s23 = smov 0   ;;  %s2571_s24 = smov 0  }
   0x8   :  { %s2573_s25 = smov 0  }
   0x9 LB: > { %s2050_s26 = sadd.s32 4294967295, %s2525_s25   ;;  %s26_s27 = sadd.s32 1, %s2517_s23  ;;  %s2525_s25 = sphi %s2573_s25, %s14_s25   ;;  %s2521_s24 = sphi %s2571_s24, %s3233_s24   ;;  %s2517_s23 = sphi %s2569_s23, %s3232_s23   ;;  %s2513_s22 = sphi %s2567_s22, %s3231_s22   ;;  %s2509_s21 = sphi %s2565_s21, %s3230_s21   ;;  %s2505_s20 = sphi %s2563_s20, %s3229_s20   ;;  %s2501_s19 = sphi %s2561_s19, %s3228_s19   ;;  %s2497_s18 = sphi %s2559_s18, %s3227_s18   ;;  %s2493_s17 = sphi %s2557_s17, %s3226_s17   ;;  %s2489_s16 = sphi %s2555_s16, %s3225_s16   ;;  %s2485_s15 = sphi %s2553_s15, %s3224_s15  }
   0xa   : > { %p27_p0 = scmp.ge.s32.totalorder %s26_s27, 8  ;;  %s29_s28 = sadd.s32 1, %s2521_s24 }
   0xb   : > { %s42_s29 = sadd.s32 1, %s2505_s20  ;;  %p49_p1 = scmp.ne.s32.totalorder %s2505_s20, %s2501_s19 }
   0xc   : > { %s3235_s27 = smov (%p27_p0, %s26_s27), 0  ;;  %s3237_s28 = smov (!%p27_p0, %s29_s28), %s2521_s24 }
   0xd   : > { %3215 = sst [smem:[#allocation6_spill]] %s3235_s27  ;;  %s38_s30 = ssub.s32 %s2517_s23, %s3235_s27 }
   0xe   : > { %p50_p2 = scmp.eq.s32.totalorder %s2525_s25, 0  ;;  %p31_p3 = scmp.ge.s32.totalorder %s3237_s28, 2 }
   0xf   : > { %p40_p4 = scmp.eq.s32.totalorder %s38_s30, 0  ;;  %s70_s6 = sadd.s32 1, %s2497_s18 }
  0x10   : > { %p2620_p5 = por %p50_p2, %p49_p1  ;;  %s3239_s28 = smov (%p31_p3, %s3237_s28), 0 }
  0x11   : > { %3217 = sst [smem:[#allocation7_spill]] %s3239_s28  ;;  %s66_s8 = ssub.s32 %s2521_s24, %s3239_s28 }
  0x12   : > { %s2628_s7 = scalar_select %p40_p4, %s2505_s20, %s42_s29  }
  0x13   : > { %p77_p6 = scmp.ne.s32.totalorder %s2497_s18, %s2493_s17  ;;  %s67_s9 = sor.u32 %s66_s8, %s38_s30 }
  0x14   : > { %p148_p7 = scmp.eq.s32.totalorder %s66_s8, 0  ;;  %p68_p8 = scmp.eq.s32.totalorder %s67_s9, 0 }
  0x15   : > { %p2634_p9 = por %p77_p6, %p50_p2  ;;  %s150_s11 = sadd.s32 1, %s2489_s16 }
  0x16   : > { %p160_p10 = scmp.ne.s32.totalorder %s2489_s16, %s2485_s15  ;;  %p161_p11 = scmp.eq.s32.totalorder %s2050_s26, 15 }
  0x17   : > { %s2642_s12 = scalar_select %p68_p8, %s2497_s18, %s70_s6  }
  0x18   : > { %s2645_s13 = scalar_select %p148_p7, %s2489_s16, %s150_s11  }
  0x19   : > { %p2647_p12 = por %p161_p11, %p160_p10  ;;  %p2053_p13 = scmp.ge.s32.totalorder %s2525_s25, 16 }
  0x1b   : > { %183 = sbr.rel (%p2053_p13) target bundleno = 102 (0x66), region = 16 }
  0x22   : > { %186 = sbr.rel (!%p2620_p5) target bundleno = 60 (0x3c), region = 20  ;;  %s188_s29 = sand.u32 (%p2620_p5), 1, %s2505_s20  }
  0x23   : > { %s2171_s30 = sshll.u32 (%p2620_p5), %s2517_s23, 4  ;;  %s2054_s8 = sshll.u32 (%p2620_p5), %s188_s29, 8 }
  0x24   : > { %s3220_s0 = sld [smem:[#allocation8_spill]] (%p2620_p5)  ;;  %s2664_s26 = scalar_lea.vmem (%p2620_p5), [#allocation3], %s2054_s8 }
  0x2a   : > { %s2659_s11 = scalar_lea.vmem %s3220_s0, %s2171_s30 }
  0x2b   : > { %v209_v0 = vld [vmem:[%s2659_s11] sm:$0xff]  ;;  %v211_v1 = vld [vmem:[%s2659_s11 + $0x8] sm:$0xff] }
  0x2c   : > { %v213_v2 = vld [vmem:[%s2659_s11 + $0x80] sm:$0xff]  ;;  %210 = vst [vmem:[%s2664_s26] sm:$0xff] %v209_v0  ;;  %212 = vst [vmem:[%s2664_s26 + $0x8] sm:$0xff] %v211_v1  ;;  %v215_v3 = vld [vmem:[%s2659_s11 + $0x88] sm:$0xff] }
  0x2d   : > { %214 = vst [vmem:[%s2664_s26 + $0x10] sm:$0xff] %v213_v2  ;;  %v217_v4 = vld [vmem:[%s2659_s11 + $0x100] sm:$0xff]  ;;  %v219_v5 = vld [vmem:[%s2659_s11 + $0x108] sm:$0xff]  ;;  %216 = vst [vmem:[%s2664_s26 + $0x18] sm:$0xff] %v215_v3 }
  0x2e   : > { %218 = vst [vmem:[%s2664_s26 + $0x20] sm:$0xff] %v217_v4  ;;  %220 = vst [vmem:[%s2664_s26 + $0x28] sm:$0xff] %v219_v5  ;;  %v221_v6 = vld [vmem:[%s2659_s11 + $0x180] sm:$0xff]  ;;  %v223_v7 = vld [vmem:[%s2659_s11 + $0x188] sm:$0xff] }
  0x2f   : > { %v225_v8 = vld [vmem:[%s2659_s11 + $0x200] sm:$0xff]  ;;  %222 = vst [vmem:[%s2664_s26 + $0x30] sm:$0xff] %v221_v6  ;;  %224 = vst [vmem:[%s2664_s26 + $0x38] sm:$0xff] %v223_v7  ;;  %v227_v9 = vld [vmem:[%s2659_s11 + $0x208] sm:$0xff] }
  0x30   : > { %226 = vst [vmem:[%s2664_s26 + $0x40] sm:$0xff] %v225_v8  ;;  %v229_v10 = vld [vmem:[%s2659_s11 + $0x280] sm:$0xff]  ;;  %v231_v11 = vld [vmem:[%s2659_s11 + $0x288] sm:$0xff]  ;;  %228 = vst [vmem:[%s2664_s26 + $0x48] sm:$0xff] %v227_v9 }
  0x31   : > { %230 = vst [vmem:[%s2664_s26 + $0x50] sm:$0xff] %v229_v10  ;;  %232 = vst [vmem:[%s2664_s26 + $0x58] sm:$0xff] %v231_v11  ;;  %v233_v12 = vld [vmem:[%s2659_s11 + $0x300] sm:$0xff]  ;;  %v235_v13 = vld [vmem:[%s2659_s11 + $0x308] sm:$0xff] }
  0x32   : > { %v237_v14 = vld [vmem:[%s2659_s11 + $0x380] sm:$0xff]  ;;  %234 = vst [vmem:[%s2664_s26 + $0x60] sm:$0xff] %v233_v12  ;;  %236 = vst [vmem:[%s2664_s26 + $0x68] sm:$0xff] %v235_v13  ;;  %v239_v15 = vld [vmem:[%s2659_s11 + $0x388] sm:$0xff] }
  0x33   : > { %238 = vst [vmem:[%s2664_s26 + $0x70] sm:$0xff] %v237_v14  ;;  %v241_v16 = vld [vmem:[%s2659_s11 + $0x400] sm:$0xff]  ;;  %v243_v17 = vld [vmem:[%s2659_s11 + $0x408] sm:$0xff]  ;;  %240 = vst [vmem:[%s2664_s26 + $0x78] sm:$0xff] %v239_v15 }
  0x34   : > { %242 = vst [vmem:[%s2664_s26 + $0x80] sm:$0xff] %v241_v16  ;;  %244 = vst [vmem:[%s2664_s26 + $0x88] sm:$0xff] %v243_v17  ;;  %v245_v18 = vld [vmem:[%s2659_s11 + $0x480] sm:$0xff]  ;;  %v247_v19 = vld [vmem:[%s2659_s11 + $0x488] sm:$0xff] }
  0x35   : > { %v249_v20 = vld [vmem:[%s2659_s11 + $0x500] sm:$0xff]  ;;  %246 = vst [vmem:[%s2664_s26 + $0x90] sm:$0xff] %v245_v18  ;;  %248 = vst [vmem:[%s2664_s26 + $0x98] sm:$0xff] %v247_v19  ;;  %v251_v21 = vld [vmem:[%s2659_s11 + $0x508] sm:$0xff] }
  0x36   : > { %250 = vst [vmem:[%s2664_s26 + $0xa0] sm:$0xff] %v249_v20  ;;  %v253_v22 = vld [vmem:[%s2659_s11 + $0x580] sm:$0xff]  ;;  %v255_v23 = vld [vmem:[%s2659_s11 + $0x588] sm:$0xff]  ;;  %252 = vst [vmem:[%s2664_s26 + $0xa8] sm:$0xff] %v251_v21 }
  0x37   : > { %254 = vst [vmem:[%s2664_s26 + $0xb0] sm:$0xff] %v253_v22  ;;  %256 = vst [vmem:[%s2664_s26 + $0xb8] sm:$0xff] %v255_v23  ;;  %v257_v24 = vld [vmem:[%s2659_s11 + $0x600] sm:$0xff]  ;;  %v259_v25 = vld [vmem:[%s2659_s11 + $0x608] sm:$0xff] }
  0x38   : > { %v261_v26 = vld [vmem:[%s2659_s11 + $0x680] sm:$0xff]  ;;  %258 = vst [vmem:[%s2664_s26 + $0xc0] sm:$0xff] %v257_v24  ;;  %260 = vst [vmem:[%s2664_s26 + $0xc8] sm:$0xff] %v259_v25  ;;  %v263_v27 = vld [vmem:[%s2659_s11 + $0x688] sm:$0xff] }
  0x39   : > { %262 = vst [vmem:[%s2664_s26 + $0xd0] sm:$0xff] %v261_v26  ;;  %v265_v28 = vld [vmem:[%s2659_s11 + $0x700] sm:$0xff]  ;;  %v267_v29 = vld [vmem:[%s2659_s11 + $0x708] sm:$0xff]  ;;  %264 = vst [vmem:[%s2664_s26 + $0xd8] sm:$0xff] %v263_v27 }
  0x3a   : > { %266 = vst [vmem:[%s2664_s26 + $0xe0] sm:$0xff] %v265_v28  ;;  %268 = vst [vmem:[%s2664_s26 + $0xe8] sm:$0xff] %v267_v29  ;;  %v269_v30 = vld [vmem:[%s2659_s11 + $0x780] sm:$0xff]  ;;  %v271_v31 = vld [vmem:[%s2659_s11 + $0x788] sm:$0xff] }
  0x3b   : > { %270 = vst [vmem:[%s2664_s26 + $0xf0] sm:$0xff] %v269_v30  ;;  %272 = vst [vmem:[%s2664_s26 + $0xf8] sm:$0xff] %v271_v31 }
  0x3c PF: > { %278 = sbr.rel (!%p2634_p9) target bundleno = 102 (0x66), region = 43  ;;  %s280_s5 = sand.u32 (%p2634_p9), 1, %s2497_s18  }
  0x3d   : > { %s2059_s29 = sshll.u32 (%p2634_p9), %s2521_s24, 1  ;;  %s2057_s30 = sshll.u32 (%p2634_p9), %s280_s5, 9 }
  0x3e   : > { %s2172_s8 = sshll.u32 (%p2634_p9), %s2517_s23, 8  ;;  %s3221_s1 = sld [smem:[#allocation9_spill]] (%p2634_p9) }
  0x3f   : > { %s286_s6 = sadd.s32 (%p2634_p9), %s2172_s8, %s2059_s29  ;;  %s2740_s10 = scalar_lea.vmem (%p2634_p9), [#allocation4], %s2057_s30 }
  0x40   : > { %s2061_s9 = sshll.u32 (%p2634_p9), %s286_s6, 2 }
  0x44   : > { %s2735_s27 = scalar_lea.vmem %s3221_s1, %s2061_s9 }
  0x45   : > { %v442_v32 = vld [vmem:[%s2735_s27] sm:$0xff]  ;;  %v444_v33 = vld [vmem:[%s2735_s27 + $0x10] sm:$0xff] }
  0x46   : > { %v446_v34 = vld [vmem:[%s2735_s27 + $0x20] sm:$0xff]  ;;  %443 = vst [vmem:[%s2740_s10] sm:$0xff] %v442_v32  ;;  %445 = vst [vmem:[%s2740_s10 + $0x8] sm:$0xff] %v444_v33  ;;  %v448_v35 = vld [vmem:[%s2735_s27 + $0x30] sm:$0xff] }
  0x47   : > { %447 = vst [vmem:[%s2740_s10 + $0x10] sm:$0xff] %v446_v34  ;;  %v450_v36 = vld [vmem:[%s2735_s27 + $0x40] sm:$0xff]  ;;  %v452_v37 = vld [vmem:[%s2735_s27 + $0x50] sm:$0xff]  ;;  %449 = vst [vmem:[%s2740_s10 + $0x18] sm:$0xff] %v448_v35 }
  0x48   : > { %451 = vst [vmem:[%s2740_s10 + $0x20] sm:$0xff] %v450_v36  ;;  %453 = vst [vmem:[%s2740_s10 + $0x28] sm:$0xff] %v452_v37  ;;  %v454_v38 = vld [vmem:[%s2735_s27 + $0x60] sm:$0xff]  ;;  %v456_v39 = vld [vmem:[%s2735_s27 + $0x70] sm:$0xff] }
  0x49   : > { %v458_v40 = vld [vmem:[%s2735_s27 + $0x80] sm:$0xff]  ;;  %455 = vst [vmem:[%s2740_s10 + $0x30] sm:$0xff] %v454_v38  ;;  %457 = vst [vmem:[%s2740_s10 + $0x38] sm:$0xff] %v456_v39  ;;  %v460_v41 = vld [vmem:[%s2735_s27 + $0x90] sm:$0xff] }
  0x4a   : > { %459 = vst [vmem:[%s2740_s10 + $0x40] sm:$0xff] %v458_v40  ;;  %v462_v42 = vld [vmem:[%s2735_s27 + $0xa0] sm:$0xff]  ;;  %v464_v43 = vld [vmem:[%s2735_s27 + $0xb0] sm:$0xff]  ;;  %461 = vst [vmem:[%s2740_s10 + $0x48] sm:$0xff] %v460_v41 }
  0x4b   : > { %463 = vst [vmem:[%s2740_s10 + $0x50] sm:$0xff] %v462_v42  ;;  %465 = vst [vmem:[%s2740_s10 + $0x58] sm:$0xff] %v464_v43  ;;  %v466_v44 = vld [vmem:[%s2735_s27 + $0xc0] sm:$0xff]  ;;  %v468_v45 = vld [vmem:[%s2735_s27 + $0xd0] sm:$0xff] }
  0x4c   : > { %v470_v46 = vld [vmem:[%s2735_s27 + $0xe0] sm:$0xff]  ;;  %467 = vst [vmem:[%s2740_s10 + $0x60] sm:$0xff] %v466_v44  ;;  %469 = vst [vmem:[%s2740_s10 + $0x68] sm:$0xff] %v468_v45  ;;  %v472_v47 = vld [vmem:[%s2735_s27 + $0xf0] sm:$0xff] }
  0x4d   : > { %471 = vst [vmem:[%s2740_s10 + $0x70] sm:$0xff] %v470_v46  ;;  %v474_v48 = vld [vmem:[%s2735_s27 + $0x100] sm:$0xff]  ;;  %v476_v49 = vld [vmem:[%s2735_s27 + $0x110] sm:$0xff]  ;;  %473 = vst [vmem:[%s2740_s10 + $0x78] sm:$0xff] %v472_v47 }
  0x4e   : > { %475 = vst [vmem:[%s2740_s10 + $0x80] sm:$0xff] %v474_v48  ;;  %477 = vst [vmem:[%s2740_s10 + $0x88] sm:$0xff] %v476_v49  ;;  %v478_v50 = vld [vmem:[%s2735_s27 + $0x120] sm:$0xff]  ;;  %v480_v51 = vld [vmem:[%s2735_s27 + $0x130] sm:$0xff] }
  0x4f   : > { %v482_v52 = vld [vmem:[%s2735_s27 + $0x140] sm:$0xff]  ;;  %479 = vst [vmem:[%s2740_s10 + $0x90] sm:$0xff] %v478_v50  ;;  %481 = vst [vmem:[%s2740_s10 + $0x98] sm:$0xff] %v480_v51  ;;  %v484_v53 = vld [vmem:[%s2735_s27 + $0x150] sm:$0xff] }
  0x50   : > { %483 = vst [vmem:[%s2740_s10 + $0xa0] sm:$0xff] %v482_v52  ;;  %v486_v54 = vld [vmem:[%s2735_s27 + $0x160] sm:$0xff]  ;;  %v488_v55 = vld [vmem:[%s2735_s27 + $0x170] sm:$0xff]  ;;  %485 = vst [vmem:[%s2740_s10 + $0xa8] sm:$0xff] %v484_v53 }
  0x51   : > { %487 = vst [vmem:[%s2740_s10 + $0xb0] sm:$0xff] %v486_v54  ;;  %489 = vst [vmem:[%s2740_s10 + $0xb8] sm:$0xff] %v488_v55  ;;  %v490_v56 = vld [vmem:[%s2735_s27 + $0x180] sm:$0xff]  ;;  %v492_v57 = vld [vmem:[%s2735_s27 + $0x190] sm:$0xff] }
  0x52   : > { %v494_v58 = vld [vmem:[%s2735_s27 + $0x1a0] sm:$0xff]  ;;  %491 = vst [vmem:[%s2740_s10 + $0xc0] sm:$0xff] %v490_v56  ;;  %493 = vst [vmem:[%s2740_s10 + $0xc8] sm:$0xff] %v492_v57  ;;  %v496_v59 = vld [vmem:[%s2735_s27 + $0x1b0] sm:$0xff] }
  0x53   : > { %495 = vst [vmem:[%s2740_s10 + $0xd0] sm:$0xff] %v494_v58  ;;  %v498_v60 = vld [vmem:[%s2735_s27 + $0x1c0] sm:$0xff]  ;;  %v500_v61 = vld [vmem:[%s2735_s27 + $0x1d0] sm:$0xff]  ;;  %497 = vst [vmem:[%s2740_s10 + $0xd8] sm:$0xff] %v496_v59 }
  0x54   : > { %499 = vst [vmem:[%s2740_s10 + $0xe0] sm:$0xff] %v498_v60  ;;  %501 = vst [vmem:[%s2740_s10 + $0xe8] sm:$0xff] %v500_v61  ;;  %v502_v62 = vld [vmem:[%s2735_s27 + $0x1e0] sm:$0xff]  ;;  %v504_v63 = vld [vmem:[%s2735_s27 + $0x1f0] sm:$0xff] }
  0x55   : > { %v506_v0 = vld [vmem:[%s2735_s27 + $0x200] sm:$0xff]  ;;  %503 = vst [vmem:[%s2740_s10 + $0xf0] sm:$0xff] %v502_v62  ;;  %505 = vst [vmem:[%s2740_s10 + $0xf8] sm:$0xff] %v504_v63  ;;  %v508_v1 = vld [vmem:[%s2735_s27 + $0x210] sm:$0xff] }
  0x56   : > { %507 = vst [vmem:[%s2740_s10 + $0x100] sm:$0xff] %v506_v0  ;;  %v510_v2 = vld [vmem:[%s2735_s27 + $0x220] sm:$0xff]  ;;  %v512_v3 = vld [vmem:[%s2735_s27 + $0x230] sm:$0xff]  ;;  %509 = vst [vmem:[%s2740_s10 + $0x108] sm:$0xff] %v508_v1 }
  0x57   : > { %511 = vst [vmem:[%s2740_s10 + $0x110] sm:$0xff] %v510_v2  ;;  %513 = vst [vmem:[%s2740_s10 + $0x118] sm:$0xff] %v512_v3  ;;  %v514_v4 = vld [vmem:[%s2735_s27 + $0x240] sm:$0xff]  ;;  %v516_v5 = vld [vmem:[%s2735_s27 + $0x250] sm:$0xff] }
  0x58   : > { %v518_v6 = vld [vmem:[%s2735_s27 + $0x260] sm:$0xff]  ;;  %515 = vst [vmem:[%s2740_s10 + $0x120] sm:$0xff] %v514_v4  ;;  %517 = vst [vmem:[%s2740_s10 + $0x128] sm:$0xff] %v516_v5  ;;  %v520_v7 = vld [vmem:[%s2735_s27 + $0x270] sm:$0xff] }
  0x59   : > { %519 = vst [vmem:[%s2740_s10 + $0x130] sm:$0xff] %v518_v6  ;;  %v522_v8 = vld [vmem:[%s2735_s27 + $0x280] sm:$0xff]  ;;  %v524_v9 = vld [vmem:[%s2735_s27 + $0x290] sm:$0xff]  ;;  %521 = vst [vmem:[%s2740_s10 + $0x138] sm:$0xff] %v520_v7 }
  0x5a   : > { %523 = vst [vmem:[%s2740_s10 + $0x140] sm:$0xff] %v522_v8  ;;  %525 = vst [vmem:[%s2740_s10 + $0x148] sm:$0xff] %v524_v9  ;;  %v526_v10 = vld [vmem:[%s2735_s27 + $0x2a0] sm:$0xff]  ;;  %v528_v11 = vld [vmem:[%s2735_s27 + $0x2b0] sm:$0xff] }
  0x5b   : > { %v530_v12 = vld [vmem:[%s2735_s27 + $0x2c0] sm:$0xff]  ;;  %527 = vst [vmem:[%s2740_s10 + $0x150] sm:$0xff] %v526_v10  ;;  %529 = vst [vmem:[%s2740_s10 + $0x158] sm:$0xff] %v528_v11  ;;  %v532_v13 = vld [vmem:[%s2735_s27 + $0x2d0] sm:$0xff] }
  0x5c   : > { %531 = vst [vmem:[%s2740_s10 + $0x160] sm:$0xff] %v530_v12  ;;  %v534_v14 = vld [vmem:[%s2735_s27 + $0x2e0] sm:$0xff]  ;;  %v536_v15 = vld [vmem:[%s2735_s27 + $0x2f0] sm:$0xff]  ;;  %533 = vst [vmem:[%s2740_s10 + $0x168] sm:$0xff] %v532_v13 }
  0x5d   : > { %535 = vst [vmem:[%s2740_s10 + $0x170] sm:$0xff] %v534_v14  ;;  %537 = vst [vmem:[%s2740_s10 + $0x178] sm:$0xff] %v536_v15  ;;  %v538_v16 = vld [vmem:[%s2735_s27 + $0x300] sm:$0xff]  ;;  %v540_v17 = vld [vmem:[%s2735_s27 + $0x310] sm:$0xff] }
  0x5e   : > { %v542_v18 = vld [vmem:[%s2735_s27 + $0x320] sm:$0xff]  ;;  %539 = vst [vmem:[%s2740_s10 + $0x180] sm:$0xff] %v538_v16  ;;  %541 = vst [vmem:[%s2740_s10 + $0x188] sm:$0xff] %v540_v17  ;;  %v544_v19 = vld [vmem:[%s2735_s27 + $0x330] sm:$0xff] }
  0x5f   : > { %543 = vst [vmem:[%s2740_s10 + $0x190] sm:$0xff] %v542_v18  ;;  %v546_v20 = vld [vmem:[%s2735_s27 + $0x340] sm:$0xff]  ;;  %v548_v21 = vld [vmem:[%s2735_s27 + $0x350] sm:$0xff]  ;;  %545 = vst [vmem:[%s2740_s10 + $0x198] sm:$0xff] %v544_v19 }
  0x60   : > { %547 = vst [vmem:[%s2740_s10 + $0x1a0] sm:$0xff] %v546_v20  ;;  %549 = vst [vmem:[%s2740_s10 + $0x1a8] sm:$0xff] %v548_v21  ;;  %v550_v22 = vld [vmem:[%s2735_s27 + $0x360] sm:$0xff]  ;;  %v552_v23 = vld [vmem:[%s2735_s27 + $0x370] sm:$0xff] }
  0x61   : > { %v554_v24 = vld [vmem:[%s2735_s27 + $0x380] sm:$0xff]  ;;  %551 = vst [vmem:[%s2740_s10 + $0x1b0] sm:$0xff] %v550_v22  ;;  %553 = vst [vmem:[%s2740_s10 + $0x1b8] sm:$0xff] %v552_v23  ;;  %v556_v25 = vld [vmem:[%s2735_s27 + $0x390] sm:$0xff] }
  0x62   : > { %555 = vst [vmem:[%s2740_s10 + $0x1c0] sm:$0xff] %v554_v24  ;;  %v558_v26 = vld [vmem:[%s2735_s27 + $0x3a0] sm:$0xff]  ;;  %v560_v27 = vld [vmem:[%s2735_s27 + $0x3b0] sm:$0xff]  ;;  %557 = vst [vmem:[%s2740_s10 + $0x1c8] sm:$0xff] %v556_v25 }
  0x63   : > { %559 = vst [vmem:[%s2740_s10 + $0x1d0] sm:$0xff] %v558_v26  ;;  %561 = vst [vmem:[%s2740_s10 + $0x1d8] sm:$0xff] %v560_v27  ;;  %v562_v28 = vld [vmem:[%s2735_s27 + $0x3c0] sm:$0xff]  ;;  %v564_v29 = vld [vmem:[%s2735_s27 + $0x3d0] sm:$0xff] }
  0x64   : > { %v566_v30 = vld [vmem:[%s2735_s27 + $0x3e0] sm:$0xff]  ;;  %563 = vst [vmem:[%s2740_s10 + $0x1e0] sm:$0xff] %v562_v28  ;;  %565 = vst [vmem:[%s2740_s10 + $0x1e8] sm:$0xff] %v564_v29  ;;  %v568_v31 = vld [vmem:[%s2735_s27 + $0x3f0] sm:$0xff] }
  0x65   : > { %567 = vst [vmem:[%s2740_s10 + $0x1f0] sm:$0xff] %v566_v30  ;;  %569 = vst [vmem:[%s2740_s10 + $0x1f8] sm:$0xff] %v568_v31 }
  0x66 PF: > { %p2062_p0 = scmp.ge.s32.totalorder %s2525_s25, 1  ;;  %p590_p1 = scmp.lt.s32.totalorder %s2525_s25, 17 }
  0x68   : > { %p591_p2 = pnand %p2062_p0, %p590_p1 }
  0x69   : > { %s597_s0 = sand.u32 (!%p591_p2), 1, %s2501_s19   ;;  %s604_s28 = sand.u32 (!%p591_p2), 1, %s2493_s17  }
  0x6a   : > { %594 = sbr.rel (%p591_p2) target bundleno = 522 (0x20a), region = 89  ;;  %s2063_s11 = sshll.u32 (!%p591_p2), %s597_s0, 8 }
  0x6b   : > { %s2064_s26 = sshll.u32 (!%p591_p2), %s604_s28, 9  ;;  %s637_s5 = sand.u32 (!%p591_p2), 1, %s2485_s15  }
  0x6c   : > { %s2066_s29 = sshll.u32 (!%p591_p2), %s2513_s22, 1  ;;  %s2065_s27 = sshll.u32 (!%p591_p2), %s637_s5, 8 }
  0x6d   : > { %p645_p3 = scmp.lt.s32.totalorder (!%p591_p2), %s2066_s29, 3  ;;  %s2883_s19 = scalar_lea.vmem (!%p591_p2), [#allocation3], %s2063_s11 }
  0x6e   : > { %s2885_s17 = scalar_lea.vmem (!%p591_p2), [#allocation4], %s2064_s26  ;;  %s2887_s15 = scalar_lea.vmem (!%p591_p2), [#allocation5], %s2065_s27 }
  0x6f   : > { %p2068_p4 = scmp.ne.s32.totalorder (!%p591_p2), %s2509_s21, 0 }
  0x71   : > { %s3241_s29 = smov (!%p645_p3, %s2066_s29), 3  ;;  %659 = sbr.rel (%p2068_p4) target bundleno = 131 (0x83), region = 101 }
  0x72   : > { %s647_s6 = scalar_lea.vmem %s3208_s2, %s3241_s29  ;;  %s652_s1 = scalar_lea.vmem %s3209_s3, %s3241_s29  ;;  %v2527_v32 = vmov (!%p2068_p4), 0.0  }
  0x73   : > { %660 = vst [vmem:[#allocation2] sm:$0xff] (!%p2068_p4), %v2527_v32  ;;  %661 = vst [vmem:[#allocation2 + $0x8] sm:$0xff] (!%p2068_p4), %v2527_v32 }
  0x74   : > { %662 = vst [vmem:[#allocation2 + $0x10] sm:$0xff] (!%p2068_p4), %v2527_v32  ;;  %663 = vst [vmem:[#allocation2 + $0x18] sm:$0xff] (!%p2068_p4), %v2527_v32 }
  0x75   : > { %664 = vst [vmem:[#allocation2 + $0x20] sm:$0xff] (!%p2068_p4), %v2527_v32  ;;  %665 = vst [vmem:[#allocation2 + $0x28] sm:$0xff] (!%p2068_p4), %v2527_v32 }
  0x76   : > { %666 = vst [vmem:[#allocation2 + $0x30] sm:$0xff] (!%p2068_p4), %v2527_v32  ;;  %667 = vst [vmem:[#allocation2 + $0x38] sm:$0xff] (!%p2068_p4), %v2527_v32 }
  0x77   : > { %668 = vst [vmem:[#allocation2 + $0x40] sm:$0xff] (!%p2068_p4), %v2527_v32  ;;  %669 = vst [vmem:[#allocation2 + $0x48] sm:$0xff] (!%p2068_p4), %v2527_v32 }
  0x78   : > { %670 = vst [vmem:[#allocation2 + $0x50] sm:$0xff] %v2527_v32  ;;  %671 = vst [vmem:[#allocation2 + $0x58] sm:$0xff] %v2527_v32 }
  0x79   : > { %672 = vst [vmem:[#allocation2 + $0x60] sm:$0xff] %v2527_v32  ;;  %673 = vst [vmem:[#allocation2 + $0x68] sm:$0xff] %v2527_v32 }
  0x7a   : > { %674 = vst [vmem:[#allocation2 + $0x70] sm:$0xff] %v2527_v32  ;;  %675 = vst [vmem:[#allocation2 + $0x78] sm:$0xff] %v2527_v32 }
  0x7b   : > { %676 = vst [vmem:[#allocation2 + $0x80] sm:$0xff] %v2527_v32  ;;  %677 = vst [vmem:[#allocation2 + $0x88] sm:$0xff] %v2527_v32 }
  0x7c   : > { %678 = vst [vmem:[#allocation2 + $0x90] sm:$0xff] %v2527_v32  ;;  %679 = vst [vmem:[#allocation2 + $0x98] sm:$0xff] %v2527_v32 }
  0x7d   : > { %680 = vst [vmem:[#allocation2 + $0xa0] sm:$0xff] %v2527_v32  ;;  %681 = vst [vmem:[#allocation2 + $0xa8] sm:$0xff] %v2527_v32 }
  0x7e   : > { %682 = vst [vmem:[#allocation2 + $0xb0] sm:$0xff] %v2527_v32  ;;  %683 = vst [vmem:[#allocation2 + $0xb8] sm:$0xff] %v2527_v32 }
  0x7f   : > { %684 = vst [vmem:[#allocation2 + $0xc0] sm:$0xff] %v2527_v32  ;;  %685 = vst [vmem:[#allocation2 + $0xc8] sm:$0xff] %v2527_v32 }
  0x80   : > { %686 = vst [vmem:[#allocation2 + $0xd0] sm:$0xff] %v2527_v32  ;;  %687 = vst [vmem:[#allocation2 + $0xd8] sm:$0xff] %v2527_v32 }
  0x81   : > { %688 = vst [vmem:[#allocation2 + $0xe0] sm:$0xff] %v2527_v32  ;;  %689 = vst [vmem:[#allocation2 + $0xe8] sm:$0xff] %v2527_v32 }
  0x82   : > { %690 = vst [vmem:[#allocation2 + $0xf0] sm:$0xff] %v2527_v32  ;;  %691 = vst [vmem:[#allocation2 + $0xf8] sm:$0xff] %v2527_v32 }
  0x83 PF: > { %v2295_v33 = vld [vmem:[%s2885_s17 + $0x4] ss:$8 sps:$4 sm:$0xff]   ;;  %v2299_v35 = vld [vmem:[%s2885_s17] ss:$8 sps:$4 sm:$0xff]   ;;  %v2301_v37 = vld [vmem:[%s2885_s17 + $0x14] ss:$8 sps:$4 sm:$0xff]  }
  0x84   : > { %v2297_v34 = vld [vmem:[%s2885_s17 + $0x104] ss:$8 sps:$4 sm:$0xff]   ;;  %1300 = vmatprep.subr.bf16.mxu1 %v2295_v33  ;;  %v2300_v36 = vld [vmem:[%s2885_s17 + $0x100] ss:$8 sps:$4 sm:$0xff]   ;;  %v2303_v38 = vld [vmem:[%s2885_s17 + $0x114] ss:$8 sps:$4 sm:$0xff]  }
  0x85   : > { %1413 = vmatprep.subr.bf16.mxu0 %v2297_v34  ;;  %1301 = vmatpush1.bf16.msra.mxu1 %v2299_v35  ;;  %v2305_v39 = vld [vmem:[%s2885_s17 + $0x10] ss:$8 sps:$4 sm:$0xff]   ;;  %v2307_v41 = vld [vmem:[%s2885_s17 + $0x24] ss:$8 sps:$4 sm:$0xff]   ;;  %v2311_v43 = vld [vmem:[%s2885_s17 + $0x20] ss:$8 sps:$4 sm:$0xff]  }
  0x86   : > { %1414 = vmatpush1.bf16.msra.mxu0 %v2300_v36  ;;  %1302 = vmatprep.subr.bf16.mxu1 %v2301_v37  ;;  %v2306_v40 = vld [vmem:[%s2885_s17 + $0x110] ss:$8 sps:$4 sm:$0xff]   ;;  %v2309_v42 = vld [vmem:[%s2885_s17 + $0x124] ss:$8 sps:$4 sm:$0xff]   ;;  %v2312_v44 = vld [vmem:[%s2885_s17 + $0x120] ss:$8 sps:$4 sm:$0xff]  }
  0x87   : > { %1415 = vmatprep.subr.bf16.mxu0 %v2303_v38  ;;  %v2313_v45 = vld [vmem:[%s2885_s17 + $0x34] ss:$8 sps:$4 sm:$0xff]   ;;  %v2317_v47 = vld [vmem:[%s2885_s17 + $0x30] ss:$8 sps:$4 sm:$0xff]   ;;  %v2319_v49 = vld [vmem:[%s2885_s17 + $0x44] ss:$8 sps:$4 sm:$0xff]  }
  0x88   : > { %v2315_v46 = vld [vmem:[%s2885_s17 + $0x134] ss:$8 sps:$4 sm:$0xff]   ;;  %v2318_v48 = vld [vmem:[%s2885_s17 + $0x130] ss:$8 sps:$4 sm:$0xff]   ;;  %v2321_v50 = vld [vmem:[%s2885_s17 + $0x144] ss:$8 sps:$4 sm:$0xff]  }
  0x89   : > { %1303 = vmatpush1.bf16.msra.mxu1 %v2305_v39  ;;  %v2323_v51 = vld [vmem:[%s2885_s17 + $0x40] ss:$8 sps:$4 sm:$0xff]   ;;  %v2325_v53 = vld [vmem:[%s2885_s17 + $0x54] ss:$8 sps:$4 sm:$0xff]   ;;  %v2329_v55 = vld [vmem:[%s2885_s17 + $0x50] ss:$8 sps:$4 sm:$0xff]  }
  0x8a   : > { %1416 = vmatpush1.bf16.msra.mxu0 %v2306_v40  ;;  %1304 = vmatprep.subr.bf16.mxu1 %v2307_v41  ;;  %v2324_v52 = vld [vmem:[%s2885_s17 + $0x140] ss:$8 sps:$4 sm:$0xff]   ;;  %v2327_v54 = vld [vmem:[%s2885_s17 + $0x154] ss:$8 sps:$4 sm:$0xff]   ;;  %v2330_v56 = vld [vmem:[%s2885_s17 + $0x150] ss:$8 sps:$4 sm:$0xff]  }
  0x8b   : > { %1417 = vmatprep.subr.bf16.mxu0 %v2309_v42  ;;  %v2331_v57 = vld [vmem:[%s2885_s17 + $0x64] ss:$8 sps:$4 sm:$0xff]   ;;  %v2335_v59 = vld [vmem:[%s2885_s17 + $0x60] ss:$8 sps:$4 sm:$0xff]   ;;  %v2337_v61 = vld [vmem:[%s2885_s17 + $0x74] ss:$8 sps:$4 sm:$0xff]  }
  0x8c   : > { %v2333_v58 = vld [vmem:[%s2885_s17 + $0x164] ss:$8 sps:$4 sm:$0xff]   ;;  %v2336_v60 = vld [vmem:[%s2885_s17 + $0x160] ss:$8 sps:$4 sm:$0xff]   ;;  %v2339_v62 = vld [vmem:[%s2885_s17 + $0x174] ss:$8 sps:$4 sm:$0xff]  }
  0x8d   : > { %1305 = vmatpush1.bf16.msra.mxu1 %v2311_v43  ;;  %v2341_v63 = vld [vmem:[%s2885_s17 + $0x70] ss:$8 sps:$4 sm:$0xff]   ;;  %v2343_v1 = vld [vmem:[%s2885_s17 + $0x84] ss:$8 sps:$4 sm:$0xff]   ;;  %v2347_v3 = vld [vmem:[%s2885_s17 + $0x80] ss:$8 sps:$4 sm:$0xff]  }
  0x8e   : > { %1418 = vmatpush1.bf16.msra.mxu0 %v2312_v44  ;;  %1306 = vmatprep.subr.bf16.mxu1 %v2313_v45  ;;  %v2342_v0 = vld [vmem:[%s2885_s17 + $0x170] ss:$8 sps:$4 sm:$0xff]   ;;  %v2345_v2 = vld [vmem:[%s2885_s17 + $0x184] ss:$8 sps:$4 sm:$0xff]   ;;  %v2348_v4 = vld [vmem:[%s2885_s17 + $0x180] ss:$8 sps:$4 sm:$0xff]  }
  0x8f   : > { %1419 = vmatprep.subr.bf16.mxu0 %v2315_v46  ;;  %v2349_v5 = vld [vmem:[%s2885_s17 + $0x94] ss:$8 sps:$4 sm:$0xff]   ;;  %v2353_v7 = vld [vmem:[%s2885_s17 + $0x90] ss:$8 sps:$4 sm:$0xff]   ;;  %v2355_v9 = vld [vmem:[%s2885_s17 + $0xa4] ss:$8 sps:$4 sm:$0xff]  }
  0x90   : > { %v2351_v6 = vld [vmem:[%s2885_s17 + $0x194] ss:$8 sps:$4 sm:$0xff]   ;;  %v2354_v8 = vld [vmem:[%s2885_s17 + $0x190] ss:$8 sps:$4 sm:$0xff]   ;;  %v2357_v10 = vld [vmem:[%s2885_s17 + $0x1a4] ss:$8 sps:$4 sm:$0xff]  }
  0x91   : > { %1307 = vmatpush1.bf16.msra.mxu1 %v2317_v47  ;;  %v2359_v11 = vld [vmem:[%s2885_s17 + $0xa0] ss:$8 sps:$4 sm:$0xff]   ;;  %v2361_v13 = vld [vmem:[%s2885_s17 + $0xb4] ss:$8 sps:$4 sm:$0xff]   ;;  %v2365_v15 = vld [vmem:[%s2885_s17 + $0xb0] ss:$8 sps:$4 sm:$0xff]  }
  0x92   : > { %1420 = vmatpush1.bf16.msra.mxu0 %v2318_v48  ;;  %1308 = vmatprep.subr.bf16.mxu1 %v2319_v49  ;;  %v2360_v12 = vld [vmem:[%s2885_s17 + $0x1a0] ss:$8 sps:$4 sm:$0xff]   ;;  %v2363_v14 = vld [vmem:[%s2885_s17 + $0x1b4] ss:$8 sps:$4 sm:$0xff]   ;;  %v2366_v16 = vld [vmem:[%s2885_s17 + $0x1b0] ss:$8 sps:$4 sm:$0xff]  }
  0x93   : > { %1421 = vmatprep.subr.bf16.mxu0 %v2321_v50  ;;  %v2367_v17 = vld [vmem:[%s2885_s17 + $0xc4] ss:$8 sps:$4 sm:$0xff]   ;;  %v2371_v21 = vld [vmem:[%s2885_s17 + $0xc0] ss:$8 sps:$4 sm:$0xff]   ;;  %v2373_v23 = vld [vmem:[%s2885_s17 + $0xd4] ss:$8 sps:$4 sm:$0xff]  }
  0x94   : > { %v2393_v18 = vld [vmem:[%s2883_s19 + $0x4] ss:$16 sps:$4 sm:$0xff]   ;;  %v2396_v20 = vld [vmem:[%s2883_s19 + $0xc] ss:$16 sps:$4 sm:$0xff]   ;;  %v2372_v22 = vld [vmem:[%s2885_s17 + $0x1c0] ss:$8 sps:$4 sm:$0xff]  }
  0x95   : > { %1309 = vmatpush1.bf16.msra.mxu1 %v2323_v51  ;;  %v2369_v19 = vld [vmem:[%s2885_s17 + $0x1c4] ss:$8 sps:$4 sm:$0xff]   ;;  %1332 = vmatprep.mubr.bf16.mxu1 %v2393_v18  ;;  %v2375_v24 = vld [vmem:[%s2885_s17 + $0x1d4] ss:$8 sps:$4 sm:$0xff]   ;;  %v2377_v25 = vld [vmem:[%s2885_s17 + $0xd0] ss:$8 sps:$4 sm:$0xff]  }
  0x96   : > { %1422 = vmatpush1.bf16.msra.mxu0 %v2324_v52  ;;  %1310 = vmatprep.subr.bf16.mxu1 %v2325_v53  ;;  %v2378_v26 = vld [vmem:[%s2885_s17 + $0x1d0] ss:$8 sps:$4 sm:$0xff]   ;;  %v2379_v27 = vld [vmem:[%s2885_s17 + $0xe4] ss:$8 sps:$4 sm:$0xff]   ;;  %v2383_v29 = vld [vmem:[%s2885_s17 + $0xe0] ss:$8 sps:$4 sm:$0xff]  }
  0x97   : > { %1423 = vmatprep.subr.bf16.mxu0 %v2327_v54  ;;  %1445 = vmatprep.mubr.bf16.mxu0 %v2396_v20  ;;  %v2381_v28 = vld [vmem:[%s2885_s17 + $0x1e4] ss:$8 sps:$4 sm:$0xff]   ;;  %v2384_v30 = vld [vmem:[%s2885_s17 + $0x1e0] ss:$8 sps:$4 sm:$0xff]   ;;  %v2385_v31 = vld [vmem:[%s2885_s17 + $0xf4] ss:$8 sps:$4 sm:$0xff]  }
  0x98   : > { %v2387_v32 = vld [vmem:[%s2885_s17 + $0x1f4] ss:$8 sps:$4 sm:$0xff]   ;;  %v2389_v33 = vld [vmem:[%s2885_s17 + $0xf0] ss:$8 sps:$4 sm:$0xff]   ;;  %p2165_p5 = scmp.ne.s32.totalorder %s2509_s21, 7 }
  0x99   : > { %1311 = vmatpush1.bf16.msra.mxu1 %v2329_v55  ;;  %v2390_v34 = vld [vmem:[%s2885_s17 + $0x1f0] ss:$8 sps:$4 sm:$0xff]   ;;  %v2397_v37 = vld [vmem:[%s2883_s19 + $0x24] ss:$16 sps:$4 sm:$0xff]   ;;  %v2399_v38 = vld [vmem:[%s2883_s19 + $0x2c] ss:$16 sps:$4 sm:$0xff]  }
  0x9a   : > { %1424 = vmatpush1.bf16.msra.mxu0 %v2330_v56  ;;  %1312 = vmatprep.subr.bf16.mxu1 %v2331_v57  ;;  %v2391_v35 = vld [vmem:[%s2883_s19] ss:$16 sps:$4 sm:$0xff]   ;;  %v2394_v36 = vld [vmem:[%s2883_s19 + $0x8] ss:$16 sps:$4 sm:$0xff]   ;;  %v2403_v41 = vld [vmem:[%s2883_s19 + $0x44] ss:$16 sps:$4 sm:$0xff]  }
  0x9b   : > { %1425 = vmatprep.subr.bf16.mxu0 %v2333_v58  ;;  %v2401_v39 = vld [vmem:[%s2883_s19 + $0x20] ss:$16 sps:$4 sm:$0xff]   ;;  %v2402_v40 = vld [vmem:[%s2883_s19 + $0x28] ss:$16 sps:$4 sm:$0xff]   ;;  %v2405_v42 = vld [vmem:[%s2883_s19 + $0x4c] ss:$16 sps:$4 sm:$0xff]  }
  0x9c   : > { %v2407_v43 = vld [vmem:[%s2883_s19 + $0x40] ss:$16 sps:$4 sm:$0xff]   ;;  %v2408_v44 = vld [vmem:[%s2883_s19 + $0x48] ss:$16 sps:$4 sm:$0xff]   ;;  %v2409_v45 = vld [vmem:[%s2883_s19 + $0x64] ss:$16 sps:$4 sm:$0xff]  }
  0x9d   : > { %1313 = vmatpush1.bf16.msra.mxu1 %v2335_v59  ;;  %v2411_v46 = vld [vmem:[%s2883_s19 + $0x6c] ss:$16 sps:$4 sm:$0xff]   ;;  %v2413_v47 = vld [vmem:[%s2883_s19 + $0x60] ss:$16 sps:$4 sm:$0xff]   ;;  %v2414_v48 = vld [vmem:[%s2883_s19 + $0x68] ss:$16 sps:$4 sm:$0xff]  }
  0x9e   : > { %1426 = vmatpush1.bf16.msra.mxu0 %v2336_v60  ;;  %1314 = vmatprep.subr.bf16.mxu1 %v2337_v61  ;;  %v2415_v49 = vld [vmem:[%s2883_s19 + $0x84] ss:$16 sps:$4 sm:$0xff]   ;;  %v2417_v50 = vld [vmem:[%s2883_s19 + $0x8c] ss:$16 sps:$4 sm:$0xff]   ;;  %v2419_v51 = vld [vmem:[%s2883_s19 + $0x80] ss:$16 sps:$4 sm:$0xff]  }
  0x9f   : > { %1427 = vmatprep.subr.bf16.mxu0 %v2339_v62  ;;  %v2420_v52 = vld [vmem:[%s2883_s19 + $0x88] ss:$16 sps:$4 sm:$0xff]   ;;  %v2421_v53 = vld [vmem:[%s2883_s19 + $0xa4] ss:$16 sps:$4 sm:$0xff]   ;;  %v2423_v54 = vld [vmem:[%s2883_s19 + $0xac] ss:$16 sps:$4 sm:$0xff]  }
  0xa0   : > { %v2425_v55 = vld [vmem:[%s2883_s19 + $0xa0] ss:$16 sps:$4 sm:$0xff]   ;;  %v2426_v56 = vld [vmem:[%s2883_s19 + $0xa8] ss:$16 sps:$4 sm:$0xff]   ;;  %v2427_v57 = vld [vmem:[%s2883_s19 + $0xc4] ss:$16 sps:$4 sm:$0xff]  }
  0xa1   : > { %1315 = vmatpush1.bf16.msra.mxu1 %v2341_v63  ;;  %v2429_v58 = vld [vmem:[%s2883_s19 + $0xcc] ss:$16 sps:$4 sm:$0xff]   ;;  %v2431_v59 = vld [vmem:[%s2883_s19 + $0xc0] ss:$16 sps:$4 sm:$0xff]   ;;  %v2432_v60 = vld [vmem:[%s2883_s19 + $0xc8] ss:$16 sps:$4 sm:$0xff]  }
  0xa2   : > { %1428 = vmatpush1.bf16.msra.mxu0 %v2342_v0  ;;  %1316 = vmatprep.subr.bf16.mxu1 %v2343_v1  ;;  %v2433_v61 = vld [vmem:[%s2883_s19 + $0xe4] ss:$16 sps:$4 sm:$0xff]   ;;  %v2435_v62 = vld [vmem:[%s2883_s19 + $0xec] ss:$16 sps:$4 sm:$0xff]   ;;  %v2437_v63 = vld [vmem:[%s2883_s19 + $0xe0] ss:$16 sps:$4 sm:$0xff]  }
  0xa3   : > { %1429 = vmatprep.subr.bf16.mxu0 %v2345_v2  ;;  %v2438_v0 = vld [vmem:[%s2883_s19 + $0xe8] ss:$16 sps:$4 sm:$0xff]   ;;  %v692_v2 = vld [vmem:[#allocation2] sm:$0xff] }
  0xa5   : > { %1317 = vmatpush1.bf16.msra.mxu1 %v2347_v3 }
  0xa6   : > { %1430 = vmatpush1.bf16.msra.mxu0 %v2348_v4  ;;  %1318 = vmatprep.subr.bf16.mxu1 %v2349_v5 }
  0xa7   : > { %1431 = vmatprep.subr.bf16.mxu0 %v2351_v6  ;;  %v693_v6 = vld [vmem:[#allocation2 + $0x8] sm:$0xff] }
  0xa9   : > { %1319 = vmatpush1.bf16.msra.mxu1 %v2353_v7 }
  0xaa   : > { %1432 = vmatpush1.bf16.msra.mxu0 %v2354_v8  ;;  %1320 = vmatprep.subr.bf16.mxu1 %v2355_v9 }
  0xab   : > { %1433 = vmatprep.subr.bf16.mxu0 %v2357_v10  ;;  %v694_v10 = vld [vmem:[#allocation2 + $0x10] sm:$0xff] }
  0xad   : > { %1321 = vmatpush1.bf16.msra.mxu1 %v2359_v11 }
  0xae   : > { %1434 = vmatpush1.bf16.msra.mxu0 %v2360_v12  ;;  %1322 = vmatprep.subr.bf16.mxu1 %v2361_v13 }
  0xaf   : > { %1435 = vmatprep.subr.bf16.mxu0 %v2363_v14 }
  0xb1   : > { %1323 = vmatpush1.bf16.msra.mxu1 %v2365_v15  ;;  %v695_v15 = vld [vmem:[#allocation2 + $0x18] sm:$0xff] }
  0xb2   : > { %1436 = vmatpush1.bf16.msra.mxu0 %v2366_v16  ;;  %1324 = vmatprep.subr.bf16.mxu1 %v2367_v17 }
  0xb3   : > { %1437 = vmatprep.subr.bf16.mxu0 %v2369_v19 }
  0xb5   : > { %1325 = vmatpush1.bf16.msra.mxu1 %v2371_v21 }
  0xb6   : > { %1438 = vmatpush1.bf16.msra.mxu0 %v2372_v22  ;;  %1326 = vmatprep.subr.bf16.mxu1 %v2373_v23  ;;  %v696_v22 = vld [vmem:[#allocation2 + $0x20] sm:$0xff] }
  0xb7   : > { %1439 = vmatprep.subr.bf16.mxu0 %v2375_v24 }
  0xb9   : > { %1327 = vmatpush1.bf16.msra.mxu1 %v2377_v25 }
  0xba   : > { %1440 = vmatpush1.bf16.msra.mxu0 %v2378_v26  ;;  %1328 = vmatprep.subr.bf16.mxu1 %v2379_v27  ;;  %v697_v26 = vld [vmem:[#allocation2 + $0x28] sm:$0xff] }
  0xbb   : > { %1441 = vmatprep.subr.bf16.mxu0 %v2381_v28 }
  0xbd   : > { %1329 = vmatpush1.bf16.msra.mxu1 %v2383_v29 }
  0xbe   : > { %1442 = vmatpush1.bf16.msra.mxu0 %v2384_v30  ;;  %1330 = vmatprep.subr.bf16.mxu1 %v2385_v31  ;;  %v698_v30 = vld [vmem:[#allocation2 + $0x30] sm:$0xff] }
  0xbf   : > { %1443 = vmatprep.subr.bf16.mxu0 %v2387_v32 }
  0xc1   : > { %1331 = vmatpush1.bf16.msra.mxu1 %v2389_v33 }
  0xc2   : > { %1444 = vmatpush1.bf16.msra.mxu0 %v2390_v34 }
  0xc4   : > { %1333 = vmatmul.mubr.bf16.vlgmr.msra.gmra.mrb[0].mxu1 %v2391_v35  ;;  %v699_v35 = vld [vmem:[#allocation2 + $0x38] sm:$0xff] }
  0xc5   : > { %1446 = vmatmul.mubr.bf16.vlgmr.msra.gmra.mrb[0].mxu0 %v2394_v36  ;;  %1342 = vmatprep.mubr.bf16.mxu1 %v2397_v37 }
  0xc6   : > { %1455 = vmatprep.mubr.bf16.mxu0 %v2399_v38 }
  0xcc   : > { %1343 = vmatmul.mubr.bf16.gmra.mrb[4].mxu1 %v2401_v39 }
  0xcd   : > { %1456 = vmatmul.mubr.bf16.gmra.mrb[4].mxu0 %v2402_v40  ;;  %1352 = vmatprep.mubr.bf16.mxu1 %v2403_v41 }
  0xce   : > { %1465 = vmatprep.mubr.bf16.mxu0 %v2405_v42  ;;  %v700_v42 = vld [vmem:[#allocation2 + $0x40] sm:$0xff] }
  0xd4   : > { %1353 = vmatmul.mubr.bf16.gmra.mrb[8].mxu1 %v2407_v43 }
  0xd5   : > { %1466 = vmatmul.mubr.bf16.gmra.mrb[8].mxu0 %v2408_v44  ;;  %1362 = vmatprep.mubr.bf16.mxu1 %v2409_v45 }
  0xd6   : > { %1475 = vmatprep.mubr.bf16.mxu0 %v2411_v46  ;;  %v701_v46 = vld [vmem:[#allocation2 + $0x48] sm:$0xff] }
  0xdc   : > { %1363 = vmatmul.mubr.bf16.gmra.mrb[12].mxu1 %v2413_v47 }
  0xdd   : > { %1476 = vmatmul.mubr.bf16.gmra.mrb[12].mxu0 %v2414_v48  ;;  %1372 = vmatprep.mubr.bf16.mxu1 %v2415_v49 }
  0xde   : > { %1485 = vmatprep.mubr.bf16.mxu0 %v2417_v50  ;;  %v702_v50 = vld [vmem:[#allocation2 + $0x50] sm:$0xff] }
  0xe4   : > { %1373 = vmatmul.mubr.bf16.gmra.mrb[16].mxu1 %v2419_v51 }
  0xe5   : > { %1486 = vmatmul.mubr.bf16.gmra.mrb[16].mxu0 %v2420_v52  ;;  %1382 = vmatprep.mubr.bf16.mxu1 %v2421_v53 }
  0xe6   : > { %1495 = vmatprep.mubr.bf16.mxu0 %v2423_v54 }
  0xec   : > { %1383 = vmatmul.mubr.bf16.gmra.mrb[20].mxu1 %v2425_v55  ;;  %v703_v55 = vld [vmem:[#allocation2 + $0x58] sm:$0xff] }
  0xed   : > { %1496 = vmatmul.mubr.bf16.gmra.mrb[20].mxu0 %v2426_v56  ;;  %1392 = vmatprep.mubr.bf16.mxu1 %v2427_v57 }
  0xee   : > { %1505 = vmatprep.mubr.bf16.mxu0 %v2429_v58 }
  0xf4   : > { %1393 = vmatmul.mubr.bf16.gmra.mrb[24].mxu1 %v2431_v59 }
  0xf5   : > { %1506 = vmatmul.mubr.bf16.gmra.mrb[24].mxu0 %v2432_v60  ;;  %1402 = vmatprep.mubr.bf16.mxu1 %v2433_v61 }
  0xf6   : > { %1515 = vmatprep.mubr.bf16.mxu0 %v2435_v62  ;;  %v704_v62 = vld [vmem:[#allocation2 + $0x60] sm:$0xff] }
  0xfc   : > { %1403 = vmatmul.mubr.bf16.gmra.mrb[28].mxu1 %v2437_v63 }
  0xfd   : > { %1516 = vmatmul.mubr.bf16.gmra.mrb[28].mxu0 %v2438_v0 }
 0x197   : > { %v1334_v1 = vpop.f32.mrb[0].mxu1 }
 0x198   : > { %v1447_v3 = vpop.f32.mrb[0].mxu0  ;;  %v1336_v5 = vpop.f32.mrb[1].mxu1 }
 0x199   : > { %v1448_v4 = vadd.f32 %v1447_v3, %v1334_v1  ;;  %v1449_v7 = vpop.f32.mrb[1].mxu0  ;;  %v1338_v9 = vpop.f32.mrb[2].mxu1 }
 0x19a   : > { %v1450_v8 = vadd.f32 %v1449_v7, %v1336_v5  ;;  %v1451_v11 = vpop.f32.mrb[2].mxu0  ;;  %v1340_v14 = vpop.f32.mrb[3].mxu1 }
 0x19b   : > { %v1526_v12 = vadd.f32 %v1448_v4, %v692_v2  ;;  %v1452_v13 = vadd.f32 %v1451_v11, %v1338_v9  ;;  %v1453_v16 = vpop.f32.mrb[3].mxu0  ;;  %v705_v2 = vld [vmem:[#allocation2 + $0x68] sm:$0xff]  ;;  %v707_v11 = vld [vmem:[#allocation2 + $0x78] sm:$0xff] }
 0x19c   : > { %v1527_v17 = vadd.f32 %v1450_v8, %v693_v6  ;;  %v1454_v18 = vadd.f32 %v1453_v16, %v1340_v14  ;;  %v706_v6 = vld [vmem:[#allocation2 + $0x70] sm:$0xff] }
 0x19d   : > { %1558 = vst [vmem:[#allocation2] sm:$0xff] %v1526_v12  ;;  %v1528_v19 = vadd.f32 %v1452_v13, %v694_v10 }
 0x19e   : > { %1559 = vst [vmem:[#allocation2 + $0x8] sm:$0xff] %v1527_v17  ;;  %v1529_v20 = vadd.f32 %v1454_v18, %v695_v15  ;;  %v708_v18 = vld [vmem:[#allocation2 + $0x80] sm:$0xff] }
 0x19f   : > { %1560 = vst [vmem:[#allocation2 + $0x10] sm:$0xff] %v1528_v19  ;;  %v1344_v21 = vpop.f32.mrb[4].mxu1 }
 0x1a0   : > { %1561 = vst [vmem:[#allocation2 + $0x18] sm:$0xff] %v1529_v20  ;;  %v1457_v23 = vpop.f32.mrb[4].mxu0  ;;  %v1346_v25 = vpop.f32.mrb[5].mxu1 }
 0x1a1   : > { %v1458_v24 = vadd.f32 %v1457_v23, %v1344_v21  ;;  %v1459_v27 = vpop.f32.mrb[5].mxu0  ;;  %v1348_v29 = vpop.f32.mrb[6].mxu1 }
 0x1a2   : > { %v1460_v28 = vadd.f32 %v1459_v27, %v1346_v25  ;;  %v1461_v31 = vpop.f32.mrb[6].mxu0  ;;  %v1350_v34 = vpop.f32.mrb[7].mxu1 }
 0x1a3   : > { %v1530_v32 = vadd.f32 %v1458_v24, %v696_v22  ;;  %v1462_v33 = vadd.f32 %v1461_v31, %v1348_v29  ;;  %v1463_v36 = vpop.f32.mrb[7].mxu0  ;;  %v709_v22 = vld [vmem:[#allocation2 + $0x88] sm:$0xff]  ;;  %v711_v31 = vld [vmem:[#allocation2 + $0x98] sm:$0xff] }
 0x1a4   : > { %v1531_v37 = vadd.f32 %v1460_v28, %v697_v26  ;;  %v1464_v38 = vadd.f32 %v1463_v36, %v1350_v34  ;;  %v710_v26 = vld [vmem:[#allocation2 + $0x90] sm:$0xff] }
 0x1a5   : > { %1562 = vst [vmem:[#allocation2 + $0x20] sm:$0xff] %v1530_v32  ;;  %v1532_v39 = vadd.f32 %v1462_v33, %v698_v30 }
 0x1a6   : > { %1563 = vst [vmem:[#allocation2 + $0x28] sm:$0xff] %v1531_v37  ;;  %v1533_v40 = vadd.f32 %v1464_v38, %v699_v35  ;;  %v712_v38 = vld [vmem:[#allocation2 + $0xa0] sm:$0xff] }
 0x1a7   : > { %1564 = vst [vmem:[#allocation2 + $0x30] sm:$0xff] %v1532_v39  ;;  %v1354_v41 = vpop.f32.mrb[8].mxu1 }
 0x1a8   : > { %1565 = vst [vmem:[#allocation2 + $0x38] sm:$0xff] %v1533_v40  ;;  %v1467_v43 = vpop.f32.mrb[8].mxu0  ;;  %v1356_v45 = vpop.f32.mrb[9].mxu1 }
 0x1a9   : > { %v1468_v44 = vadd.f32 %v1467_v43, %v1354_v41  ;;  %v1469_v47 = vpop.f32.mrb[9].mxu0  ;;  %v1358_v49 = vpop.f32.mrb[10].mxu1 }
 0x1aa   : > { %v1470_v48 = vadd.f32 %v1469_v47, %v1356_v45  ;;  %v1471_v51 = vpop.f32.mrb[10].mxu0  ;;  %v1360_v54 = vpop.f32.mrb[11].mxu1 }
 0x1ab   : > { %v1534_v52 = vadd.f32 %v1468_v44, %v700_v42  ;;  %v1472_v53 = vadd.f32 %v1471_v51, %v1358_v49  ;;  %v1473_v56 = vpop.f32.mrb[11].mxu0  ;;  %v713_v42 = vld [vmem:[#allocation2 + $0xa8] sm:$0xff]  ;;  %v715_v51 = vld [vmem:[#allocation2 + $0xb8] sm:$0xff] }
 0x1ac   : > { %v1535_v57 = vadd.f32 %v1470_v48, %v701_v46  ;;  %v1474_v58 = vadd.f32 %v1473_v56, %v1360_v54  ;;  %v714_v46 = vld [vmem:[#allocation2 + $0xb0] sm:$0xff] }
 0x1ad   : > { %1566 = vst [vmem:[#allocation2 + $0x40] sm:$0xff] %v1534_v52  ;;  %v1536_v59 = vadd.f32 %v1472_v53, %v702_v50 }
 0x1ae   : > { %1567 = vst [vmem:[#allocation2 + $0x48] sm:$0xff] %v1535_v57  ;;  %v1537_v60 = vadd.f32 %v1474_v58, %v703_v55  ;;  %v716_v58 = vld [vmem:[#allocation2 + $0xc0] sm:$0xff] }
 0x1af   : > { %1568 = vst [vmem:[#allocation2 + $0x50] sm:$0xff] %v1536_v59  ;;  %v1364_v61 = vpop.f32.mrb[12].mxu1 }
 0x1b0   : > { %1569 = vst [vmem:[#allocation2 + $0x58] sm:$0xff] %v1537_v60  ;;  %v1477_v63 = vpop.f32.mrb[12].mxu0  ;;  %v1366_v1 = vpop.f32.mrb[13].mxu1 }
 0x1b1   : > { %v1478_v0 = vadd.f32 %v1477_v63, %v1364_v61  ;;  %v1479_v3 = vpop.f32.mrb[13].mxu0  ;;  %v1368_v5 = vpop.f32.mrb[14].mxu1 }
 0x1b2   : > { %v1480_v4 = vadd.f32 %v1479_v3, %v1366_v1  ;;  %v1481_v7 = vpop.f32.mrb[14].mxu0  ;;  %v1370_v10 = vpop.f32.mrb[15].mxu1 }
 0x1b3   : > { %v1538_v8 = vadd.f32 %v1478_v0, %v704_v62  ;;  %v1482_v9 = vadd.f32 %v1481_v7, %v1368_v5  ;;  %v1483_v12 = vpop.f32.mrb[15].mxu0  ;;  %v717_v62 = vld [vmem:[#allocation2 + $0xc8] sm:$0xff]  ;;  %v719_v7 = vld [vmem:[#allocation2 + $0xd8] sm:$0xff] }
 0x1b4   : > { %v1539_v13 = vadd.f32 %v1480_v4, %v705_v2  ;;  %v1484_v14 = vadd.f32 %v1483_v12, %v1370_v10  ;;  %v718_v2 = vld [vmem:[#allocation2 + $0xd0] sm:$0xff] }
 0x1b5   : > { %1570 = vst [vmem:[#allocation2 + $0x60] sm:$0xff] %v1538_v8  ;;  %v1540_v15 = vadd.f32 %v1482_v9, %v706_v6 }
 0x1b6   : > { %1571 = vst [vmem:[#allocation2 + $0x68] sm:$0xff] %v1539_v13  ;;  %v1541_v16 = vadd.f32 %v1484_v14, %v707_v11  ;;  %v720_v14 = vld [vmem:[#allocation2 + $0xe0] sm:$0xff] }
 0x1b7   : > { %1572 = vst [vmem:[#allocation2 + $0x70] sm:$0xff] %v1540_v15  ;;  %v1374_v17 = vpop.f32.mrb[16].mxu1 }
 0x1b8   : > { %1573 = vst [vmem:[#allocation2 + $0x78] sm:$0xff] %v1541_v16  ;;  %v1487_v19 = vpop.f32.mrb[16].mxu0  ;;  %v1376_v21 = vpop.f32.mrb[17].mxu1 }
 0x1b9   : > { %v1488_v20 = vadd.f32 %v1487_v19, %v1374_v17  ;;  %v1489_v23 = vpop.f32.mrb[17].mxu0  ;;  %v1378_v25 = vpop.f32.mrb[18].mxu1 }
 0x1ba   : > { %v1490_v24 = vadd.f32 %v1489_v23, %v1376_v21  ;;  %v1491_v27 = vpop.f32.mrb[18].mxu0  ;;  %v1380_v30 = vpop.f32.mrb[19].mxu1 }
 0x1bb   : > { %v1542_v28 = vadd.f32 %v1488_v20, %v708_v18  ;;  %v1492_v29 = vadd.f32 %v1491_v27, %v1378_v25  ;;  %v1493_v32 = vpop.f32.mrb[19].mxu0  ;;  %v721_v18 = vld [vmem:[#allocation2 + $0xe8] sm:$0xff]  ;;  %v723_v27 = vld [vmem:[#allocation2 + $0xf8] sm:$0xff] }
 0x1bc   : > { %v1543_v33 = vadd.f32 %v1490_v24, %v709_v22  ;;  %v1494_v34 = vadd.f32 %v1493_v32, %v1380_v30  ;;  %v722_v22 = vld [vmem:[#allocation2 + $0xf0] sm:$0xff] }
 0x1bd   : > { %1574 = vst [vmem:[#allocation2 + $0x80] sm:$0xff] %v1542_v28  ;;  %v1544_v35 = vadd.f32 %v1492_v29, %v710_v26 }
 0x1be   : > { %1575 = vst [vmem:[#allocation2 + $0x88] sm:$0xff] %v1543_v33  ;;  %v1545_v36 = vadd.f32 %v1494_v34, %v711_v31  ;;  %v1628_v33 = vlaneseq (!%p2165_p5) }
 0x1bf   : > { %1576 = vst [vmem:[#allocation2 + $0x90] sm:$0xff] %v1544_v35  ;;  %v1384_v37 = vpop.f32.mrb[20].mxu1  ;;  %v1626_v35 = vld [vmem:[%s647_s6] sm:$0x3] (!%p2165_p5) }
 0x1c0   : > { %1577 = vst [vmem:[#allocation2 + $0x98] sm:$0xff] %v1545_v36  ;;  %v1497_v39 = vpop.f32.mrb[20].mxu0  ;;  %v1386_v41 = vpop.f32.mrb[21].mxu1  ;;  %v1629_v34 = vshrl.u32 (!%p2165_p5), %v1628_v33, 7  ;;  %v1670_v36 = vld [vmem:[%s652_s1] sm:$0x3] (!%p2165_p5) }
 0x1c1   : > { %v1498_v40 = vadd.f32 %v1497_v39, %v1384_v37  ;;  %v1499_v43 = vpop.f32.mrb[21].mxu0  ;;  %v1388_v45 = vpop.f32.mrb[22].mxu1  ;;  %v1594_v37 = vld [vmem:[#allocation2] sm:$0xff] (!%p2165_p5)  ;;  %v1595_v39 = vld [vmem:[#allocation2 + $0x8] sm:$0xff] (!%p2165_p5) }
 0x1c2   : > { %v1500_v44 = vadd.f32 %v1499_v43, %v1386_v41  ;;  %v1501_v47 = vpop.f32.mrb[22].mxu0  ;;  %v1390_v50 = vpop.f32.mrb[23].mxu1  ;;  %v1596_v41 = vld [vmem:[#allocation2 + $0x10] sm:$0xff] (!%p2165_p5)  ;;  %v1598_v43 = vld [vmem:[#allocation2 + $0x20] sm:$0xff] (!%p2165_p5) }
 0x1c3   : > { %v1546_v48 = vadd.f32 %v1498_v40, %v712_v38  ;;  %v1502_v49 = vadd.f32 %v1501_v47, %v1388_v45  ;;  %v1503_v52 = vpop.f32.mrb[23].mxu0  ;;  %v1630_v38 = vsub.s32 (!%p2165_p5), 0, %v1629_v34  ;;  %v1634_v40 = vsub.s32 (!%p2165_p5), 1, %v1629_v34 }
 0x1c4   : > { %v1547_v53 = vadd.f32 %v1500_v44, %v713_v42  ;;  %v1504_v54 = vadd.f32 %v1503_v52, %v1390_v50  ;;  %v1597_v42 = vld [vmem:[#allocation2 + $0x18] sm:$0xff] (!%p2165_p5) }
 0x1c5   : > { %1578 = vst [vmem:[#allocation2 + $0xa0] sm:$0xff] %v1546_v48  ;;  %v1548_v55 = vadd.f32 %v1502_v49, %v714_v46  ;;  %v2997_v44 = vrot.slane (!%p2165_p5), %v1626_v35, %v1630_v38  ;;  %v2999_v45 = vrot.slane (!%p2165_p5), %v1670_v36, %v1630_v38  ;;  %v3001_v46 = vrot.slane (!%p2165_p5), %v1626_v35, %v1634_v40  ;;  %v1599_v48 = vld [vmem:[#allocation2 + $0x28] sm:$0xff] (!%p2165_p5)  ;;  %v1600_v49 = vld [vmem:[#allocation2 + $0x30] sm:$0xff] (!%p2165_p5)  ;;  %v1601_v50 = vld [vmem:[#allocation2 + $0x38] sm:$0xff] (!%p2165_p5) }
 0x1c6   : > { %1579 = vst [vmem:[#allocation2 + $0xa8] sm:$0xff] %v1547_v53  ;;  %v1549_v56 = vadd.f32 %v1504_v54, %v715_v51  ;;  %v3003_v47 = vrot.slane (!%p2165_p5), %v1670_v36, %v1634_v40  ;;  %v1609_v38 = vld [vmem:[#allocation2 + $0x78] sm:$0xff] (!%p2165_p5)  ;;  %v1611_v40 = vld [vmem:[#allocation2 + $0x88] sm:$0xff] (!%p2165_p5) }
 0x1c7   : > { %1580 = vst [vmem:[#allocation2 + $0xb0] sm:$0xff] %v1548_v55  ;;  %v1394_v57 = vpop.f32.mrb[24].mxu1  ;;  %v1638_v51 = vmul.f32 (!%p2165_p5), %v2997_v44, %v1594_v37  ;;  %v1639_v52 = vmul.f32 (!%p2165_p5), %v3001_v46, %v1595_v39  ;;  %v1640_v53 = vmul.f32 (!%p2165_p5), %v2997_v44, %v1596_v41  ;;  %v1641_v54 = vmul.f32 (!%p2165_p5), %v3001_v46, %v1597_v42  ;;  %v1610_v39 = vld [vmem:[#allocation2 + $0x80] sm:$0xff] (!%p2165_p5) }
 0x1c8   : > { %1581 = vst [vmem:[#allocation2 + $0xb8] sm:$0xff] %v1549_v56  ;;  %v1507_v59 = vpop.f32.mrb[24].mxu0  ;;  %v1396_v61 = vpop.f32.mrb[25].mxu1  ;;  %v1642_v55 = vmul.f32 (!%p2165_p5), %v2997_v44, %v1598_v43  ;;  %v1643_v56 = vmul.f32 (!%p2165_p5), %v3001_v46, %v1599_v48 }
 0x1c9   : > { %v1508_v60 = vadd.f32 %v1507_v59, %v1394_v57  ;;  %v1509_v63 = vpop.f32.mrb[25].mxu0  ;;  %v1398_v1 = vpop.f32.mrb[26].mxu1  ;;  %v1644_v57 = vmul.f32 (!%p2165_p5), %v2997_v44, %v1600_v49  ;;  %v1682_v59 = vadd.f32 (!%p2165_p5), %v2999_v45, %v1638_v51 }
 0x1ca   : > { %v1510_v0 = vadd.f32 %v1509_v63, %v1396_v61  ;;  %v1511_v3 = vpop.f32.mrb[26].mxu0  ;;  %v1400_v6 = vpop.f32.mrb[27].mxu1  ;;  %v1684_v61 = vadd.f32 (!%p2165_p5), %v2999_v45, %v1640_v53  ;;  %v1686_v63 = vadd.f32 (!%p2165_p5), %v2999_v45, %v1642_v55 }
 0x1cb   : > { %v1550_v4 = vadd.f32 %v1508_v60, %v716_v58  ;;  %v1512_v5 = vadd.f32 %v1511_v3, %v1398_v1  ;;  %v1513_v8 = vpop.f32.mrb[27].mxu0  ;;  %v1645_v58 = vmul.f32 (!%p2165_p5), %v3001_v46, %v1601_v50  ;;  %v1683_v60 = vadd.f32 (!%p2165_p5), %v3003_v47, %v1639_v52 }
 0x1cc   : > { %v1551_v9 = vadd.f32 %v1510_v0, %v717_v62  ;;  %v1514_v10 = vadd.f32 %v1513_v8, %v1400_v6  ;;  %v1685_v62 = vadd.f32 (!%p2165_p5), %v3003_v47, %v1641_v54  ;;  %v1687_v0 = vadd.f32 (!%p2165_p5), %v3003_v47, %v1643_v56  ;;  %v1612_v56 = vld [vmem:[#allocation2 + $0x90] sm:$0xff] (!%p2165_p5) }
 0x1cd   : > { %1582 = vst [vmem:[#allocation2 + $0xc0] sm:$0xff] %v1550_v4  ;;  %v1552_v11 = vadd.f32 %v1512_v5, %v718_v2  ;;  %v1688_v1 = vadd.f32 (!%p2165_p5), %v2999_v45, %v1644_v57  ;;  %v1689_v2 = vadd.f32 (!%p2165_p5), %v3003_v47, %v1645_v58  ;;  %vm1714_vm0 = vcmp.ge.f32.partialorder (!%p2165_p5), %v1682_v59, 0.0 }
 0x1ce   : > { %1583 = vst [vmem:[#allocation2 + $0xc8] sm:$0xff] %v1551_v9  ;;  %v1553_v12 = vadd.f32 %v1514_v10, %v719_v7  ;;  %v1746_v3 = vmul.f32 (!%p2165_p5), 0.2, %v1682_v59  ;;  %vm1715_vm1 = vcmp.ge.f32.partialorder (!%p2165_p5), %v1683_v60, 0.0  ;;  %v1747_v4 = vmul.f32 (!%p2165_p5), 0.2, %v1683_v60 }
 0x1cf   : > { %1584 = vst [vmem:[#allocation2 + $0xd0] sm:$0xff] %v1552_v11  ;;  %v1404_v13 = vpop.f32.mrb[28].mxu1  ;;  %vm1716_vm2 = vcmp.ge.f32.partialorder (!%p2165_p5), %v1684_v61, 0.0  ;;  %v1748_v5 = vmul.f32 (!%p2165_p5), 0.2, %v1684_v61  ;;  %vm1717_vm3 = vcmp.ge.f32.partialorder (!%p2165_p5), %v1685_v62, 0.0  ;;  %v1653_v58 = vmul.f32 (!%p2165_p5), %v3001_v46, %v1609_v38 }
 0x1d0   : > { %1585 = vst [vmem:[#allocation2 + $0xd8] sm:$0xff] %v1553_v12  ;;  %v1517_v15 = vpop.f32.mrb[28].mxu0  ;;  %v1406_v17 = vpop.f32.mrb[29].mxu1  ;;  %v1749_v6 = vmul.f32 (!%p2165_p5), 0.2, %v1685_v62  ;;  %v1778_v7 = vsel (!%p2165_p5), %vm1714_vm0, %v1682_v59, %v1746_v3  ;;  %v1779_v8 = vsel (!%p2165_p5), %vm1715_vm1, %v1683_v60, %v1747_v4  ;;  %vm1718_vm4 = vcmp.ge.f32.partialorder (!%p2165_p5), %v1686_v63, 0.0 }
 0x1d1   : > { %v1518_v16 = vadd.f32 %v1517_v15, %v1404_v13  ;;  %v1519_v19 = vpop.f32.mrb[29].mxu0  ;;  %v1408_v21 = vpop.f32.mrb[30].mxu1  ;;  %v1750_v9 = vmul.f32 (!%p2165_p5), 0.2, %v1686_v63  ;;  %v1602_v10 = vld [vmem:[#allocation2 + $0x40] sm:$0xff] (!%p2165_p5)  ;;  %v1603_v11 = vld [vmem:[#allocation2 + $0x48] sm:$0xff] (!%p2165_p5)  ;;  %1810 = vst [vmem:[%s2887_s15] sm:$0xff] (!%p2165_p5), %v1778_v7  ;;  %v1780_v12 = vsel (!%p2165_p5), %vm1716_vm2, %v1684_v61, %v1748_v5  ;;  %v1654_v59 = vmul.f32 (!%p2165_p5), %v2997_v44, %v1610_v39 }
 0x1d2   : > { %v1520_v20 = vadd.f32 %v1519_v19, %v1406_v17  ;;  %v1521_v23 = vpop.f32.mrb[30].mxu0  ;;  %v1410_v26 = vpop.f32.mrb[31].mxu1  ;;  %1593 = sbr.rel (%p2165_p5) target bundleno = 504 (0x1f8), region = 105  ;;  %1811 = vst [vmem:[%s2887_s15 + $0x8] sm:$0xff] (!%p2165_p5), %v1779_v8  ;;  %v1781_v13 = vsel (!%p2165_p5), %vm1717_vm3, %v1685_v62, %v1749_v6  ;;  %vm1719_vm5 = vcmp.ge.f32.partialorder (!%p2165_p5), %v1687_v0, 0.0  ;;  %v1604_v15 = vld [vmem:[#allocation2 + $0x50] sm:$0xff] (!%p2165_p5)  ;;  %v1655_v60 = vmul.f32 (!%p2165_p5), %v3001_v46, %v1611_v40 }
 0x1d3   : > { %v1554_v24 = vadd.f32 %v1518_v16, %v720_v14  ;;  %v1522_v25 = vadd.f32 %v1521_v23, %v1408_v21  ;;  %v1523_v28 = vpop.f32.mrb[31].mxu0  ;;  %v1751_v14 = vmul.f32 (!%p2165_p5), 0.2, %v1687_v0  ;;  %v1605_v16 = vld [vmem:[#allocation2 + $0x58] sm:$0xff] (!%p2165_p5)  ;;  %v1606_v17 = vld [vmem:[#allocation2 + $0x60] sm:$0xff] (!%p2165_p5)  ;;  %1812 = vst [vmem:[%s2887_s15 + $0x10] sm:$0xff] (!%p2165_p5), %v1780_v12  ;;  %v1646_v23 = vmul.f32 (!%p2165_p5), %v2997_v44, %v1602_v10 }
 0x1d4   : > { %v1555_v29 = vadd.f32 %v1520_v20, %v721_v18  ;;  %v1524_v30 = vadd.f32 %v1523_v28, %v1410_v26  ;;  %1813 = vst [vmem:[%s2887_s15 + $0x18] sm:$0xff] (!%p2165_p5), %v1781_v13  ;;  %v1782_v18 = vsel (!%p2165_p5), %vm1718_vm4, %v1686_v63, %v1750_v9  ;;  %vm1720_vm6 = vcmp.ge.f32.partialorder (!%p2165_p5), %v1688_v1, 0.0  ;;  %v1607_v20 = vld [vmem:[#allocation2 + $0x68] sm:$0xff] (!%p2165_p5)  ;;  %v1613_v61 = vld [vmem:[#allocation2 + $0x98] sm:$0xff] (!%p2165_p5)  ;;  %v1614_v62 = vld [vmem:[#allocation2 + $0xa0] sm:$0xff] (!%p2165_p5) }
 0x1d5   : > { %1586 = vst [vmem:[#allocation2 + $0xe0] sm:$0xff] %v1554_v24  ;;  %v1556_v31 = vadd.f32 %v1522_v25, %v722_v22  ;;  %v1752_v19 = vmul.f32 (!%p2165_p5), 0.2, %v1688_v1  ;;  %vm1721_vm7 = vcmp.ge.f32.partialorder (!%p2165_p5), %v1689_v2, 0.0  ;;  %1814 = vst [vmem:[%s2887_s15 + $0x20] sm:$0xff] (!%p2165_p5), %v1782_v18  ;;  %v1783_v21 = vsel (!%p2165_p5), %vm1719_vm5, %v1687_v0, %v1751_v14  ;;  %v1608_v25 = vld [vmem:[#allocation2 + $0x70] sm:$0xff] (!%p2165_p5) }
 0x1d6   : > { %1587 = vst [vmem:[#allocation2 + $0xe8] sm:$0xff] %v1555_v29  ;;  %v1557_v32 = vadd.f32 %v1524_v30, %v723_v27  ;;  %v1753_v22 = vmul.f32 (!%p2165_p5), 0.2, %v1689_v2  ;;  %v1647_v24 = vmul.f32 (!%p2165_p5), %v3001_v46, %v1603_v11  ;;  %1815 = vst [vmem:[%s2887_s15 + $0x28] sm:$0xff] (!%p2165_p5), %v1783_v21  ;;  %v1648_v27 = vmul.f32 (!%p2165_p5), %v2997_v44, %v1604_v15  ;;  %v1615_v9 = vld [vmem:[#allocation2 + $0xa8] sm:$0xff] (!%p2165_p5)  ;;  %v1618_v21 = vld [vmem:[#allocation2 + $0xc0] sm:$0xff] (!%p2165_p5) }
 0x1d7   : > { %1588 = vst [vmem:[#allocation2 + $0xf0] sm:$0xff] %v1556_v31  ;;  %v1784_v26 = vsel (!%p2165_p5), %vm1720_vm6, %v1688_v1, %v1752_v19  ;;  %v1649_v28 = vmul.f32 (!%p2165_p5), %v3001_v46, %v1605_v16  ;;  %v1650_v29 = vmul.f32 (!%p2165_p5), %v2997_v44, %v1606_v17  ;;  %v1690_v31 = vadd.f32 (!%p2165_p5), %v2999_v45, %v1646_v23  ;;  %v1616_v19 = vld [vmem:[#allocation2 + $0xb0] sm:$0xff] (!%p2165_p5) }
 0x1d8   : > { %1589 = vst [vmem:[#allocation2 + $0xf8] sm:$0xff] %v1557_v32  ;;  %1816 = vst [vmem:[%s2887_s15 + $0x30] sm:$0xff] (!%p2165_p5), %v1784_v26  ;;  %v1785_v30 = vsel (!%p2165_p5), %vm1721_vm7, %v1689_v2, %v1753_v22  ;;  %v1691_v32 = vadd.f32 (!%p2165_p5), %v3003_v47, %v1647_v24  ;;  %v1651_v33 = vmul.f32 (!%p2165_p5), %v3001_v46, %v1607_v20  ;;  %v1617_v20 = vld [vmem:[#allocation2 + $0xb8] sm:$0xff] (!%p2165_p5) }
 0x1d9   : > { %1817 = vst [vmem:[%s2887_s15 + $0x38] sm:$0xff] %v1785_v30  ;;  %v1692_v34 = vadd.f32 %v2999_v45, %v1648_v27  ;;  %v1693_v35 = vadd.f32 %v3003_v47, %v1649_v28  ;;  %v1694_v36 = vadd.f32 %v2999_v45, %v1650_v29  ;;  %v1652_v37 = vmul.f32 %v2997_v44, %v1608_v25  ;;  %v1619_v27 = vld [vmem:[#allocation2 + $0xc8] sm:$0xff] }
 0x1da   : > { %vm1722_vm8 = vcmp.ge.f32.partialorder %v1690_v31, 0.0  ;;  %v1754_v41 = vmul.f32 0.2, %v1690_v31  ;;  %vm1723_vm9 = vcmp.ge.f32.partialorder %v1691_v32, 0.0  ;;  %v1755_v42 = vmul.f32 0.2, %v1691_v32 }
 0x1db   : > { %vm1724_vm10 = vcmp.ge.f32.partialorder %v1692_v34, 0.0  ;;  %v1756_v43 = vmul.f32 0.2, %v1692_v34  ;;  %vm1725_vm11 = vcmp.ge.f32.partialorder %v1693_v35, 0.0  ;;  %v1757_v48 = vmul.f32 0.2, %v1693_v35 }
 0x1dc   : > { %v1786_v49 = vsel %vm1722_vm8, %v1690_v31, %v1754_v41  ;;  %v1787_v50 = vsel %vm1723_vm9, %v1691_v32, %v1755_v42  ;;  %vm1726_vm12 = vcmp.ge.f32.partialorder %v1694_v36, 0.0  ;;  %v1758_v51 = vmul.f32 0.2, %v1694_v36  ;;  %v1620_v32 = vld [vmem:[#allocation2 + $0xd0] sm:$0xff] }
 0x1dd   : > { %1818 = vst [vmem:[%s2887_s15 + $0x40] sm:$0xff] %v1786_v49  ;;  %1819 = vst [vmem:[%s2887_s15 + $0x48] sm:$0xff] %v1787_v50  ;;  %v1788_v52 = vsel %vm1724_vm10, %v1692_v34, %v1756_v43  ;;  %v1789_v53 = vsel %vm1725_vm11, %v1693_v35, %v1757_v48  ;;  %v1695_v54 = vadd.f32 %v3003_v47, %v1651_v33  ;;  %v1621_v33 = vld [vmem:[#allocation2 + $0xd8] sm:$0xff]  ;;  %v1622_v34 = vld [vmem:[#allocation2 + $0xe0] sm:$0xff] }
 0x1de   : > { %v1696_v55 = vadd.f32 %v2999_v45, %v1652_v37  ;;  %1820 = vst [vmem:[%s2887_s15 + $0x50] sm:$0xff] %v1788_v52  ;;  %1821 = vst [vmem:[%s2887_s15 + $0x58] sm:$0xff] %v1789_v53  ;;  %v1790_v57 = vsel %vm1726_vm12, %v1694_v36, %v1758_v51  ;;  %v1697_v1 = vadd.f32 %v3003_v47, %v1653_v58 }
 0x1df   : > { %1822 = vst [vmem:[%s2887_s15 + $0x60] sm:$0xff] %v1790_v57  ;;  %vm1727_vm13 = vcmp.ge.f32.partialorder %v1695_v54, 0.0  ;;  %v1759_v63 = vmul.f32 0.2, %v1695_v54  ;;  %v1698_v2 = vadd.f32 %v2999_v45, %v1654_v59  ;;  %v1699_v3 = vadd.f32 %v3003_v47, %v1655_v60  ;;  %v1623_v59 = vld [vmem:[#allocation2 + $0xe8] sm:$0xff]  ;;  %v1624_v60 = vld [vmem:[#allocation2 + $0xf0] sm:$0xff] }
 0x1e0   : > { %vm1728_vm14 = vcmp.ge.f32.partialorder %v1696_v55, 0.0  ;;  %v1760_v0 = vmul.f32 0.2, %v1696_v55  ;;  %v1656_v4 = vmul.f32 %v2997_v44, %v1612_v56  ;;  %v1657_v7 = vmul.f32 %v3001_v46, %v1613_v61 }
 0x1e1   : > { %v1791_v5 = vsel %vm1727_vm13, %v1695_v54, %v1759_v63  ;;  %v1658_v8 = vmul.f32 %v2997_v44, %v1614_v62  ;;  %vm1729_vm15 = vcmp.ge.f32.partialorder %v1697_v1, 0.0  ;;  %v1761_v10 = vmul.f32 0.2, %v1697_v1  ;;  %v1625_v63 = vld [vmem:[#allocation2 + $0xf8] sm:$0xff] }
 0x1e2   : > { %v1792_v6 = vsel %vm1728_vm14, %v1696_v55, %v1760_v0  ;;  %1823 = vst [vmem:[%s2887_s15 + $0x68] sm:$0xff] %v1791_v5  ;;  %vm1730_vm0 = vcmp.ge.f32.partialorder %v1698_v2, 0.0  ;;  %v1762_v11 = vmul.f32 0.2, %v1698_v2  ;;  %vm1731_vm1 = vcmp.ge.f32.partialorder %v1699_v3, 0.0 }
 0x1e3   : > { %1824 = vst [vmem:[%s2887_s15 + $0x70] sm:$0xff] %v1792_v6  ;;  %v1763_v12 = vmul.f32 0.2, %v1699_v3  ;;  %v1700_v13 = vadd.f32 %v2999_v45, %v1656_v4  ;;  %v1701_v14 = vadd.f32 %v3003_v47, %v1657_v7  ;;  %v1793_v15 = vsel %vm1729_vm15, %v1697_v1, %v1761_v10 }
 0x1e4   : > { %v1794_v16 = vsel %vm1730_vm0, %v1698_v2, %v1762_v11  ;;  %v1702_v17 = vadd.f32 %v2999_v45, %v1658_v8  ;;  %v1659_v18 = vmul.f32 %v3001_v46, %v1615_v9  ;;  %1825 = vst [vmem:[%s2887_s15 + $0x78] sm:$0xff] %v1793_v15  ;;  %v1660_v29 = vmul.f32 %v2997_v44, %v1616_v19 }
 0x1e5   : > { %1826 = vst [vmem:[%s2887_s15 + $0x80] sm:$0xff] %v1794_v16  ;;  %v1795_v22 = vsel %vm1731_vm1, %v1699_v3, %v1763_v12  ;;  %vm1732_vm2 = vcmp.ge.f32.partialorder %v1700_v13, 0.0  ;;  %v1764_v23 = vmul.f32 0.2, %v1700_v13  ;;  %vm1733_vm3 = vcmp.ge.f32.partialorder %v1701_v14, 0.0 }
 0x1e6   : > { %1827 = vst [vmem:[%s2887_s15 + $0x88] sm:$0xff] %v1795_v22  ;;  %v1765_v24 = vmul.f32 0.2, %v1701_v14  ;;  %vm1734_vm4 = vcmp.ge.f32.partialorder %v1702_v17, 0.0  ;;  %v1766_v25 = vmul.f32 0.2, %v1702_v17  ;;  %v1703_v26 = vadd.f32 %v3003_v47, %v1659_v18 }
 0x1e7   : > { %v1796_v28 = vsel %vm1732_vm2, %v1700_v13, %v1764_v23  ;;  %v1661_v30 = vmul.f32 %v3001_v46, %v1617_v20  ;;  %v1662_v31 = vmul.f32 %v2997_v44, %v1618_v21  ;;  %v1704_v38 = vadd.f32 %v2999_v45, %v1660_v29 }
 0x1e8   : > { %1828 = vst [vmem:[%s2887_s15 + $0x90] sm:$0xff] %v1796_v28  ;;  %v1797_v35 = vsel %vm1733_vm3, %v1701_v14, %v1765_v24  ;;  %v1798_v36 = vsel %vm1734_vm4, %v1702_v17, %v1766_v25  ;;  %vm1735_vm5 = vcmp.ge.f32.partialorder %v1703_v26, 0.0  ;;  %v1767_v37 = vmul.f32 0.2, %v1703_v26 }
 0x1e9   : > { %1829 = vst [vmem:[%s2887_s15 + $0x98] sm:$0xff] %v1797_v35  ;;  %1830 = vst [vmem:[%s2887_s15 + $0xa0] sm:$0xff] %v1798_v36  ;;  %v1705_v39 = vadd.f32 %v3003_v47, %v1661_v30  ;;  %v1706_v40 = vadd.f32 %v2999_v45, %v1662_v31  ;;  %v1663_v41 = vmul.f32 %v3001_v46, %v1619_v27  ;;  %vm1736_vm6 = vcmp.ge.f32.partialorder %v1704_v38, 0.0 }
 0x1ea   : > { %v1799_v42 = vsel %vm1735_vm5, %v1703_v26, %v1767_v37  ;;  %v1664_v43 = vmul.f32 %v2997_v44, %v1620_v32  ;;  %v1665_v48 = vmul.f32 %v3001_v46, %v1621_v33  ;;  %v1666_v49 = vmul.f32 %v2997_v44, %v1622_v34 }
 0x1eb   : > { %1831 = vst [vmem:[%s2887_s15 + $0xa8] sm:$0xff] %v1799_v42  ;;  %v1768_v50 = vmul.f32 0.2, %v1704_v38  ;;  %vm1737_vm7 = vcmp.ge.f32.partialorder %v1705_v39, 0.0  ;;  %v1769_v51 = vmul.f32 0.2, %v1705_v39  ;;  %v1707_v53 = vadd.f32 %v3003_v47, %v1663_v41 }
 0x1ec   : > { %vm1738_vm8 = vcmp.ge.f32.partialorder %v1706_v40, 0.0  ;;  %v1770_v52 = vmul.f32 0.2, %v1706_v40  ;;  %v1708_v54 = vadd.f32 %v2999_v45, %v1664_v43  ;;  %v1709_v57 = vadd.f32 %v3003_v47, %v1665_v48 }
 0x1ed   : > { %v1800_v55 = vsel %vm1736_vm6, %v1704_v38, %v1768_v50  ;;  %v1801_v56 = vsel %vm1737_vm7, %v1705_v39, %v1769_v51  ;;  %v1710_v58 = vadd.f32 %v2999_v45, %v1666_v49  ;;  %vm1739_vm9 = vcmp.ge.f32.partialorder %v1707_v53, 0.0 }
 0x1ee   : > { %1832 = vst [vmem:[%s2887_s15 + $0xb0] sm:$0xff] %v1800_v55  ;;  %1833 = vst [vmem:[%s2887_s15 + $0xb8] sm:$0xff] %v1801_v56  ;;  %v1802_v61 = vsel %vm1738_vm8, %v1706_v40, %v1770_v52  ;;  %v1771_v62 = vmul.f32 0.2, %v1707_v53  ;;  %vm1740_vm10 = vcmp.ge.f32.partialorder %v1708_v54, 0.0  ;;  %vm1741_vm11 = vcmp.ge.f32.partialorder %v1709_v57, 0.0 }
 0x1ef   : > { %1834 = vst [vmem:[%s2887_s15 + $0xc0] sm:$0xff] %v1802_v61  ;;  %v1772_v0 = vmul.f32 0.2, %v1708_v54  ;;  %v1773_v1 = vmul.f32 0.2, %v1709_v57  ;;  %vm1742_vm12 = vcmp.ge.f32.partialorder %v1710_v58, 0.0  ;;  %v1667_v4 = vmul.f32 %v3001_v46, %v1623_v59 }
 0x1f0   : > { %v1803_v2 = vsel %vm1739_vm9, %v1707_v53, %v1771_v62  ;;  %v1774_v3 = vmul.f32 0.2, %v1710_v58  ;;  %v1668_v5 = vmul.f32 %v2997_v44, %v1624_v60  ;;  %v1669_v8 = vmul.f32 %v3001_v46, %v1625_v63 }
 0x1f1   : > { %1835 = vst [vmem:[%s2887_s15 + $0xc8] sm:$0xff] %v1803_v2  ;;  %v1804_v6 = vsel %vm1740_vm10, %v1708_v54, %v1772_v0  ;;  %v1805_v7 = vsel %vm1741_vm11, %v1709_v57, %v1773_v1  ;;  %v1711_v10 = vadd.f32 %v3003_v47, %v1667_v4 }
 0x1f2   : > { %1836 = vst [vmem:[%s2887_s15 + $0xd0] sm:$0xff] %v1804_v6  ;;  %1837 = vst [vmem:[%s2887_s15 + $0xd8] sm:$0xff] %v1805_v7  ;;  %v1806_v9 = vsel %vm1742_vm12, %v1710_v58, %v1774_v3  ;;  %v1712_v11 = vadd.f32 %v2999_v45, %v1668_v5  ;;  %v1713_v12 = vadd.f32 %v3003_v47, %v1669_v8 }
 0x1f3   : > { %1838 = vst [vmem:[%s2887_s15 + $0xe0] sm:$0xff] %v1806_v9  ;;  %vm1743_vm13 = vcmp.ge.f32.partialorder %v1711_v10, 0.0  ;;  %v1775_v44 = vmul.f32 0.2, %v1711_v10 }
 0x1f4   : > { %vm1744_vm14 = vcmp.ge.f32.partialorder %v1712_v11, 0.0  ;;  %v1776_v13 = vmul.f32 0.2, %v1712_v11  ;;  %vm1745_vm15 = vcmp.ge.f32.partialorder %v1713_v12, 0.0  ;;  %v1777_v14 = vmul.f32 0.2, %v1713_v12 }
 0x1f5   : > { %v1807_v46 = vsel %vm1743_vm13, %v1711_v10, %v1775_v44 }
 0x1f6   : > { %v1808_v15 = vsel %vm1744_vm14, %v1712_v11, %v1776_v13  ;;  %1839 = vst [vmem:[%s2887_s15 + $0xe8] sm:$0xff] %v1807_v46  ;;  %v1809_v16 = vsel %vm1745_vm15, %v1713_v12, %v1777_v14 }
 0x1f7   : > { %1840 = vst [vmem:[%s2887_s15 + $0xf0] sm:$0xff] %v1808_v15  ;;  %1841 = vst [vmem:[%s2887_s15 + $0xf8] sm:$0xff] %v1809_v16 }
 0x1f8 PF: > { %1848 = sbr.rel (!%p2647_p12) target bundleno = 522 (0x20a), region = 109  ;;  %s2173_s1 = sshll.u32 (%p2647_p12), %s2513_s22, 4  ;;  %v1867_v45 = vld [vmem:[%s2887_s15] sm:$0xff] (%p2647_p12)  ;;  %v1869_v47 = vld [vmem:[%s2887_s15 + $0x8] sm:$0xff] (%p2647_p12)  ;;  %v1887_v25 = vld [vmem:[%s2887_s15 + $0x50] sm:$0xff] (%p2647_p12) }
 0x1f9   : > { %v1871_v17 = vld [vmem:[%s2887_s15 + $0x10] sm:$0xff] (%p2647_p12)  ;;  %s3110_s29 = scalar_lea.vmem (%p2647_p12), %s3210_s4, %s2173_s1  ;;  %v1883_v23 = vld [vmem:[%s2887_s15 + $0x40] sm:$0xff] (%p2647_p12)  ;;  %v1885_v24 = vld [vmem:[%s2887_s15 + $0x48] sm:$0xff] (%p2647_p12) }
 0x1fa   : > { %v1873_v18 = vld [vmem:[%s2887_s15 + $0x18] sm:$0xff] (%p2647_p12)  ;;  %1868 = vst [vmem:[%s3110_s29] sm:$0xff] (%p2647_p12), %v1867_v45  ;;  %1870 = vst [vmem:[%s3110_s29 + $0x8] sm:$0xff] (%p2647_p12), %v1869_v47  ;;  %v1891_v27 = vld [vmem:[%s2887_s15 + $0x60] sm:$0xff] (%p2647_p12) }
 0x1fb   : > { %v1875_v19 = vld [vmem:[%s2887_s15 + $0x20] sm:$0xff] (%p2647_p12)  ;;  %1872 = vst [vmem:[%s3110_s29 + $0x20] sm:$0xff] (%p2647_p12), %v1871_v17  ;;  %1874 = vst [vmem:[%s3110_s29 + $0x28] sm:$0xff] (%p2647_p12), %v1873_v18  ;;  %v1889_v26 = vld [vmem:[%s2887_s15 + $0x58] sm:$0xff] (%p2647_p12) }
 0x1fc   : > { %v1877_v20 = vld [vmem:[%s2887_s15 + $0x28] sm:$0xff] (%p2647_p12)  ;;  %1876 = vst [vmem:[%s3110_s29 + $0x40] sm:$0xff] (%p2647_p12), %v1875_v19  ;;  %1884 = vst [vmem:[%s3110_s29 + $0x80] sm:$0xff] (%p2647_p12), %v1883_v23  ;;  %v1895_v29 = vld [vmem:[%s2887_s15 + $0x70] sm:$0xff] (%p2647_p12) }
 0x1fd   : > { %1878 = vst [vmem:[%s3110_s29 + $0x48] sm:$0xff] (%p2647_p12), %v1877_v20  ;;  %1886 = vst [vmem:[%s3110_s29 + $0x88] sm:$0xff] (%p2647_p12), %v1885_v24  ;;  %v1893_v28 = vld [vmem:[%s2887_s15 + $0x68] sm:$0xff] (%p2647_p12)  ;;  %v1897_v30 = vld [vmem:[%s2887_s15 + $0x78] sm:$0xff] (%p2647_p12) }
 0x1fe   : > { %v1879_v21 = vld [vmem:[%s2887_s15 + $0x30] sm:$0xff] (%p2647_p12)  ;;  %1888 = vst [vmem:[%s3110_s29 + $0xa0] sm:$0xff] (%p2647_p12), %v1887_v25  ;;  %1890 = vst [vmem:[%s3110_s29 + $0xa8] sm:$0xff] (%p2647_p12), %v1889_v26  ;;  %v1899_v31 = vld [vmem:[%s2887_s15 + $0x80] sm:$0xff] (%p2647_p12) }
 0x1ff   : > { %v1881_v22 = vld [vmem:[%s2887_s15 + $0x38] sm:$0xff]  ;;  %1880 = vst [vmem:[%s3110_s29 + $0x60] sm:$0xff] %v1879_v21  ;;  %1892 = vst [vmem:[%s3110_s29 + $0xc0] sm:$0xff] %v1891_v27  ;;  %v1901_v32 = vld [vmem:[%s2887_s15 + $0x88] sm:$0xff] }
 0x200   : > { %1882 = vst [vmem:[%s3110_s29 + $0x68] sm:$0xff] %v1881_v22  ;;  %1894 = vst [vmem:[%s3110_s29 + $0xc8] sm:$0xff] %v1893_v28  ;;  %v1903_v33 = vld [vmem:[%s2887_s15 + $0x90] sm:$0xff]  ;;  %v1905_v34 = vld [vmem:[%s2887_s15 + $0x98] sm:$0xff] }
 0x201   : > { %1896 = vst [vmem:[%s3110_s29 + $0xe0] sm:$0xff] %v1895_v29  ;;  %1898 = vst [vmem:[%s3110_s29 + $0xe8] sm:$0xff] %v1897_v30  ;;  %v1907_v35 = vld [vmem:[%s2887_s15 + $0xa0] sm:$0xff]  ;;  %v1909_v36 = vld [vmem:[%s2887_s15 + $0xa8] sm:$0xff] }
 0x202   : > { %1900 = vst [vmem:[%s3110_s29 + $0x100] sm:$0xff] %v1899_v31  ;;  %1902 = vst [vmem:[%s3110_s29 + $0x108] sm:$0xff] %v1901_v32  ;;  %v1911_v37 = vld [vmem:[%s2887_s15 + $0xb0] sm:$0xff]  ;;  %v1913_v38 = vld [vmem:[%s2887_s15 + $0xb8] sm:$0xff] }
 0x203   : > { %1904 = vst [vmem:[%s3110_s29 + $0x120] sm:$0xff] %v1903_v33  ;;  %1906 = vst [vmem:[%s3110_s29 + $0x128] sm:$0xff] %v1905_v34  ;;  %v1915_v39 = vld [vmem:[%s2887_s15 + $0xc0] sm:$0xff]  ;;  %v1917_v40 = vld [vmem:[%s2887_s15 + $0xc8] sm:$0xff] }
 0x204   : > { %1908 = vst [vmem:[%s3110_s29 + $0x140] sm:$0xff] %v1907_v35  ;;  %1910 = vst [vmem:[%s3110_s29 + $0x148] sm:$0xff] %v1909_v36  ;;  %v1919_v41 = vld [vmem:[%s2887_s15 + $0xd0] sm:$0xff]  ;;  %v1921_v42 = vld [vmem:[%s2887_s15 + $0xd8] sm:$0xff] }
 0x205   : > { %1912 = vst [vmem:[%s3110_s29 + $0x160] sm:$0xff] %v1911_v37  ;;  %1914 = vst [vmem:[%s3110_s29 + $0x168] sm:$0xff] %v1913_v38  ;;  %v1923_v43 = vld [vmem:[%s2887_s15 + $0xe0] sm:$0xff]  ;;  %v1925_v48 = vld [vmem:[%s2887_s15 + $0xe8] sm:$0xff] }
 0x206   : > { %1916 = vst [vmem:[%s3110_s29 + $0x180] sm:$0xff] %v1915_v39  ;;  %1918 = vst [vmem:[%s3110_s29 + $0x188] sm:$0xff] %v1917_v40  ;;  %v1927_v49 = vld [vmem:[%s2887_s15 + $0xf0] sm:$0xff]  ;;  %v1929_v50 = vld [vmem:[%s2887_s15 + $0xf8] sm:$0xff] }
 0x207   : > { %1920 = vst [vmem:[%s3110_s29 + $0x1a0] sm:$0xff] %v1919_v41  ;;  %1922 = vst [vmem:[%s3110_s29 + $0x1a8] sm:$0xff] %v1921_v42 }
 0x208   : > { %1924 = vst [vmem:[%s3110_s29 + $0x1c0] sm:$0xff] %v1923_v43  ;;  %1926 = vst [vmem:[%s3110_s29 + $0x1c8] sm:$0xff] %v1925_v48 }
 0x209   : > { %1928 = vst [vmem:[%s3110_s29 + $0x1e0] sm:$0xff] %v1927_v49  ;;  %1930 = vst [vmem:[%s3110_s29 + $0x1e8] sm:$0xff] %v1929_v50 }
 0x20a PF: > { %s14_s25 = sadd.s32 1, %s2525_s25   ;;  %s3222_s14 = sld [smem:[#allocation6_spill]] }
 0x20b   : > { %p11_p6 = scmp.ge.s32.totalorder %s14_s25, 18   ;;  %s3223_s27 = sld [smem:[#allocation7_spill]] }
 0x20c   : > { %s3224_s15 = smov %s2489_s16  ;;  %s3225_s16 = smov %s2645_s13 }
 0x20d   : > { %s3226_s17 = smov %s2497_s18  ;;  %s3227_s18 = smov %s2642_s12 }
 0x20e   : > { %s3228_s19 = smov %s2505_s20  ;;  %s3229_s20 = smov %s2628_s7 }
 0x20f   : > { %s3230_s21 = smov %s2517_s23  ;;  %s3231_s22 = smov %s2521_s24 }
 0x210   : > { %s3232_s23 = smov %s3222_s14  ;;  %13 = sbr.rel (!%p11_p6) target bundleno = 9 (0x9), region = 177 }
 0x211   : > { %s3233_s24 = smov %s3223_s27 }

// kernel: cnn_discriminator_forward.8
= control target key start
LH: loop header
LB: loop body
LE: loop exit
PB: predicated region body
PF: predicated region fallthrough
CT: control target
= control target key end

     0   :  { %s2252_s0 = inlined_call_operand.vmem [shape: bf16[32,8192], index: 0, kind: input, shape index: {}]   ;;  %s2253_s1 = inlined_call_operand.vmem [shape: bf16[8192,1024], index: 1, kind: input, shape index: {}]   ;;  %s2254_s2 = inlined_call_operand.vmem [shape: f32[1,1024], index: 2, kind: input, shape index: {}]   ;;  %s2255_s3 = inlined_call_operand.vmem [shape: f32[1,1024], index: 3, kind: input, shape index: {}]   ;;  %s2256_s4 = inlined_call_operand.vmem [shape: f32[32,1024], index: 4, kind: output, shape index: {}]  }
   0x1   :  { %2259 = sst [smem:[#allocation8_spill]] %s2252_s0 }
   0x2   :  { %2260 = sst [smem:[#allocation9_spill]] %s2253_s1 }
   0x3   :  { %s1845_s15 = smov 0   ;;  %s1847_s16 = smov 0  }
   0x4   :  { %s1849_s17 = smov 0   ;;  %s1851_s18 = smov 0  }
   0x5   :  { %s1853_s19 = smov 0   ;;  %s1855_s20 = smov 0  }
   0x6   :  { %s1857_s21 = smov 0   ;;  %s1859_s22 = smov 0  }
   0x7   :  { %s1861_s23 = smov 0   ;;  %s1863_s24 = smov 0  }
   0x8   :  { %s1865_s25 = smov 0  }
   0x9 LB: > { %s1426_s26 = sadd.s32 4294967295, %s1817_s25   ;;  %s26_s27 = sadd.s32 1, %s1809_s23  ;;  %s1817_s25 = sphi %s1865_s25, %s14_s25   ;;  %s1813_s24 = sphi %s1863_s24, %s2279_s24   ;;  %s1809_s23 = sphi %s1861_s23, %s2278_s23   ;;  %s1805_s22 = sphi %s1859_s22, %s2277_s22   ;;  %s1801_s21 = sphi %s1857_s21, %s2276_s21   ;;  %s1797_s20 = sphi %s1855_s20, %s2275_s20   ;;  %s1793_s19 = sphi %s1853_s19, %s2274_s19   ;;  %s1789_s18 = sphi %s1851_s18, %s2273_s18   ;;  %s1785_s17 = sphi %s1849_s17, %s2272_s17   ;;  %s1781_s16 = sphi %s1847_s16, %s2271_s16   ;;  %s1777_s15 = sphi %s1845_s15, %s2270_s15  }
   0xa   : > { %p27_p0 = scmp.ge.s32.totalorder %s26_s27, 16  ;;  %s29_s28 = sadd.s32 1, %s1813_s24 }
   0xb   : > { %s42_s29 = sadd.s32 1, %s1797_s20  ;;  %p49_p1 = scmp.ne.s32.totalorder %s1797_s20, %s1793_s19 }
   0xc   : > { %s2281_s27 = smov (%p27_p0, %s26_s27), 0  ;;  %s2283_s28 = smov (!%p27_p0, %s29_s28), %s1813_s24 }
   0xd   : > { %2261 = sst [smem:[#allocation6_spill]] %s2281_s27  ;;  %s38_s30 = ssub.s32 %s1809_s23, %s2281_s27 }
   0xe   : > { %p50_p2 = scmp.eq.s32.totalorder %s1817_s25, 0  ;;  %p31_p3 = scmp.ge.s32.totalorder %s2283_s28, 4 }
   0xf   : > { %p40_p4 = scmp.eq.s32.totalorder %s38_s30, 0  ;;  %s70_s6 = sadd.s32 1, %s1789_s18 }
  0x10   : > { %p1912_p5 = por %p50_p2, %p49_p1  ;;  %s2285_s28 = smov (%p31_p3, %s2283_s28), 0 }
  0x11   : > { %2263 = sst [smem:[#allocation7_spill]] %s2285_s28  ;;  %s66_s8 = ssub.s32 %s1813_s24, %s2285_s28 }
  0x12   : > { %s1920_s7 = scalar_select %p40_p4, %s1797_s20, %s42_s29  }
  0x13   : > { %p77_p6 = scmp.ne.s32.totalorder %s1789_s18, %s1785_s17  ;;  %s67_s9 = sor.u32 %s66_s8, %s38_s30 }
  0x14   : > { %p148_p7 = scmp.eq.s32.totalorder %s66_s8, 0  ;;  %p68_p8 = scmp.eq.s32.totalorder %s67_s9, 0 }
  0x15   : > { %p1926_p9 = por %p77_p6, %p50_p2  ;;  %s150_s11 = sadd.s32 1, %s1781_s16 }
  0x16   : > { %p160_p10 = scmp.ne.s32.totalorder %s1781_s16, %s1777_s15  ;;  %p161_p11 = scmp.eq.s32.totalorder %s1426_s26, 63 }
  0x17   : > { %s1934_s12 = scalar_select %p68_p8, %s1789_s18, %s70_s6  }
  0x18   : > { %s1937_s13 = scalar_select %p148_p7, %s1781_s16, %s150_s11  }
  0x19   : > { %p1939_p12 = por %p161_p11, %p160_p10  ;;  %p1429_p13 = scmp.ge.s32.totalorder %s1817_s25, 64 }
  0x1b   : > { %183 = sbr.rel (%p1429_p13) target bundleno = 122 (0x7a), region = 16 }
  0x22   : > { %186 = sbr.rel (!%p1912_p5) target bundleno = 48 (0x30), region = 20  ;;  %s188_s29 = sand.u32 (%p1912_p5), 1, %s1797_s20  }
  0x23   : > { %s1523_s30 = sshll.u32 (%p1912_p5), %s1809_s23, 4  ;;  %s1430_s8 = sshll.u32 (%p1912_p5), %s188_s29, 6 }
  0x24   : > { %s2266_s0 = sld [smem:[#allocation8_spill]] (%p1912_p5)  ;;  %s190_s26 = scalar_lea.vmem (%p1912_p5), [#allocation3], %s1430_s8 }
  0x2a   : > { %s196_s11 = scalar_lea.vmem %s2266_s0, %s1523_s30 }
  0x2b   : > { %v209_v0 = vld [vmem:[%s196_s11] sm:$0xff]  ;;  %v211_v1 = vld [vmem:[%s196_s11 + $0x8] sm:$0xff] }
  0x2c   : > { %v213_v2 = vld [vmem:[%s196_s11 + $0x100] sm:$0xff]  ;;  %210 = vst [vmem:[%s190_s26] sm:$0xff] %v209_v0  ;;  %212 = vst [vmem:[%s190_s26 + $0x8] sm:$0xff] %v211_v1  ;;  %v215_v3 = vld [vmem:[%s196_s11 + $0x108] sm:$0xff] }
  0x2d   : > { %214 = vst [vmem:[%s190_s26 + $0x10] sm:$0xff] %v213_v2  ;;  %v217_v4 = vld [vmem:[%s196_s11 + $0x200] sm:$0xff]  ;;  %v219_v5 = vld [vmem:[%s196_s11 + $0x208] sm:$0xff]  ;;  %216 = vst [vmem:[%s190_s26 + $0x18] sm:$0xff] %v215_v3 }
  0x2e   : > { %218 = vst [vmem:[%s190_s26 + $0x20] sm:$0xff] %v217_v4  ;;  %220 = vst [vmem:[%s190_s26 + $0x28] sm:$0xff] %v219_v5  ;;  %v221_v6 = vld [vmem:[%s196_s11 + $0x300] sm:$0xff]  ;;  %v223_v7 = vld [vmem:[%s196_s11 + $0x308] sm:$0xff] }
  0x2f   : > { %222 = vst [vmem:[%s190_s26 + $0x30] sm:$0xff] %v221_v6  ;;  %224 = vst [vmem:[%s190_s26 + $0x38] sm:$0xff] %v223_v7 }
  0x30 PF: > { %230 = sbr.rel (!%p1926_p9) target bundleno = 122 (0x7a), region = 43  ;;  %s232_s5 = sand.u32 (%p1926_p9), 1, %s1789_s18  }
  0x31   : > { %s1435_s29 = sshll.u32 (%p1926_p9), %s1813_s24, 1  ;;  %s1433_s30 = sshll.u32 (%p1926_p9), %s232_s5, 9 }
  0x32   : > { %s1524_s8 = sshll.u32 (%p1926_p9), %s1809_s23, 9  ;;  %s2267_s1 = sld [smem:[#allocation9_spill]] (%p1926_p9) }
  0x33   : > { %s238_s6 = sadd.s32 (%p1926_p9), %s1524_s8, %s1435_s29  ;;  %s1964_s10 = scalar_lea.vmem (%p1926_p9), [#allocation4], %s1433_s30 }
  0x34   : > { %s1437_s9 = sshll.u32 (%p1926_p9), %s238_s6, 2 }
  0x38   : > { %s1959_s27 = scalar_lea.vmem %s2267_s1, %s1437_s9 }
  0x39   : > { %v394_v8 = vld [vmem:[%s1959_s27] sm:$0xff] }
  0x3a   : > { %v396_v9 = vld [vmem:[%s1959_s27 + $0x20] sm:$0xff]  ;;  %395 = vst [vmem:[%s1964_s10] sm:$0xff] %v394_v8 }
  0x3b   : > { %v398_v10 = vld [vmem:[%s1959_s27 + $0x40] sm:$0xff]  ;;  %397 = vst [vmem:[%s1964_s10 + $0x8] sm:$0xff] %v396_v9 }
  0x3c   : > { %399 = vst [vmem:[%s1964_s10 + $0x10] sm:$0xff] %v398_v10  ;;  %v400_v11 = vld [vmem:[%s1959_s27 + $0x60] sm:$0xff] }
  0x3d   : > { %v402_v12 = vld [vmem:[%s1959_s27 + $0x80] sm:$0xff]  ;;  %401 = vst [vmem:[%s1964_s10 + $0x18] sm:$0xff] %v400_v11 }
  0x3e   : > { %v404_v13 = vld [vmem:[%s1959_s27 + $0xa0] sm:$0xff]  ;;  %403 = vst [vmem:[%s1964_s10 + $0x20] sm:$0xff] %v402_v12 }
  0x3f   : > { %405 = vst [vmem:[%s1964_s10 + $0x28] sm:$0xff] %v404_v13  ;;  %v406_v14 = vld [vmem:[%s1959_s27 + $0xc0] sm:$0xff] }
  0x40   : > { %v408_v15 = vld [vmem:[%s1959_s27 + $0xe0] sm:$0xff]  ;;  %407 = vst [vmem:[%s1964_s10 + $0x30] sm:$0xff] %v406_v14 }
  0x41   : > { %v410_v16 = vld [vmem:[%s1959_s27 + $0x100] sm:$0xff]  ;;  %409 = vst [vmem:[%s1964_s10 + $0x38] sm:$0xff] %v408_v15 }
  0x42   : > { %411 = vst [vmem:[%s1964_s10 + $0x40] sm:$0xff] %v410_v16  ;;  %v412_v17 = vld [vmem:[%s1959_s27 + $0x120] sm:$0xff] }
  0x43   : > { %v414_v18 = vld [vmem:[%s1959_s27 + $0x140] sm:$0xff]  ;;  %413 = vst [vmem:[%s1964_s10 + $0x48] sm:$0xff] %v412_v17 }
  0x44   : > { %v416_v19 = vld [vmem:[%s1959_s27 + $0x160] sm:$0xff]  ;;  %415 = vst [vmem:[%s1964_s10 + $0x50] sm:$0xff] %v414_v18 }
  0x45   : > { %417 = vst [vmem:[%s1964_s10 + $0x58] sm:$0xff] %v416_v19  ;;  %v418_v20 = vld [vmem:[%s1959_s27 + $0x180] sm:$0xff] }
  0x46   : > { %v420_v21 = vld [vmem:[%s1959_s27 + $0x1a0] sm:$0xff]  ;;  %419 = vst [vmem:[%s1964_s10 + $0x60] sm:$0xff] %v418_v20 }
  0x47   : > { %v422_v22 = vld [vmem:[%s1959_s27 + $0x1c0] sm:$0xff]  ;;  %421 = vst [vmem:[%s1964_s10 + $0x68] sm:$0xff] %v420_v21 }
  0x48   : > { %423 = vst [vmem:[%s1964_s10 + $0x70] sm:$0xff] %v422_v22  ;;  %v424_v23 = vld [vmem:[%s1959_s27 + $0x1e0] sm:$0xff] }
  0x49   : > { %v426_v24 = vld [vmem:[%s1959_s27 + $0x200] sm:$0xff]  ;;  %425 = vst [vmem:[%s1964_s10 + $0x78] sm:$0xff] %v424_v23 }
  0x4a   : > { %v428_v25 = vld [vmem:[%s1959_s27 + $0x220] sm:$0xff]  ;;  %427 = vst [vmem:[%s1964_s10 + $0x80] sm:$0xff] %v426_v24 }
  0x4b   : > { %429 = vst [vmem:[%s1964_s10 + $0x88] sm:$0xff] %v428_v25  ;;  %v430_v26 = vld [vmem:[%s1959_s27 + $0x240] sm:$0xff] }
  0x4c   : > { %v432_v27 = vld [vmem:[%s1959_s27 + $0x260] sm:$0xff]  ;;  %431 = vst [vmem:[%s1964_s10 + $0x90] sm:$0xff] %v430_v26 }
  0x4d   : > { %v434_v28 = vld [vmem:[%s1959_s27 + $0x280] sm:$0xff]  ;;  %433 = vst [vmem:[%s1964_s10 + $0x98] sm:$0xff] %v432_v27 }
  0x4e   : > { %435 = vst [vmem:[%s1964_s10 + $0xa0] sm:$0xff] %v434_v28  ;;  %v436_v29 = vld [vmem:[%s1959_s27 + $0x2a0] sm:$0xff] }
  0x4f   : > { %v438_v30 = vld [vmem:[%s1959_s27 + $0x2c0] sm:$0xff]  ;;  %437 = vst [vmem:[%s1964_s10 + $0xa8] sm:$0xff] %v436_v29 }
  0x50   : > { %v440_v31 = vld [vmem:[%s1959_s27 + $0x2e0] sm:$0xff]  ;;  %439 = vst [vmem:[%s1964_s10 + $0xb0] sm:$0xff] %v438_v30 }
  0x51   : > { %441 = vst [vmem:[%s1964_s10 + $0xb8] sm:$0xff] %v440_v31  ;;  %v442_v32 = vld [vmem:[%s1959_s27 + $0x300] sm:$0xff] }
  0x52   : > { %v444_v33 = vld [vmem:[%s1959_s27 + $0x320] sm:$0xff]  ;;  %443 = vst [vmem:[%s1964_s10 + $0xc0] sm:$0xff] %v442_v32 }
  0x53   : > { %v446_v34 = vld [vmem:[%s1959_s27 + $0x340] sm:$0xff]  ;;  %445 = vst [vmem:[%s1964_s10 + $0xc8] sm:$0xff] %v444_v33 }
  0x54   : > { %447 = vst [vmem:[%s1964_s10 + $0xd0] sm:$0xff] %v446_v34  ;;  %v448_v35 = vld [vmem:[%s1959_s27 + $0x360] sm:$0xff] }
  0x55   : > { %v450_v36 = vld [vmem:[%s1959_s27 + $0x380] sm:$0xff]  ;;  %449 = vst [vmem:[%s1964_s10 + $0xd8] sm:$0xff] %v448_v35 }
  0x56   : > { %v452_v37 = vld [vmem:[%s1959_s27 + $0x3a0] sm:$0xff]  ;;  %451 = vst [vmem:[%s1964_s10 + $0xe0] sm:$0xff] %v450_v36 }
  0x57   : > { %453 = vst [vmem:[%s1964_s10 + $0xe8] sm:$0xff] %v452_v37  ;;  %v454_v38 = vld [vmem:[%s1959_s27 + $0x3c0] sm:$0xff] }
  0x58   : > { %v456_v39 = vld [vmem:[%s1959_s27 + $0x3e0] sm:$0xff]  ;;  %455 = vst [vmem:[%s1964_s10 + $0xf0] sm:$0xff] %v454_v38 }
  0x59   : > { %v458_v40 = vld [vmem:[%s1959_s27 + $0x400] sm:$0xff]  ;;  %457 = vst [vmem:[%s1964_s10 + $0xf8] sm:$0xff] %v456_v39 }
  0x5a   : > { %459 = vst [vmem:[%s1964_s10 + $0x100] sm:$0xff] %v458_v40  ;;  %v460_v41 = vld [vmem:[%s1959_s27 + $0x420] sm:$0xff] }
  0x5b   : > { %v462_v42 = vld [vmem:[%s1959_s27 + $0x440] sm:$0xff]  ;;  %461 = vst [vmem:[%s1964_s10 + $0x108] sm:$0xff] %v460_v41 }
  0x5c   : > { %v464_v43 = vld [vmem:[%s1959_s27 + $0x460] sm:$0xff]  ;;  %463 = vst [vmem:[%s1964_s10 + $0x110] sm:$0xff] %v462_v42 }
  0x5d   : > { %465 = vst [vmem:[%s1964_s10 + $0x118] sm:$0xff] %v464_v43  ;;  %v466_v44 = vld [vmem:[%s1959_s27 + $0x480] sm:$0xff] }
  0x5e   : > { %v468_v45 = vld [vmem:[%s1959_s27 + $0x4a0] sm:$0xff]  ;;  %467 = vst [vmem:[%s1964_s10 + $0x120] sm:$0xff] %v466_v44 }
  0x5f   : > { %v470_v46 = vld [vmem:[%s1959_s27 + $0x4c0] sm:$0xff]  ;;  %469 = vst [vmem:[%s1964_s10 + $0x128] sm:$0xff] %v468_v45 }
  0x60   : > { %471 = vst [vmem:[%s1964_s10 + $0x130] sm:$0xff] %v470_v46  ;;  %v472_v47 = vld [vmem:[%s1959_s27 + $0x4e0] sm:$0xff] }
  0x61   : > { %v474_v48 = vld [vmem:[%s1959_s27 + $0x500] sm:$0xff]  ;;  %473 = vst [vmem:[%s1964_s10 + $0x138] sm:$0xff] %v472_v47 }
  0x62   : > { %v476_v49 = vld [vmem:[%s1959_s27 + $0x520] sm:$0xff]  ;;  %475 = vst [vmem:[%s1964_s10 + $0x140] sm:$0xff] %v474_v48 }
  0x63   : > { %477 = vst [vmem:[%s1964_s10 + $0x148] sm:$0xff] %v476_v49  ;;  %v478_v50 = vld [vmem:[%s1959_s27 + $0x540] sm:$0xff] }
  0x64   : > { %v480_v51 = vld [vmem:[%s1959_s27 + $0x560] sm:$0xff]  ;;  %479 = vst [vmem:[%s1964_s10 + $0x150] sm:$0xff] %v478_v50 }
  0x65   : > { %v482_v52 = vld [vmem:[%s1959_s27 + $0x580] sm:$0xff]  ;;  %481 = vst [vmem:[%s1964_s10 + $0x158] sm:$0xff] %v480_v51 }
  0x66   : > { %483 = vst [vmem:[%s1964_s10 + $0x160] sm:$0xff] %v482_v52  ;;  %v484_v53 = vld [vmem:[%s1959_s27 + $0x5a0] sm:$0xff] }
  0x67   : > { %v486_v54 = vld [vmem:[%s1959_s27 + $0x5c0] sm:$0xff]  ;;  %485 = vst [vmem:[%s1964_s10 + $0x168] sm:$0xff] %v484_v53 }
  0x68   : > { %v488_v55 = vld [vmem:[%s1959_s27 + $0x5e0] sm:$0xff]  ;;  %487 = vst [vmem:[%s1964_s10 + $0x170] sm:$0xff] %v486_v54 }
  0x69   : > { %489 = vst [vmem:[%s1964_s10 + $0x178] sm:$0xff] %v488_v55  ;;  %v490_v56 = vld [vmem:[%s1959_s27 + $0x600] sm:$0xff] }
  0x6a   : > { %v492_v57 = vld [vmem:[%s1959_s27 + $0x620] sm:$0xff]  ;;  %491 = vst [vmem:[%s1964_s10 + $0x180] sm:$0xff] %v490_v56 }
  0x6b   : > { %v494_v58 = vld [vmem:[%s1959_s27 + $0x640] sm:$0xff]  ;;  %493 = vst [vmem:[%s1964_s10 + $0x188] sm:$0xff] %v492_v57 }
  0x6c   : > { %495 = vst [vmem:[%s1964_s10 + $0x190] sm:$0xff] %v494_v58  ;;  %v496_v59 = vld [vmem:[%s1959_s27 + $0x660] sm:$0xff] }
  0x6d   : > { %v498_v60 = vld [vmem:[%s1959_s27 + $0x680] sm:$0xff]  ;;  %497 = vst [vmem:[%s1964_s10 + $0x198] sm:$0xff] %v496_v59 }
  0x6e   : > { %v500_v61 = vld [vmem:[%s1959_s27 + $0x6a0] sm:$0xff]  ;;  %499 = vst [vmem:[%s1964_s10 + $0x1a0] sm:$0xff] %v498_v60 }
  0x6f   : > { %501 = vst [vmem:[%s1964_s10 + $0x1a8] sm:$0xff] %v500_v61  ;;  %v502_v62 = vld [vmem:[%s1959_s27 + $0x6c0] sm:$0xff] }
  0x70   : > { %v504_v63 = vld [vmem:[%s1959_s27 + $0x6e0] sm:$0xff]  ;;  %503 = vst [vmem:[%s1964_s10 + $0x1b0] sm:$0xff] %v502_v62 }
  0x71   : > { %v506_v0 = vld [vmem:[%s1959_s27 + $0x700] sm:$0xff]  ;;  %505 = vst [vmem:[%s1964_s10 + $0x1b8] sm:$0xff] %v504_v63 }
  0x72   : > { %507 = vst [vmem:[%s1964_s10 + $0x1c0] sm:$0xff] %v506_v0  ;;  %v508_v1 = vld [vmem:[%s1959_s27 + $0x720] sm:$0xff] }
  0x73   : > { %v510_v2 = vld [vmem:[%s1959_s27 + $0x740] sm:$0xff]  ;;  %509 = vst [vmem:[%s1964_s10 + $0x1c8] sm:$0xff] %v508_v1 }
  0x74   : > { %v512_v3 = vld [vmem:[%s1959_s27 + $0x760] sm:$0xff]  ;;  %511 = vst [vmem:[%s1964_s10 + $0x1d0] sm:$0xff] %v510_v2 }
  0x75   : > { %513 = vst [vmem:[%s1964_s10 + $0x1d8] sm:$0xff] %v512_v3  ;;  %v514_v4 = vld [vmem:[%s1959_s27 + $0x780] sm:$0xff] }
  0x76   : > { %v516_v5 = vld [vmem:[%s1959_s27 + $0x7a0] sm:$0xff]  ;;  %515 = vst [vmem:[%s1964_s10 + $0x1e0] sm:$0xff] %v514_v4 }
  0x77   : > { %v518_v6 = vld [vmem:[%s1959_s27 + $0x7c0] sm:$0xff]  ;;  %517 = vst [vmem:[%s1964_s10 + $0x1e8] sm:$0xff] %v516_v5 }
  0x78   : > { %519 = vst [vmem:[%s1964_s10 + $0x1f0] sm:$0xff] %v518_v6  ;;  %v520_v7 = vld [vmem:[%s1959_s27 + $0x7e0] sm:$0xff] }
  0x79   : > { %521 = vst [vmem:[%s1964_s10 + $0x1f8] sm:$0xff] %v520_v7 }
  0x7a PF: > { %p1438_p0 = scmp.ge.s32.totalorder %s1817_s25, 1  ;;  %p542_p1 = scmp.lt.s32.totalorder %s1817_s25, 65 }
  0x7c   : > { %p543_p2 = pnand %p1438_p0, %p542_p1 }
  0x7d   : > { %s549_s0 = sand.u32 (!%p543_p2), 1, %s1793_s19   ;;  %s556_s28 = sand.u32 (!%p543_p2), 1, %s1785_s17  }
  0x7e   : > { %546 = sbr.rel (%p543_p2) target bundleno = 457 (0x1c9), region = 89  ;;  %s1439_s11 = sshll.u32 (!%p543_p2), %s549_s0, 6 }
  0x7f   : > { %s1440_s26 = sshll.u32 (!%p543_p2), %s556_s28, 9  ;;  %s589_s5 = sand.u32 (!%p543_p2), 1, %s1777_s15  }
  0x80   : > { %s1442_s29 = sshll.u32 (!%p543_p2), %s1805_s22, 1  ;;  %s1441_s27 = sshll.u32 (!%p543_p2), %s589_s5, 6 }
  0x81   : > { %p597_p3 = scmp.lt.s32.totalorder (!%p543_p2), %s1442_s29, 7  ;;  %s2107_s19 = scalar_lea.vmem (!%p543_p2), [#allocation3], %s1439_s11 }
  0x82   : > { %s2109_s17 = scalar_lea.vmem (!%p543_p2), [#allocation4], %s1440_s26  ;;  %s2111_s15 = scalar_lea.vmem (!%p543_p2), [#allocation5], %s1441_s27 }
  0x83   : > { %p1444_p4 = scmp.ne.s32.totalorder (!%p543_p2), %s1801_s21, 0 }
  0x85   : > { %s2287_s29 = smov (!%p597_p3, %s1442_s29), 7  ;;  %611 = sbr.rel (%p1444_p4) target bundleno = 140 (0x8c), region = 101 }
  0x86   : > { %s599_s6 = scalar_lea.vmem %s2254_s2, %s2287_s29  ;;  %s604_s1 = scalar_lea.vmem %s2255_s3, %s2287_s29  ;;  %v1819_v8 = vmov (!%p1444_p4), 0.0  }
  0x87   : > { %612 = vst [vmem:[#allocation2] sm:$0xff] (!%p1444_p4), %v1819_v8  ;;  %613 = vst [vmem:[#allocation2 + $0x8] sm:$0xff] (!%p1444_p4), %v1819_v8 }
  0x88   : > { %614 = vst [vmem:[#allocation2 + $0x10] sm:$0xff] (!%p1444_p4), %v1819_v8  ;;  %615 = vst [vmem:[#allocation2 + $0x18] sm:$0xff] (!%p1444_p4), %v1819_v8 }
  0x89   : > { %616 = vst [vmem:[#allocation2 + $0x20] sm:$0xff] (!%p1444_p4), %v1819_v8  ;;  %617 = vst [vmem:[#allocation2 + $0x28] sm:$0xff] (!%p1444_p4), %v1819_v8 }
  0x8a   : > { %618 = vst [vmem:[#allocation2 + $0x30] sm:$0xff] (!%p1444_p4), %v1819_v8  ;;  %619 = vst [vmem:[#allocation2 + $0x38] sm:$0xff] (!%p1444_p4), %v1819_v8 }
  0x8c PF: > { %v1623_v9 = vld [vmem:[%s2109_s17 + $0x4] ss:$8 sps:$4 sm:$0xff]   ;;  %v1627_v11 = vld [vmem:[%s2109_s17] ss:$8 sps:$4 sm:$0xff]   ;;  %v1629_v13 = vld [vmem:[%s2109_s17 + $0x14] ss:$8 sps:$4 sm:$0xff]  }
  0x8d   : > { %v1625_v10 = vld [vmem:[%s2109_s17 + $0x104] ss:$8 sps:$4 sm:$0xff]   ;;  %1060 = vmatprep.subr.bf16.mxu1 %v1623_v9  ;;  %v1628_v12 = vld [vmem:[%s2109_s17 + $0x100] ss:$8 sps:$4 sm:$0xff]   ;;  %v1631_v14 = vld [vmem:[%s2109_s17 + $0x114] ss:$8 sps:$4 sm:$0xff]  }
  0x8e   : > { %1113 = vmatprep.subr.bf16.mxu0 %v1625_v10  ;;  %1061 = vmatpush1.bf16.msra.mxu1 %v1627_v11  ;;  %v1633_v15 = vld [vmem:[%s2109_s17 + $0x10] ss:$8 sps:$4 sm:$0xff]   ;;  %v1635_v17 = vld [vmem:[%s2109_s17 + $0x24] ss:$8 sps:$4 sm:$0xff]   ;;  %v1639_v19 = vld [vmem:[%s2109_s17 + $0x20] ss:$8 sps:$4 sm:$0xff]  }
  0x8f   : > { %1114 = vmatpush1.bf16.msra.mxu0 %v1628_v12  ;;  %1062 = vmatprep.subr.bf16.mxu1 %v1629_v13  ;;  %v1634_v16 = vld [vmem:[%s2109_s17 + $0x110] ss:$8 sps:$4 sm:$0xff]   ;;  %v1637_v18 = vld [vmem:[%s2109_s17 + $0x124] ss:$8 sps:$4 sm:$0xff]   ;;  %v1640_v20 = vld [vmem:[%s2109_s17 + $0x120] ss:$8 sps:$4 sm:$0xff]  }
  0x90   : > { %1115 = vmatprep.subr.bf16.mxu0 %v1631_v14  ;;  %v1641_v21 = vld [vmem:[%s2109_s17 + $0x34] ss:$8 sps:$4 sm:$0xff]   ;;  %v1645_v23 = vld [vmem:[%s2109_s17 + $0x30] ss:$8 sps:$4 sm:$0xff]   ;;  %v1647_v25 = vld [vmem:[%s2109_s17 + $0x44] ss:$8 sps:$4 sm:$0xff]  }
  0x91   : > { %v1643_v22 = vld [vmem:[%s2109_s17 + $0x134] ss:$8 sps:$4 sm:$0xff]   ;;  %v1646_v24 = vld [vmem:[%s2109_s17 + $0x130] ss:$8 sps:$4 sm:$0xff]   ;;  %v1649_v26 = vld [vmem:[%s2109_s17 + $0x144] ss:$8 sps:$4 sm:$0xff]  }
  0x92   : > { %1063 = vmatpush1.bf16.msra.mxu1 %v1633_v15  ;;  %v1651_v27 = vld [vmem:[%s2109_s17 + $0x40] ss:$8 sps:$4 sm:$0xff]   ;;  %v1653_v29 = vld [vmem:[%s2109_s17 + $0x54] ss:$8 sps:$4 sm:$0xff]   ;;  %v1657_v31 = vld [vmem:[%s2109_s17 + $0x50] ss:$8 sps:$4 sm:$0xff]  }
  0x93   : > { %1116 = vmatpush1.bf16.msra.mxu0 %v1634_v16  ;;  %1064 = vmatprep.subr.bf16.mxu1 %v1635_v17  ;;  %v1652_v28 = vld [vmem:[%s2109_s17 + $0x140] ss:$8 sps:$4 sm:$0xff]   ;;  %v1655_v30 = vld [vmem:[%s2109_s17 + $0x154] ss:$8 sps:$4 sm:$0xff]   ;;  %v1658_v32 = vld [vmem:[%s2109_s17 + $0x150] ss:$8 sps:$4 sm:$0xff]  }
  0x94   : > { %1117 = vmatprep.subr.bf16.mxu0 %v1637_v18  ;;  %v1659_v33 = vld [vmem:[%s2109_s17 + $0x64] ss:$8 sps:$4 sm:$0xff]   ;;  %v1663_v35 = vld [vmem:[%s2109_s17 + $0x60] ss:$8 sps:$4 sm:$0xff]   ;;  %v1665_v37 = vld [vmem:[%s2109_s17 + $0x74] ss:$8 sps:$4 sm:$0xff]  }
  0x95   : > { %v1661_v34 = vld [vmem:[%s2109_s17 + $0x164] ss:$8 sps:$4 sm:$0xff]   ;;  %v1664_v36 = vld [vmem:[%s2109_s17 + $0x160] ss:$8 sps:$4 sm:$0xff]   ;;  %v1667_v38 = vld [vmem:[%s2109_s17 + $0x174] ss:$8 sps:$4 sm:$0xff]  }
  0x96   : > { %1065 = vmatpush1.bf16.msra.mxu1 %v1639_v19  ;;  %v1669_v39 = vld [vmem:[%s2109_s17 + $0x70] ss:$8 sps:$4 sm:$0xff]   ;;  %v1671_v41 = vld [vmem:[%s2109_s17 + $0x84] ss:$8 sps:$4 sm:$0xff]   ;;  %v1675_v43 = vld [vmem:[%s2109_s17 + $0x80] ss:$8 sps:$4 sm:$0xff]  }
  0x97   : > { %1118 = vmatpush1.bf16.msra.mxu0 %v1640_v20  ;;  %1066 = vmatprep.subr.bf16.mxu1 %v1641_v21  ;;  %v1670_v40 = vld [vmem:[%s2109_s17 + $0x170] ss:$8 sps:$4 sm:$0xff]   ;;  %v1673_v42 = vld [vmem:[%s2109_s17 + $0x184] ss:$8 sps:$4 sm:$0xff]   ;;  %v1676_v44 = vld [vmem:[%s2109_s17 + $0x180] ss:$8 sps:$4 sm:$0xff]  }
  0x98   : > { %1119 = vmatprep.subr.bf16.mxu0 %v1643_v22  ;;  %v1677_v45 = vld [vmem:[%s2109_s17 + $0x94] ss:$8 sps:$4 sm:$0xff]   ;;  %v1681_v47 = vld [vmem:[%s2109_s17 + $0x90] ss:$8 sps:$4 sm:$0xff]   ;;  %v1683_v49 = vld [vmem:[%s2109_s17 + $0xa4] ss:$8 sps:$4 sm:$0xff]  }
  0x99   : > { %v1679_v46 = vld [vmem:[%s2109_s17 + $0x194] ss:$8 sps:$4 sm:$0xff]   ;;  %v1682_v48 = vld [vmem:[%s2109_s17 + $0x190] ss:$8 sps:$4 sm:$0xff]   ;;  %v1685_v50 = vld [vmem:[%s2109_s17 + $0x1a4] ss:$8 sps:$4 sm:$0xff]  }
  0x9a   : > { %1067 = vmatpush1.bf16.msra.mxu1 %v1645_v23  ;;  %v1687_v51 = vld [vmem:[%s2109_s17 + $0xa0] ss:$8 sps:$4 sm:$0xff]   ;;  %v1689_v53 = vld [vmem:[%s2109_s17 + $0xb4] ss:$8 sps:$4 sm:$0xff]   ;;  %v1693_v55 = vld [vmem:[%s2109_s17 + $0xb0] ss:$8 sps:$4 sm:$0xff]  }
  0x9b   : > { %1120 = vmatpush1.bf16.msra.mxu0 %v1646_v24  ;;  %1068 = vmatprep.subr.bf16.mxu1 %v1647_v25  ;;  %v1688_v52 = vld [vmem:[%s2109_s17 + $0x1a0] ss:$8 sps:$4 sm:$0xff]   ;;  %v1691_v54 = vld [vmem:[%s2109_s17 + $0x1b4] ss:$8 sps:$4 sm:$0xff]   ;;  %v1694_v56 = vld [vmem:[%s2109_s17 + $0x1b0] ss:$8 sps:$4 sm:$0xff]  }
  0x9c   : > { %1121 = vmatprep.subr.bf16.mxu0 %v1649_v26  ;;  %v1695_v57 = vld [vmem:[%s2109_s17 + $0xc4] ss:$8 sps:$4 sm:$0xff]   ;;  %v1699_v61 = vld [vmem:[%s2109_s17 + $0xc0] ss:$8 sps:$4 sm:$0xff]   ;;  %v1701_v63 = vld [vmem:[%s2109_s17 + $0xd4] ss:$8 sps:$4 sm:$0xff]  }
  0x9d   : > { %v1721_v58 = vld [vmem:[%s2107_s19 + $0x4] ss:$16 sps:$4 sm:$0xff]   ;;  %v1724_v60 = vld [vmem:[%s2107_s19 + $0xc] ss:$16 sps:$4 sm:$0xff]   ;;  %v1700_v62 = vld [vmem:[%s2109_s17 + $0x1c0] ss:$8 sps:$4 sm:$0xff]  }
  0x9e   : > { %1069 = vmatpush1.bf16.msra.mxu1 %v1651_v27  ;;  %v1697_v59 = vld [vmem:[%s2109_s17 + $0x1c4] ss:$8 sps:$4 sm:$0xff]   ;;  %1092 = vmatprep.mubr.bf16.mxu1 %v1721_v58  ;;  %v1703_v0 = vld [vmem:[%s2109_s17 + $0x1d4] ss:$8 sps:$4 sm:$0xff]   ;;  %v1705_v1 = vld [vmem:[%s2109_s17 + $0xd0] ss:$8 sps:$4 sm:$0xff]  }
  0x9f   : > { %1122 = vmatpush1.bf16.msra.mxu0 %v1652_v28  ;;  %1070 = vmatprep.subr.bf16.mxu1 %v1653_v29  ;;  %v1706_v2 = vld [vmem:[%s2109_s17 + $0x1d0] ss:$8 sps:$4 sm:$0xff]   ;;  %v1707_v3 = vld [vmem:[%s2109_s17 + $0xe4] ss:$8 sps:$4 sm:$0xff]   ;;  %v1711_v5 = vld [vmem:[%s2109_s17 + $0xe0] ss:$8 sps:$4 sm:$0xff]  }
  0xa0   : > { %1123 = vmatprep.subr.bf16.mxu0 %v1655_v30  ;;  %1145 = vmatprep.mubr.bf16.mxu0 %v1724_v60  ;;  %v1709_v4 = vld [vmem:[%s2109_s17 + $0x1e4] ss:$8 sps:$4 sm:$0xff]   ;;  %v1712_v6 = vld [vmem:[%s2109_s17 + $0x1e0] ss:$8 sps:$4 sm:$0xff]   ;;  %v1713_v7 = vld [vmem:[%s2109_s17 + $0xf4] ss:$8 sps:$4 sm:$0xff]  }
  0xa1   : > { %v1715_v8 = vld [vmem:[%s2109_s17 + $0x1f4] ss:$8 sps:$4 sm:$0xff]   ;;  %v1717_v9 = vld [vmem:[%s2109_s17 + $0xf0] ss:$8 sps:$4 sm:$0xff]   ;;  %v620_v18 = vld [vmem:[#allocation2] sm:$0xff]  ;;  %p1517_p5 = scmp.ne.s32.totalorder %s1801_s21, 15 }
  0xa2   : > { %1071 = vmatpush1.bf16.msra.mxu1 %v1657_v31  ;;  %v1718_v10 = vld [vmem:[%s2109_s17 + $0x1f0] ss:$8 sps:$4 sm:$0xff]   ;;  %v1725_v13 = vld [vmem:[%s2107_s19 + $0x24] ss:$16 sps:$4 sm:$0xff]   ;;  %v1727_v14 = vld [vmem:[%s2107_s19 + $0x2c] ss:$16 sps:$4 sm:$0xff]  }
  0xa3   : > { %1124 = vmatpush1.bf16.msra.mxu0 %v1658_v32  ;;  %1072 = vmatprep.subr.bf16.mxu1 %v1659_v33  ;;  %v1719_v11 = vld [vmem:[%s2107_s19] ss:$16 sps:$4 sm:$0xff]   ;;  %v1722_v12 = vld [vmem:[%s2107_s19 + $0x8] ss:$16 sps:$4 sm:$0xff]  }
  0xa4   : > { %1125 = vmatprep.subr.bf16.mxu0 %v1661_v34  ;;  %v1729_v15 = vld [vmem:[%s2107_s19 + $0x20] ss:$16 sps:$4 sm:$0xff]   ;;  %v1730_v16 = vld [vmem:[%s2107_s19 + $0x28] ss:$16 sps:$4 sm:$0xff]  }
  0xa5   : > { %v621_v22 = vld [vmem:[#allocation2 + $0x8] sm:$0xff]  ;;  %v622_v26 = vld [vmem:[#allocation2 + $0x10] sm:$0xff]  ;;  %v623_v31 = vld [vmem:[#allocation2 + $0x18] sm:$0xff] }
  0xa6   : > { %1073 = vmatpush1.bf16.msra.mxu1 %v1663_v35  ;;  %v1214_v60 = vld [vmem:[%s604_s1] sm:$0x3] (!%p1517_p5) }
  0xa7   : > { %1126 = vmatpush1.bf16.msra.mxu0 %v1664_v36  ;;  %1074 = vmatprep.subr.bf16.mxu1 %v1665_v37 }
  0xa8   : > { %1127 = vmatprep.subr.bf16.mxu0 %v1667_v38  ;;  %v624_v38 = vld [vmem:[#allocation2 + $0x20] sm:$0xff] }
  0xaa   : > { %1075 = vmatpush1.bf16.msra.mxu1 %v1669_v39 }
  0xab   : > { %1128 = vmatpush1.bf16.msra.mxu0 %v1670_v40  ;;  %1076 = vmatprep.subr.bf16.mxu1 %v1671_v41 }
  0xac   : > { %1129 = vmatprep.subr.bf16.mxu0 %v1673_v42  ;;  %v625_v42 = vld [vmem:[#allocation2 + $0x28] sm:$0xff] }
  0xae   : > { %1077 = vmatpush1.bf16.msra.mxu1 %v1675_v43 }
  0xaf   : > { %1130 = vmatpush1.bf16.msra.mxu0 %v1676_v44  ;;  %1078 = vmatprep.subr.bf16.mxu1 %v1677_v45 }
  0xb0   : > { %1131 = vmatprep.subr.bf16.mxu0 %v1679_v46  ;;  %v626_v46 = vld [vmem:[#allocation2 + $0x30] sm:$0xff] }
  0xb2   : > { %1079 = vmatpush1.bf16.msra.mxu1 %v1681_v47 }
  0xb3   : > { %1132 = vmatpush1.bf16.msra.mxu0 %v1682_v48  ;;  %1080 = vmatprep.subr.bf16.mxu1 %v1683_v49 }
  0xb4   : > { %1133 = vmatprep.subr.bf16.mxu0 %v1685_v50 }
  0xb6   : > { %1081 = vmatpush1.bf16.msra.mxu1 %v1687_v51  ;;  %v627_v51 = vld [vmem:[#allocation2 + $0x38] sm:$0xff] }
  0xb7   : > { %1134 = vmatpush1.bf16.msra.mxu0 %v1688_v52  ;;  %1082 = vmatprep.subr.bf16.mxu1 %v1689_v53 }
  0xb8   : > { %1135 = vmatprep.subr.bf16.mxu0 %v1691_v54 }
  0xba   : > { %1083 = vmatpush1.bf16.msra.mxu1 %v1693_v55 }
  0xbb   : > { %1136 = vmatpush1.bf16.msra.mxu0 %v1694_v56  ;;  %1084 = vmatprep.subr.bf16.mxu1 %v1695_v57  ;;  %v1196_v57 = vlaneseq (!%p1517_p5) }
  0xbc   : > { %1137 = vmatprep.subr.bf16.mxu0 %v1697_v59  ;;  %v1194_v59 = vld [vmem:[%s599_s6] sm:$0x3] (!%p1517_p5) }
  0xbd   : > { %v1197_v58 = vshrl.u32 (!%p1517_p5), %v1196_v57, 7 }
  0xbe   : > { %1085 = vmatpush1.bf16.msra.mxu1 %v1699_v61 }
  0xbf   : > { %1138 = vmatpush1.bf16.msra.mxu0 %v1700_v62  ;;  %1086 = vmatprep.subr.bf16.mxu1 %v1701_v63  ;;  %v1198_v62 = vsub.s32 (!%p1517_p5), 0, %v1197_v58 }
  0xc0   : > { %1139 = vmatprep.subr.bf16.mxu0 %v1703_v0  ;;  %v1202_v0 = vsub.s32 (!%p1517_p5), 1, %v1197_v58 }
  0xc2   : > { %1087 = vmatpush1.bf16.msra.mxu1 %v1705_v1 }
  0xc3   : > { %1140 = vmatpush1.bf16.msra.mxu0 %v1706_v2  ;;  %1088 = vmatprep.subr.bf16.mxu1 %v1707_v3 }
  0xc4   : > { %1141 = vmatprep.subr.bf16.mxu0 %v1709_v4  ;;  %v1199_v4 = vrot.slane (!%p1517_p5), %v1194_v59, %v1198_v62 }
  0xc6   : > { %1089 = vmatpush1.bf16.msra.mxu1 %v1711_v5  ;;  %v1219_v5 = vrot.slane (!%p1517_p5), %v1214_v60, %v1198_v62 }
  0xc7   : > { %1142 = vmatpush1.bf16.msra.mxu0 %v1712_v6  ;;  %1090 = vmatprep.subr.bf16.mxu1 %v1713_v7  ;;  %v1203_v6 = vrot.slane (!%p1517_p5), %v1194_v59, %v1202_v0  ;;  %v1223_v7 = vrot.slane (!%p1517_p5), %v1214_v60, %v1202_v0 }
  0xc8   : > { %1143 = vmatprep.subr.bf16.mxu0 %v1715_v8 }
  0xca   : > { %1091 = vmatpush1.bf16.msra.mxu1 %v1717_v9 }
  0xcb   : > { %1144 = vmatpush1.bf16.msra.mxu0 %v1718_v10 }
  0xcd   : > { %1093 = vmatmul.mubr.bf16.vlgmr.msra.gmra.mrb[0].mxu1 %v1719_v11 }
  0xce   : > { %1146 = vmatmul.mubr.bf16.vlgmr.msra.gmra.mrb[0].mxu0 %v1722_v12  ;;  %1102 = vmatprep.mubr.bf16.mxu1 %v1725_v13 }
  0xcf   : > { %1155 = vmatprep.mubr.bf16.mxu0 %v1727_v14 }
  0xd5   : > { %1103 = vmatmul.mubr.bf16.gmra.mrb[4].mxu1 %v1729_v15 }
  0xd6   : > { %1156 = vmatmul.mubr.bf16.gmra.mrb[4].mxu0 %v1730_v16 }
 0x1a0   : > { %v1094_v17 = vpop.f32.mrb[0].mxu1 }
 0x1a1   : > { %v1147_v19 = vpop.f32.mrb[0].mxu0  ;;  %v1096_v21 = vpop.f32.mrb[1].mxu1 }
 0x1a2   : > { %v1148_v20 = vadd.f32 %v1147_v19, %v1094_v17  ;;  %v1149_v23 = vpop.f32.mrb[1].mxu0  ;;  %v1098_v25 = vpop.f32.mrb[2].mxu1 }
 0x1a3   : > { %v1150_v24 = vadd.f32 %v1149_v23, %v1096_v21  ;;  %v1151_v27 = vpop.f32.mrb[2].mxu0  ;;  %v1100_v30 = vpop.f32.mrb[3].mxu1 }
 0x1a4   : > { %v1166_v28 = vadd.f32 %v1148_v20, %v620_v18  ;;  %v1152_v29 = vadd.f32 %v1151_v27, %v1098_v25  ;;  %v1153_v32 = vpop.f32.mrb[3].mxu0 }
 0x1a5   : > { %v1167_v33 = vadd.f32 %v1150_v24, %v621_v22  ;;  %v1154_v34 = vadd.f32 %v1153_v32, %v1100_v30 }
 0x1a6   : > { %1174 = vst [vmem:[#allocation2] sm:$0xff] %v1166_v28  ;;  %v1168_v35 = vadd.f32 %v1152_v29, %v622_v26 }
 0x1a7   : > { %1175 = vst [vmem:[#allocation2 + $0x8] sm:$0xff] %v1167_v33  ;;  %v1169_v36 = vadd.f32 %v1154_v34, %v623_v31 }
 0x1a8   : > { %1176 = vst [vmem:[#allocation2 + $0x10] sm:$0xff] %v1168_v35  ;;  %v1104_v37 = vpop.f32.mrb[4].mxu1 }
 0x1a9   : > { %1177 = vst [vmem:[#allocation2 + $0x18] sm:$0xff] %v1169_v36  ;;  %v1157_v39 = vpop.f32.mrb[4].mxu0  ;;  %v1106_v41 = vpop.f32.mrb[5].mxu1 }
 0x1aa   : > { %v1158_v40 = vadd.f32 %v1157_v39, %v1104_v37  ;;  %v1159_v43 = vpop.f32.mrb[5].mxu0  ;;  %v1108_v45 = vpop.f32.mrb[6].mxu1 }
 0x1ab   : > { %v1160_v44 = vadd.f32 %v1159_v43, %v1106_v41  ;;  %v1161_v47 = vpop.f32.mrb[6].mxu0  ;;  %v1110_v50 = vpop.f32.mrb[7].mxu1  ;;  %1185 = sbr.rel (%p1517_p5) target bundleno = 449 (0x1c1), region = 105 }
 0x1ac   : > { %v1170_v48 = vadd.f32 %v1158_v40, %v624_v38  ;;  %v1162_v49 = vadd.f32 %v1161_v47, %v1108_v45  ;;  %v1163_v52 = vpop.f32.mrb[7].mxu0 }
 0x1ad   : > { %v1171_v53 = vadd.f32 %v1160_v44, %v625_v42  ;;  %v1164_v54 = vadd.f32 %v1163_v52, %v1110_v50  ;;  %v1186_v61 = vld [vmem:[#allocation2] sm:$0xff] (!%p1517_p5) }
 0x1ae   : > { %1178 = vst [vmem:[#allocation2 + $0x20] sm:$0xff] %v1170_v48  ;;  %v1172_v55 = vadd.f32 %v1162_v49, %v626_v46  ;;  %v1187_v63 = vld [vmem:[#allocation2 + $0x8] sm:$0xff] (!%p1517_p5)  ;;  %v1206_v11 = vmul.f32 (!%p1517_p5), %v1199_v4, %v1186_v61 }
 0x1af   : > { %1179 = vst [vmem:[#allocation2 + $0x28] sm:$0xff] %v1171_v53  ;;  %v1173_v56 = vadd.f32 %v1164_v54, %v627_v51  ;;  %v1188_v1 = vld [vmem:[#allocation2 + $0x10] sm:$0xff] (!%p1517_p5)  ;;  %v1207_v12 = vmul.f32 (!%p1517_p5), %v1203_v6, %v1187_v63 }
 0x1b0   : > { %1180 = vst [vmem:[#allocation2 + $0x30] sm:$0xff] %v1172_v55  ;;  %v1189_v2 = vld [vmem:[#allocation2 + $0x18] sm:$0xff] (!%p1517_p5)  ;;  %v1208_v13 = vmul.f32 (!%p1517_p5), %v1199_v4, %v1188_v1  ;;  %v1226_v19 = vadd.f32 (!%p1517_p5), %v1219_v5, %v1206_v11 }
 0x1b1   : > { %1181 = vst [vmem:[#allocation2 + $0x38] sm:$0xff] %v1173_v56  ;;  %v1209_v14 = vmul.f32 (!%p1517_p5), %v1203_v6, %v1189_v2  ;;  %v1227_v20 = vadd.f32 (!%p1517_p5), %v1223_v7, %v1207_v12 }
 0x1b2   : > { %v1228_v21 = vadd.f32 %v1219_v5, %v1208_v13  ;;  %vm1234_vm0 = vcmp.ge.f32.partialorder %v1226_v19, 0.0  ;;  %v1242_v27 = vmul.f32 0.2, %v1226_v19 }
 0x1b3   : > { %v1229_v22 = vadd.f32 %v1223_v7, %v1209_v14  ;;  %vm1235_vm1 = vcmp.ge.f32.partialorder %v1227_v20, 0.0  ;;  %v1243_v28 = vmul.f32 0.2, %v1227_v20 }
 0x1b4   : > { %vm1236_vm2 = vcmp.ge.f32.partialorder %v1228_v21, 0.0  ;;  %v1244_v29 = vmul.f32 0.2, %v1228_v21  ;;  %v1250_v31 = vsel %vm1234_vm0, %v1226_v19, %v1242_v27 }
 0x1b5   : > { %v1190_v3 = vld [vmem:[#allocation2 + $0x20] sm:$0xff]  ;;  %vm1237_vm3 = vcmp.ge.f32.partialorder %v1229_v22, 0.0  ;;  %v1245_v30 = vmul.f32 0.2, %v1229_v22  ;;  %v1251_v32 = vsel %vm1235_vm1, %v1227_v20, %v1243_v28  ;;  %1258 = vst [vmem:[%s2111_s15] sm:$0xff] %v1250_v31 }
 0x1b6   : > { %v1191_v8 = vld [vmem:[#allocation2 + $0x28] sm:$0xff]  ;;  %v1210_v15 = vmul.f32 %v1199_v4, %v1190_v3  ;;  %1259 = vst [vmem:[%s2111_s15 + $0x8] sm:$0xff] %v1251_v32  ;;  %v1252_v34 = vsel %vm1236_vm2, %v1228_v21, %v1244_v29 }
 0x1b7   : > { %v1192_v9 = vld [vmem:[#allocation2 + $0x30] sm:$0xff]  ;;  %v1211_v16 = vmul.f32 %v1203_v6, %v1191_v8  ;;  %v1253_v35 = vsel %vm1237_vm3, %v1229_v22, %v1245_v30  ;;  %1260 = vst [vmem:[%s2111_s15 + $0x10] sm:$0xff] %v1252_v34 }
 0x1b8   : > { %v1193_v10 = vld [vmem:[#allocation2 + $0x38] sm:$0xff]  ;;  %v1212_v17 = vmul.f32 %v1199_v4, %v1192_v9  ;;  %v1230_v23 = vadd.f32 %v1219_v5, %v1210_v15  ;;  %1261 = vst [vmem:[%s2111_s15 + $0x18] sm:$0xff] %v1253_v35 }
 0x1b9   : > { %v1213_v18 = vmul.f32 %v1203_v6, %v1193_v10  ;;  %v1231_v24 = vadd.f32 %v1223_v7, %v1211_v16 }
 0x1ba   : > { %v1232_v25 = vadd.f32 %v1219_v5, %v1212_v17  ;;  %vm1238_vm4 = vcmp.ge.f32.partialorder %v1230_v23, 0.0  ;;  %v1246_v33 = vmul.f32 0.2, %v1230_v23 }
 0x1bb   : > { %v1233_v26 = vadd.f32 %v1223_v7, %v1213_v18  ;;  %vm1239_vm5 = vcmp.ge.f32.partialorder %v1231_v24, 0.0  ;;  %v1247_v36 = vmul.f32 0.2, %v1231_v24 }
 0x1bc   : > { %v1254_v37 = vsel %vm1238_vm4, %v1230_v23, %v1246_v33  ;;  %vm1240_vm6 = vcmp.ge.f32.partialorder %v1232_v25, 0.0  ;;  %v1248_v38 = vmul.f32 0.2, %v1232_v25 }
 0x1bd   : > { %vm1241_vm7 = vcmp.ge.f32.partialorder %v1233_v26, 0.0  ;;  %1262 = vst [vmem:[%s2111_s15 + $0x20] sm:$0xff] %v1254_v37  ;;  %v1255_v39 = vsel %vm1239_vm5, %v1231_v24, %v1247_v36  ;;  %v1249_v40 = vmul.f32 0.2, %v1233_v26 }
 0x1be   : > { %1263 = vst [vmem:[%s2111_s15 + $0x28] sm:$0xff] %v1255_v39  ;;  %v1256_v41 = vsel %vm1240_vm6, %v1232_v25, %v1248_v38 }
 0x1bf   : > { %1264 = vst [vmem:[%s2111_s15 + $0x30] sm:$0xff] %v1256_v41  ;;  %v1257_v42 = vsel %vm1241_vm7, %v1233_v26, %v1249_v40 }
 0x1c0   : > { %1265 = vst [vmem:[%s2111_s15 + $0x38] sm:$0xff] %v1257_v42 }
 0x1c1 PF: > { %1272 = sbr.rel (!%p1939_p12) target bundleno = 457 (0x1c9), region = 109  ;;  %s1525_s1 = sshll.u32 (%p1939_p12), %s1805_s22, 4  ;;  %v1291_v43 = vld [vmem:[%s2111_s15] sm:$0xff] (%p1939_p12)  ;;  %v1293_v44 = vld [vmem:[%s2111_s15 + $0x8] sm:$0xff] (%p1939_p12)  ;;  %v1295_v45 = vld [vmem:[%s2111_s15 + $0x10] sm:$0xff] (%p1939_p12) }
 0x1c2   : > { %s1278_s29 = scalar_lea.vmem (%p1939_p12), %s2256_s4, %s1525_s1  ;;  %v1297_v46 = vld [vmem:[%s2111_s15 + $0x18] sm:$0xff] (%p1939_p12) }
 0x1c3   : > { %1292 = vst [vmem:[%s1278_s29] sm:$0xff] (%p1939_p12), %v1291_v43  ;;  %1294 = vst [vmem:[%s1278_s29 + $0x8] sm:$0xff] (%p1939_p12), %v1293_v44 }
 0x1c4   : > { %v1299_v47 = vld [vmem:[%s2111_s15 + $0x20] sm:$0xff] (%p1939_p12)  ;;  %1296 = vst [vmem:[%s1278_s29 + $0x40] sm:$0xff] (%p1939_p12), %v1295_v45  ;;  %1298 = vst [vmem:[%s1278_s29 + $0x48] sm:$0xff] (%p1939_p12), %v1297_v46 }
 0x1c5   : > { %v1301_v48 = vld [vmem:[%s2111_s15 + $0x28] sm:$0xff] (%p1939_p12)  ;;  %1300 = vst [vmem:[%s1278_s29 + $0x80] sm:$0xff] (%p1939_p12), %v1299_v47 }
 0x1c6   : > { %1302 = vst [vmem:[%s1278_s29 + $0x88] sm:$0xff] (%p1939_p12), %v1301_v48  ;;  %v1303_v49 = vld [vmem:[%s2111_s15 + $0x30] sm:$0xff] (%p1939_p12) }
 0x1c7   : > { %v1305_v50 = vld [vmem:[%s2111_s15 + $0x38] sm:$0xff] (%p1939_p12)  ;;  %1304 = vst [vmem:[%s1278_s29 + $0xc0] sm:$0xff] (%p1939_p12), %v1303_v49 }
 0x1c8   : > { %1306 = vst [vmem:[%s1278_s29 + $0xc8] sm:$0xff] %v1305_v50 }
 0x1c9 PF: > { %s14_s25 = sadd.s32 1, %s1817_s25   ;;  %s2268_s14 = sld [smem:[#allocation6_spill]] }
 0x1ca   : > { %p11_p6 = scmp.ge.s32.totalorder %s14_s25, 66   ;;  %s2269_s27 = sld [smem:[#allocation7_spill]] }
 0x1cb   : > { %s2270_s15 = smov %s1781_s16  ;;  %s2271_s16 = smov %s1937_s13 }
 0x1cc   : > { %s2272_s17 = smov %s1789_s18  ;;  %s2273_s18 = smov %s1934_s12 }
 0x1cd   : > { %s2274_s19 = smov %s1797_s20  ;;  %s2275_s20 = smov %s1920_s7 }
 0x1ce   : > { %s2276_s21 = smov %s1809_s23  ;;  %s2277_s22 = smov %s1813_s24 }
 0x1cf   : > { %s2278_s23 = smov %s2268_s14  ;;  %13 = sbr.rel (!%p11_p6) target bundleno = 9 (0x9), region = 177 }
 0x1d0   : > { %s2279_s24 = smov %s2269_s27 }

// kernel: cnn_discriminator_forward.9
= control target key start
LH: loop header
LB: loop body
LE: loop exit
PB: predicated region body
PF: predicated region fallthrough
CT: control target
= control target key end

     0   :  { %s1008_s15 = smov 0   ;;  %s1010_s16 = smov 0   ;;  %s1094_s0 = inlined_call_operand.vmem [shape: bf16[8,16384], index: 0, kind: input, shape index: {}]   ;;  %s1095_s1 = inlined_call_operand.vmem [shape: bf16[16384,128], index: 1, kind: input, shape index: {}]   ;;  %s1096_s2 = inlined_call_operand.vmem [shape: f32[1,128], index: 2, kind: input, shape index: {}]   ;;  %s1097_s3 = inlined_call_operand.vmem [shape: f32[1,128], index: 3, kind: input, shape index: {}]   ;;  %s1098_s4 = inlined_call_operand.vmem [shape: f32[8,128], index: 4, kind: output, shape index: {}]  }
   0x1   :  { %s1012_s17 = smov 0  }
   0x2 LB: > { %s26_s18 = sadd.s32 1, %s976_s16  ;;  %p805_p0 = scmp.ge.s32.totalorder %s980_s17, 1  ;;  %s980_s17 = sphi %s1012_s17, %s14_s17   ;;  %s976_s16 = sphi %s1010_s16, %s1100_s16   ;;  %s972_s15 = sphi %s1008_s15, %s1099_s15  }
   0x3   : > { %p27_p1 = scmp.ge.s32.totalorder %s26_s18, 32  ;;  %p222_p2 = scmp.lt.s32.totalorder %s980_s17, 33 }
   0x5   : > { %s1102_s18 = smov (%p27_p1, %s26_s18), 0  ;;  %p223_p3 = pnand %p805_p0, %p222_p2 }
   0x6   : > { %s806_s19 = sshll.u32 (!%p223_p3), %s972_s15, 2  ;;  %s808_s20 = sshll.u32 (!%p223_p3), %s972_s15, 6 }
   0x7   : > { %226 = sbr.rel (%p223_p3) target bundleno = 291 (0x123), region = 36  ;;  %p271_p4 = scmp.lt.s32.totalorder (!%p223_p3), %s806_s19, 127 }
   0x8   : > { %p279_p5 = scmp.lt.s32.totalorder (!%p223_p3), %s808_s20, 2047  ;;  %p810_p6 = scmp.ne.s32.totalorder (!%p223_p3), %s972_s15, 0 }
   0xe   : > { %s1104_s19 = smov (!%p271_p4, %s806_s19), 127  ;;  %s1106_s20 = smov (!%p279_p5, %s808_s20), 2047 }
   0xf   : > { %s807_s21 = sshll.u32 %s1104_s19, 2  ;;  %s809_s25 = sshll.u32 %s1106_s20, 2  ;;  %v982_v0 = vmov (!%p810_p6), 0.0  }
  0x10   : > { %s1033_s24 = scalar_lea.vmem %s1094_s0, %s807_s21  ;;  %s1038_s28 = scalar_lea.vmem %s1095_s1, %s809_s25  ;;  %305 = vst [vmem:[#allocation2] sm:$0xff] (!%p810_p6), %v982_v0 }
  0x11   : > { %304 = sbr.rel (%p810_p6) target bundleno = 24 (0x18), region = 40 }
  0x18 PF: > { %v922_v1 = vld [vmem:[%s1038_s28 + $0x40] sm:$0xff]   ;;  %v926_v5 = vld [vmem:[%s1038_s28 + $0x48] sm:$0xff]   ;;  %v930_v9 = vld [vmem:[%s1038_s28 + $0x50] sm:$0xff]   ;;  %p847_p7 = scmp.ne.s32.totalorder %s972_s15, 31 }
  0x19   : > { %v923_v2 = vld [vmem:[%s1038_s28 + $0xc0] sm:$0xff]   ;;  %853 = vmatprep.subr.bf16.mxu0 %v922_v1  ;;  %v927_v6 = vld [vmem:[%s1038_s28 + $0xc8] sm:$0xff]   ;;  %v931_v10 = vld [vmem:[%s1038_s28 + $0xd0] sm:$0xff]  }
  0x1a   : > { %v924_v3 = vld [vmem:[%s1038_s28] sm:$0xff]   ;;  %875 = vmatprep.subr.bf16.mxu1 %v923_v2  ;;  %v928_v7 = vld [vmem:[%s1038_s28 + $0x8] sm:$0xff]   ;;  %v932_v11 = vld [vmem:[%s1038_s28 + $0x10] sm:$0xff]  }
  0x1b   : > { %v925_v4 = vld [vmem:[%s1038_s28 + $0x80] sm:$0xff]   ;;  %854 = vmatpush3.bf16.msra.mxu0 %v924_v3  ;;  %v929_v8 = vld [vmem:[%s1038_s28 + $0x88] sm:$0xff]   ;;  %v933_v12 = vld [vmem:[%s1038_s28 + $0x90] sm:$0xff]  }
  0x1c   : > { %876 = vmatpush3.bf16.msra.mxu1 %v925_v4  ;;  %855 = vmatprep.subr.bf16.mxu0 %v926_v5  ;;  %v934_v13 = vld [vmem:[%s1038_s28 + $0x58] sm:$0xff]   ;;  %v938_v17 = vld [vmem:[%s1038_s28 + $0x60] sm:$0xff]   ;;  %v942_v21 = vld [vmem:[%s1038_s28 + $0x68] sm:$0xff]  }
  0x1d   : > { %877 = vmatprep.subr.bf16.mxu1 %v927_v6  ;;  %v935_v14 = vld [vmem:[%s1038_s28 + $0xd8] sm:$0xff]   ;;  %v939_v18 = vld [vmem:[%s1038_s28 + $0xe0] sm:$0xff]   ;;  %v943_v22 = vld [vmem:[%s1038_s28 + $0xe8] sm:$0xff]  }
  0x1e   : > { %v936_v15 = vld [vmem:[%s1038_s28 + $0x18] sm:$0xff]   ;;  %v940_v19 = vld [vmem:[%s1038_s28 + $0x20] sm:$0xff]   ;;  %v944_v23 = vld [vmem:[%s1038_s28 + $0x28] sm:$0xff]  }
  0x1f   : > { %856 = vmatpush3.bf16.msra.mxu0 %v928_v7  ;;  %v937_v16 = vld [vmem:[%s1038_s28 + $0x98] sm:$0xff]   ;;  %v941_v20 = vld [vmem:[%s1038_s28 + $0xa0] sm:$0xff]   ;;  %v945_v24 = vld [vmem:[%s1038_s28 + $0xa8] sm:$0xff]  }
  0x20   : > { %878 = vmatpush3.bf16.msra.mxu1 %v929_v8  ;;  %857 = vmatprep.subr.bf16.mxu0 %v930_v9  ;;  %v946_v25 = vld [vmem:[%s1038_s28 + $0x70] sm:$0xff]   ;;  %v950_v29 = vld [vmem:[%s1038_s28 + $0x78] sm:$0xff]   ;;  %v307_v33 = vld [vmem:[%s1033_s24] sm:$0xff] }
  0x21   : > { %879 = vmatprep.subr.bf16.mxu1 %v931_v10  ;;  %v947_v26 = vld [vmem:[%s1038_s28 + $0xf0] sm:$0xff]   ;;  %v951_v30 = vld [vmem:[%s1038_s28 + $0xf8] sm:$0xff]   ;;  %v308_v34 = vld [vmem:[%s1033_s24 + $0x8] sm:$0xff]  ;;  %v811_v35 = vcombine.low %v307_v33, %v307_v33  ;;  %v812_v36 = vcombine.high %v307_v33, %v307_v33 }
  0x22   : > { %v948_v27 = vld [vmem:[%s1038_s28 + $0x30] sm:$0xff]   ;;  %v952_v31 = vld [vmem:[%s1038_s28 + $0x38] sm:$0xff]   ;;  %v813_v37 = vcombine.low %v308_v34, %v308_v34  ;;  %v814_v38 = vcombine.high %v308_v34, %v308_v34  ;;  %v306_v47 = vld [vmem:[#allocation2] sm:$0xff] }
  0x23   : > { %858 = vmatpush3.bf16.msra.mxu0 %v932_v11  ;;  %v949_v28 = vld [vmem:[%s1038_s28 + $0xb0] sm:$0xff]   ;;  %v953_v32 = vld [vmem:[%s1038_s28 + $0xb8] sm:$0xff]   ;;  %611 = vmatprep.mubr.bf16.mxu0 %v812_v36  ;;  %v848_v53 = vld [vmem:[%s1096_s2] ss:$0 sm:$0xff] (!%p847_p7) }
  0x24   : > { %880 = vmatpush3.bf16.msra.mxu1 %v933_v12  ;;  %859 = vmatprep.subr.bf16.mxu0 %v934_v13  ;;  %v849_v54 = vld [vmem:[%s1097_s3] ss:$0 sm:$0xff] (!%p847_p7) }
  0x25   : > { %881 = vmatprep.subr.bf16.mxu1 %v935_v14  ;;  %651 = vmatprep.mubr.bf16.mxu1 %v814_v38 }
  0x27   : > { %860 = vmatpush3.bf16.msra.mxu0 %v936_v15 }
  0x28   : > { %882 = vmatpush3.bf16.msra.mxu1 %v937_v16  ;;  %861 = vmatprep.subr.bf16.mxu0 %v938_v17 }
  0x29   : > { %883 = vmatprep.subr.bf16.mxu1 %v939_v18 }
  0x2b   : > { %862 = vmatpush3.bf16.msra.mxu0 %v940_v19 }
  0x2c   : > { %884 = vmatpush3.bf16.msra.mxu1 %v941_v20  ;;  %863 = vmatprep.subr.bf16.mxu0 %v942_v21 }
  0x2d   : > { %885 = vmatprep.subr.bf16.mxu1 %v943_v22 }
  0x2f   : > { %864 = vmatpush3.bf16.msra.mxu0 %v944_v23 }
  0x30   : > { %886 = vmatpush3.bf16.msra.mxu1 %v945_v24  ;;  %865 = vmatprep.subr.bf16.mxu0 %v946_v25 }
  0x31   : > { %887 = vmatprep.subr.bf16.mxu1 %v947_v26 }
  0x33   : > { %866 = vmatpush3.bf16.msra.mxu0 %v948_v27 }
  0x34   : > { %888 = vmatpush3.bf16.msra.mxu1 %v949_v28  ;;  %867 = vmatprep.subr.bf16.mxu0 %v950_v29 }
  0x35   : > { %889 = vmatprep.subr.bf16.mxu1 %v951_v30 }
  0x37   : > { %868 = vmatpush3.bf16.msra.mxu0 %v952_v31 }
  0x38   : > { %890 = vmatpush3.bf16.msra.mxu1 %v953_v32 }
  0x3a   : > { %612 = vmatmul.mubr.bf16.vlgmr.msra.gmra.mrb[0].mxu0 %v811_v35 }
  0x3b   : > { %652 = vmatmul.mubr.bf16.vlgmr.msra.gmra.mrb[0].mxu1 %v813_v37 }
 0x10d   : > { %v869_v39 = vpop.f32.mrb[0].mxu0 }
 0x10e   : > { %v891_v40 = vpop.f32.mrb[0].mxu1  ;;  %v870_v41 = vpop.f32.mrb[1].mxu0 }
 0x10f   : > { %v892_v42 = vpop.f32.mrb[1].mxu1  ;;  %v871_v43 = vadd.f32 %v870_v41, %v869_v39  ;;  %v872_v45 = vpop.f32.mrb[2].mxu0 }
 0x110   : > { %v893_v44 = vadd.f32 %v892_v42, %v891_v40  ;;  %v894_v46 = vpop.f32.mrb[2].mxu1  ;;  %v873_v48 = vpop.f32.mrb[3].mxu0  ;;  %664 = sbr.rel (%p847_p7) target bundleno = 291 (0x123), region = 44 }
 0x111   : > { %v895_v49 = vpop.f32.mrb[3].mxu1 }
 0x112   : > { %v654_v50 = vadd.f32 %v893_v44, %v871_v43 }
 0x114   : > { %v659_v51 = vadd.f32 %v654_v50, %v306_v47 }
 0x116   : > { %660 = vst [vmem:[#allocation2] sm:$0xff] %v659_v51 }
 0x11d   : > { %v665_v52 = vld [vmem:[#allocation2] sm:$0xff] }
 0x11e   : > { %v673_v55 = vmul.f32 %v848_v53, %v665_v52 }
 0x120   : > { %v681_v56 = vadd.f32 %v849_v54, %v673_v55 }
 0x122   : > { %682 = vst [vmem:[%s1098_s4] sm:$0xff] %v681_v56 }
 0x123 PF: > { %s14_s17 = sadd.s32 1, %s980_s17   ;;  %s1099_s15 = smov %s976_s16 }
 0x124   : > { %p11_p8 = scmp.ge.s32.totalorder %s14_s17, 34   ;;  %s1100_s16 = smov %s1102_s18 }
 0x126   :  { %13 = sbr.rel (!%p11_p8) target bundleno = 2 (0x2), region = 83 }

</bundles_post_ra>
